<compile_context>
chip_gen: v7x
topology: tpu7x:2x2x1
jax: 0.10.0
libtpu: 0.0.40
codegen_flags: <defaults>
</compile_context>

<pallas_src>
import math
import numpy as np
import jax
import jax.numpy as jnp
from jax.experimental import pallas as pl
from jax.experimental.pallas import tpu as pltpu

# ----------------------------- model hyper-params -----------------------------
D_MODEL = 32
N_LAYER = 2
VOCAB   = 64
D_STATE = 16                      # Mamba default
D_CONV  = 4                       # Mamba default
EXPAND  = 2                       # Mamba default
D_INNER = EXPAND * D_MODEL
DT_RANK = math.ceil(D_MODEL / 16)
EPS     = 1e-5

BATCH  = 2
SEQLEN = 8

# "wide" (batch-in-lanes) dimensions
WD = BATCH * D_MODEL              # 64
WI = BATCH * D_INNER              # 128  -> full lane width
WS = BATCH * D_STATE              # 32
LS = SEQLEN * D_STATE             # 128


# ----------------------------- in-kernel helpers ------------------------------
def _sigmoid(x):
    return 1.0 / (1.0 + jnp.exp(-x))


def _silu(x):
    return x * _sigmoid(x)


def _softplus(x):
    # TODO(synk): log1p(exp(x)) would be marginally more precise below the
    # threshold; keep log(1+exp(x)) which is known to lower cleanly.
    return jnp.where(x > 20.0, x, jnp.log(1.0 + jnp.exp(x)))


def _layernorm_wide(x, w, b, mavg):
    """LayerNorm over each batch's D_MODEL-lane block of the wide layout.

    mavg is a (WD, WD) block matrix with 1/D_MODEL inside each batch block, so
    x @ mavg broadcasts the per-batch mean back onto that batch's lanes.
    """
    mean = jnp.dot(x, mavg, preferred_element_type=jnp.float32)
    xc = x - mean
    var = jnp.dot(xc * xc, mavg, preferred_element_type=jnp.float32)
    return xc * jax.lax.rsqrt(var + EPS) * w + b


# ------------------------------- fused Pallas kernel ---------------------------
def fused_mixer_kernel(hid_ref,
                       shiftm_ref, rrows_ref, msel_ref, spread_ref, pool_ref,
                       mavg_ref,
                       ln_w_ref, ln_b_ref, inx_w_ref, inz_w_ref,
                       conv_w_ref, conv_b_ref, wdelta_ref, dtb_ref,
                       xb_w_ref, xc_w_ref, afull_ref, dskip_ref, outw_ref,
                       nfw_ref, nfb_ref,
                       out_ref,
                       dA_ref, st_ref):
    """Whole MixerModel forward (embedding already looked up), wide layout.

    hid_ref  : (SEQLEN, WD)   tokens, lane c = b*D_MODEL + d.
    shiftm   : (D_CONV, L, L) causal shift matrices (time axis only).
    rrows    : (LS, L)        row replicator  rrows[t*S+s, t'] = (t'==t)
    msel     : (LS, WS)       state selector  msel[t*S+s, b*S+s'] = (s'==s)
    spread   : (WS, WI)       lane spreader   spread[b*S+s, b'*I+i] = (b==b')
    pool     : (L, LS)        state pooler    pool[t, t'*S+s] = (t'==t)
    mavg     : (WD, WD)       per-batch block averaging (1/D_MODEL blocks)
    Per-layer weights are stacked on a leading N_LAYER axis, block-diagonal over
    the batch where they act on lanes.
    dA_ref / st_ref : VMEM scratch (LS, WI) = (128, 128).
    """
    hid = hid_ref[...]                               # (L, WD)
    res = jnp.zeros_like(hid)

    rrows = rrows_ref[...]                           # (LS, L)
    msel = msel_ref[...]                             # (LS, WS)
    spread = spread_ref[...]                         # (WS, WI)
    pool = pool_ref[...]                             # (L, LS)
    mavg = mavg_ref[...]                             # (WD, WD)

    for l in range(N_LAYER):                         # static layer loop
        # ---- residual add + pre-norm ---------------------------------------
        res = hid + res
        h = _layernorm_wide(res, ln_w_ref[l], ln_b_ref[l], mavg)      # (L, WD)

        # ---- in_proj (block-diag over batch, split x / z, no bias) ---------
        x = jnp.dot(h, inx_w_ref[l], preferred_element_type=jnp.float32)   # (L, WI)
        z = jnp.dot(h, inz_w_ref[l], preferred_element_type=jnp.float32)   # (L, WI)

        # ---- causal depthwise conv via shift-matrix matmuls + SiLU ---------
        cw = conv_w_ref[l]                                       # (D_CONV, WI)
        xc = conv_b_ref[l]                                       # (1, WI)
        for k in range(D_CONV):
            shifted = jnp.dot(shiftm_ref[k], x,
                              preferred_element_type=jnp.float32)           # (L, WI)
            xc = xc + shifted * cw[k:k + 1, :]
        x = _silu(xc)                                            # (L, WI)

        # ---- delta (fused dt path), B, C -----------------------------------
        delta = _softplus(
            jnp.dot(x, wdelta_ref[l], preferred_element_type=jnp.float32)
            + dtb_ref[l])                                        # (L, WI)
        B_ssm = jnp.dot(x, xb_w_ref[l], preferred_element_type=jnp.float32)  # (L, WS)
        C_ssm = jnp.dot(x, xc_w_ref[l], preferred_element_type=jnp.float32)  # (L, WS)

        # ---- hoisted scan pre-computation (all tokens / both batches) ------
        # dA[t*S+s, b*I+i]  = exp(delta[t, b*I+i] * A[i, s])
        # dBu[t*S+s, b*I+i] = delta[t, b*I+i] * B[t, b*S+s] * x[t, b*I+i]
        delta_rep = jnp.dot(rrows, delta, preferred_element_type=jnp.float32)  # (LS, WI)
        dA_ref[...] = jnp.exp(delta_rep * afull_ref[l])

        dxu_rep = jnp.dot(rrows, delta * x, preferred_element_type=jnp.float32)
        B_rep = jnp.dot(
            jnp.dot(rrows, B_ssm, preferred_element_type=jnp.float32) * msel,
            spread, preferred_element_type=jnp.float32)                        # (LS, WI)
        st_ref[...] = dxu_rep * B_rep                                          # dBu -> states

        C_rep = jnp.dot(
            jnp.dot(rrows, C_ssm, preferred_element_type=jnp.float32) * msel,
            spread, preferred_element_type=jnp.float32)                        # (LS, WI)

        # ---- serial recurrence (the only sequential part) ------------------
        # state_t = dA_t * state_{t-1} + dBu_t ; state_{-1} = 0
        # Both batches advance together on a (D_STATE, WI) = (16, 128) slab.
        # TODO(synk): for production seqlens, tile the sequence on a grid axis
        # and carry the state in scratch across tiles (VMEM budget on v7x).
        state = st_ref[pl.ds(0, D_STATE), :]                     # t=0: dBu_0
        for t in range(1, SEQLEN):
            cur = pl.ds(t * D_STATE, D_STATE)
            state = dA_ref[cur, :] * state + st_ref[cur, :]
            st_ref[cur, :] = state

        # ---- y_t = C_t . state_t (pooled matmul), D-skip, gate, out_proj ---
        y = jnp.dot(pool, st_ref[...] * C_rep,
                    preferred_element_type=jnp.float32)          # (L, WI)
        y = (y + x * dskip_ref[l]) * _silu(z)
        hid = jnp.dot(y, outw_ref[l], preferred_element_type=jnp.float32)   # (L, WD)

    # ---- final add + norm_f ------------------------------------------------
    res = hid + res
    out_ref[...] = _layernorm_wide(res, nfw_ref[...], nfb_ref[...], mavg)


# ------------------------------- pallas_call glue -------------------------------
def _fs(shape):
    n = len(shape)
    return pl.BlockSpec(shape, lambda i, _n=n: (0,) * _n)


def run_fused(hid_w, p, c):
    in_specs = [
        _fs((SEQLEN, WD)),
        _fs((D_CONV, SEQLEN, SEQLEN)), _fs((LS, SEQLEN)), _fs((LS, WS)),
        _fs((WS, WI)), _fs((SEQLEN, LS)), _fs((WD, WD)),
        _fs((N_LAYER, 1, WD)), _fs((N_LAYER, 1, WD)),
        _fs((N_LAYER, WD, WI)), _fs((N_LAYER, WD, WI)),
        _fs((N_LAYER, D_CONV, WI)), _fs((N_LAYER, 1, WI)),
        _fs((N_LAYER, WI, WI)), _fs((N_LAYER, 1, WI)),
        _fs((N_LAYER, WI, WS)), _fs((N_LAYER, WI, WS)),
        _fs((N_LAYER, LS, WI)), _fs((N_LAYER, 1, WI)),
        _fs((N_LAYER, WI, WD)),
        _fs((1, WD)), _fs((1, WD)),
    ]
    return pl.pallas_call(
        fused_mixer_kernel,
        grid=(1,),
        in_specs=in_specs,
        out_specs=_fs((SEQLEN, WD)),
        out_shape=jax.ShapeDtypeStruct((SEQLEN, WD), jnp.float32),
        scratch_shapes=[
            pltpu.VMEM((LS, WI), jnp.float32),   # dA
            pltpu.VMEM((LS, WI), jnp.float32),   # dBu -> states
        ],
        compiler_params=pltpu.CompilerParams(
            dimension_semantics=("arbitrary",)),
    )(hid_w,
      c["shiftm"], c["rrows"], c["msel"], c["spread"], c["pool"], c["mavg"],
      p["ln_w"], p["ln_b"], p["in_x_w"], p["in_z_w"],
      p["conv_w"], p["conv_b"], p["w_delta"], p["dtproj_b"],
      p["xb_w"], p["xc_w"], p["A_full"], p["Dskip"], p["out_w"],
      p["norm_f_w"], p["norm_f_b"])


def mixer_model_forward(input_ids, packed, consts):
    # embedding lookup kept in plain JAX (token gather glue)
    hid = jnp.take(packed["embedding"], input_ids, axis=0)      # (B, L, D)
    hid_w = hid.transpose(1, 0, 2).reshape(SEQLEN, WD)          # batch-in-lanes
    out_w = run_fused(hid_w, packed, consts)
    return out_w.reshape(SEQLEN, BATCH, D_MODEL).transpose(1, 0, 2)


# ---------------------------- constant helper matrices --------------------------
def build_consts():
    shiftm = np.zeros((D_CONV, SEQLEN, SEQLEN), np.float32)
    for k in range(D_CONV):
        s = D_CONV - 1 - k
        for t in range(SEQLEN):
            if t >= s:
                shiftm[k, t, t - s] = 1.0
    rrows = np.zeros((LS, SEQLEN), np.float32)
    msel = np.zeros((LS, WS), np.float32)
    for t in range(SEQLEN):
        for s in range(D_STATE):
            rrows[t * D_STATE + s, t] = 1.0
            for b in range(BATCH):
                msel[t * D_STATE + s, b * D_STATE + s] = 1.0
    spread = np.zeros((WS, WI), np.float32)
    pool = np.zeros((SEQLEN, LS), np.float32)
    for b in range(BATCH):
        spread[b * D_STATE:(b + 1) * D_STATE, b * D_INNER:(b + 1) * D_INNER] = 1.0
    for t in range(SEQLEN):
        pool[t, t * D_STATE:(t + 1) * D_STATE] = 1.0
    mavg = np.zeros((WD, WD), np.float32)
    for b in range(BATCH):
        mavg[b * D_MODEL:(b + 1) * D_MODEL, b * D_MODEL:(b + 1) * D_MODEL] = 1.0 / D_MODEL
    return {k: jnp.asarray(v) for k, v in
            dict(shiftm=shiftm, rrows=rrows, msel=msel,
                 spread=spread, pool=pool, mavg=mavg).items()}


# ------------------------------ deterministic init ------------------------------
def init_params(key):
    keys = jax.random.split(key, 2 + N_LAYER)
    params = {
        "embedding": 0.02 * jax.random.normal(keys[0], (VOCAB, D_MODEL), jnp.float32),
        "norm_f_w": jnp.ones((1, D_MODEL), jnp.float32),
        "norm_f_b": jnp.zeros((1, D_MODEL), jnp.float32),
        "layers": [],
    }
    for i in range(N_LAYER):
        k = jax.random.split(keys[2 + i], 6)
        # dt_proj bias: inverse-softplus of dt in [1e-3, 1e-1] (Mamba-style init)
        dt = jnp.exp(jax.random.uniform(k[4], (D_INNER,), jnp.float32)
                     * (math.log(0.1) - math.log(0.001)) + math.log(0.001))
        dt = jnp.clip(dt, 1e-4)
        inv_dt = dt + jnp.log(-jnp.expm1(-dt))
        # A_log = log(arange(1, d_state+1)) -> A = -exp(A_log)
        A = -jnp.tile(jnp.arange(1, D_STATE + 1, dtype=jnp.float32), (D_INNER, 1))
        layer = {
            "ln_w": jnp.ones((1, D_MODEL), jnp.float32),
            "ln_b": jnp.zeros((1, D_MODEL), jnp.float32),
            # weights stored as (in_features, out_features)
            "in_w": jax.random.normal(k[0], (D_MODEL, 2 * D_INNER), jnp.float32)
                    * (D_MODEL ** -0.5),
            "conv_w": 0.2 * jax.random.normal(k[1], (D_CONV, D_INNER), jnp.float32),
            "conv_b": jnp.zeros((1, D_INNER), jnp.float32),
            "xproj_w": jax.random.normal(k[2], (D_INNER, DT_RANK + 2 * D_STATE),
                                         jnp.float32) * (D_INNER ** -0.5),
            "dtproj_w": jax.random.normal(k[3], (DT_RANK, D_INNER), jnp.float32)
                        * (DT_RANK ** -0.5),
            "dtproj_b": inv_dt.reshape(1, D_INNER),
            "A": A,
            "Dskip": jnp.ones((1, D_INNER), jnp.float32),
            # out_proj rescaled by 1/sqrt(n_layer) (rescale_prenorm_residual)
            "out_w": jax.random.normal(k[5], (D_INNER, D_MODEL), jnp.float32)
                     * (D_INNER ** -0.5) / math.sqrt(N_LAYER),
        }
        params["layers"].append(layer)
    return params


def pack_params(params):
    """Host-side packing for the wide layout.

    * dt path algebraically fused: W_delta = xproj_dt @ dtproj.
    * Lane-acting weights become block-diagonal over the batch; per-channel
      vectors are lane-tiled; A is pre-replicated over time and batch.
    """
    layers = params["layers"]

    def bd(W):                                     # (fin, fout) -> (B*fin, B*fout)
        fin, fout = W.shape
        Z = jnp.zeros((BATCH * fin, BATCH * fout), jnp.float32)
        for b in range(BATCH):
            Z = Z.at[b * fin:(b + 1) * fin, b * fout:(b + 1) * fout].set(W)
        return Z

    tile_l = lambda v: jnp.tile(v, (1, BATCH))     # (1, F) -> (1, B*F)
    stack = lambda f: jnp.stack([f(lp) for lp in layers], axis=0)

    return {
        "embedding": params["embedding"],
        "norm_f_w": jnp.tile(params["norm_f_w"], (1, BATCH)),
        "norm_f_b": jnp.tile(params["norm_f_b"], (1, BATCH)),
        "ln_w": stack(lambda lp: tile_l(lp["ln_w"])),
        "ln_b": stack(lambda lp: tile_l(lp["ln_b"])),
        "in_x_w": stack(lambda lp: bd(lp["in_w"][:, :D_INNER])),
        "in_z_w": stack(lambda lp: bd(lp["in_w"][:, D_INNER:])),
        "conv_w": stack(lambda lp: jnp.tile(lp["conv_w"], (1, BATCH))),
        "conv_b": stack(lambda lp: tile_l(lp["conv_b"])),
        # W_delta = xproj_w[:, :dt_rank] @ dtproj_w  (algebraic fusion), block-diag
        "w_delta": stack(lambda lp: bd(lp["xproj_w"][:, :DT_RANK] @ lp["dtproj_w"])),
        "dtproj_b": stack(lambda lp: tile_l(lp["dtproj_b"])),
        "xb_w": stack(lambda lp: bd(lp["xproj_w"][:, DT_RANK:DT_RANK + D_STATE])),
        "xc_w": stack(lambda lp: bd(lp["xproj_w"][:, DT_RANK + D_STATE:])),
        # A_full[t*S+s, b*I+i] = A[i, s]
        "A_full": stack(lambda lp: jnp.tile(lp["A"].T, (SEQLEN, BATCH))),
        "Dskip": stack(lambda lp: tile_l(lp["Dskip"])),
        "out_w": stack(lambda lp: bd(lp["out_w"])),
    }


# ------------------------------------ main --------------------------------------
if __name__ == "__main__":
    key = jax.random.PRNGKey(0)
    k_param, k_ids = jax.random.split(key)
    params = init_params(k_param)
    packed = pack_params(params)
    consts = build_consts()
    input_ids = jax.random.randint(k_ids, (BATCH, SEQLEN), 0, VOCAB, dtype=jnp.int32)

    out = jax.jit(mixer_model_forward)(input_ids, packed, consts)
    out = jax.block_until_ready(out)
    assert out.shape == (BATCH, SEQLEN, D_MODEL)
    assert bool(jnp.all(jnp.isfinite(out)))
    print("KERNEL_OK")
</pallas_src>

<mosaic_0001>
module attributes {stable_mosaic.version = 11 : i64} {
  func.func @fused_mixer_kernel(%arg0: i32, %arg1: memref<8x64xf32, #tpu.memory_space<vmem>>, %arg2: memref<4x8x8xf32, #tpu.memory_space<vmem>>, %arg3: memref<128x8xf32, #tpu.memory_space<vmem>>, %arg4: memref<128x32xf32, #tpu.memory_space<vmem>>, %arg5: memref<32x128xf32, #tpu.memory_space<vmem>>, %arg6: memref<8x128xf32, #tpu.memory_space<vmem>>, %arg7: memref<64x64xf32, #tpu.memory_space<vmem>>, %arg8: memref<2x1x64xf32, #tpu.memory_space<vmem>>, %arg9: memref<2x1x64xf32, #tpu.memory_space<vmem>>, %arg10: memref<2x64x128xf32, #tpu.memory_space<vmem>>, %arg11: memref<2x64x128xf32, #tpu.memory_space<vmem>>, %arg12: memref<2x4x128xf32, #tpu.memory_space<vmem>>, %arg13: memref<2x1x128xf32, #tpu.memory_space<vmem>>, %arg14: memref<2x128x128xf32, #tpu.memory_space<vmem>>, %arg15: memref<2x1x128xf32, #tpu.memory_space<vmem>>, %arg16: memref<2x128x32xf32, #tpu.memory_space<vmem>>, %arg17: memref<2x128x32xf32, #tpu.memory_space<vmem>>, %arg18: memref<2x128x128xf32, #tpu.memory_space<vmem>>, %arg19: memref<2x1x128xf32, #tpu.memory_space<vmem>>, %arg20: memref<2x128x64xf32, #tpu.memory_space<vmem>>, %arg21: memref<1x64xf32, #tpu.memory_space<vmem>>, %arg22: memref<1x64xf32, #tpu.memory_space<vmem>>, %arg23: memref<8x64xf32, #tpu.memory_space<vmem>>, %arg24: memref<128x128xf32, #tpu.memory_space<vmem>>, %arg25: memref<128x128xf32, #tpu.memory_space<vmem>>) attributes {dimension_semantics = [#tpu.dimension_semantics<arbitrary>], iteration_bounds = array<i64: 1>, scalar_prefetch = 0 : i64, scratch_operands = 2 : i64, tpu.core_type = #tpu.core_type<tc>, window_params = [{pipeline_mode = #tpu.pipeline_mode<synchronous>, transform_indices = @transform_0, window_bounds = array<i64: 8, 64>}, {pipeline_mode = #tpu.pipeline_mode<synchronous>, transform_indices = @transform_1, window_bounds = array<i64: 4, 8, 8>}, {pipeline_mode = #tpu.pipeline_mode<synchronous>, transform_indices = @transform_2, window_bounds = array<i64: 128, 8>}, {pipeline_mode = #tpu.pipeline_mode<synchronous>, transform_indices = @transform_3, window_bounds = array<i64: 128, 32>}, {pipeline_mode = #tpu.pipeline_mode<synchronous>, transform_indices = @transform_4, window_bounds = array<i64: 32, 128>}, {pipeline_mode = #tpu.pipeline_mode<synchronous>, transform_indices = @transform_5, window_bounds = array<i64: 8, 128>}, {pipeline_mode = #tpu.pipeline_mode<synchronous>, transform_indices = @transform_6, window_bounds = array<i64: 64, 64>}, {pipeline_mode = #tpu.pipeline_mode<synchronous>, transform_indices = @transform_7, window_bounds = array<i64: 2, 1, 64>}, {pipeline_mode = #tpu.pipeline_mode<synchronous>, transform_indices = @transform_8, window_bounds = array<i64: 2, 1, 64>}, {pipeline_mode = #tpu.pipeline_mode<synchronous>, transform_indices = @transform_9, window_bounds = array<i64: 2, 64, 128>}, {pipeline_mode = #tpu.pipeline_mode<synchronous>, transform_indices = @transform_10, window_bounds = array<i64: 2, 64, 128>}, {pipeline_mode = #tpu.pipeline_mode<synchronous>, transform_indices = @transform_11, window_bounds = array<i64: 2, 4, 128>}, {pipeline_mode = #tpu.pipeline_mode<synchronous>, transform_indices = @transform_12, window_bounds = array<i64: 2, 1, 128>}, {pipeline_mode = #tpu.pipeline_mode<synchronous>, transform_indices = @transform_13, window_bounds = array<i64: 2, 128, 128>}, {pipeline_mode = #tpu.pipeline_mode<synchronous>, transform_indices = @transform_14, window_bounds = array<i64: 2, 1, 128>}, {pipeline_mode = #tpu.pipeline_mode<synchronous>, transform_indices = @transform_15, window_bounds = array<i64: 2, 128, 32>}, {pipeline_mode = #tpu.pipeline_mode<synchronous>, transform_indices = @transform_16, window_bounds = array<i64: 2, 128, 32>}, {pipeline_mode = #tpu.pipeline_mode<synchronous>, transform_indices = @transform_17, window_bounds = array<i64: 2, 128, 128>}, {pipeline_mode = #tpu.pipeline_mode<synchronous>, transform_indices = @transform_18, window_bounds = array<i64: 2, 1, 128>}, {pipeline_mode = #tpu.pipeline_mode<synchronous>, transform_indices = @transform_19, window_bounds = array<i64: 2, 128, 64>}, {pipeline_mode = #tpu.pipeline_mode<synchronous>, transform_indices = @transform_20, window_bounds = array<i64: 1, 64>}, {pipeline_mode = #tpu.pipeline_mode<synchronous>, transform_indices = @transform_21, window_bounds = array<i64: 1, 64>}, {pipeline_mode = #tpu.pipeline_mode<synchronous>, transform_indices = @transform_22, window_bounds = array<i64: 8, 64>}]} {
    %c0 = arith.constant 0 : index
    %c0_0 = arith.constant 0 : index
    %0 = vector.load %arg1[%c0, %c0_0] : memref<8x64xf32, #tpu.memory_space<vmem>>, vector<8x64xf32>
    %cst = arith.constant 0.000000e+00 : f32
    %1 = vector.broadcast %cst : f32 to vector<8x64xf32>
    %c0_1 = arith.constant 0 : index
    %c0_2 = arith.constant 0 : index
    %2 = vector.load %arg3[%c0_1, %c0_2] : memref<128x8xf32, #tpu.memory_space<vmem>>, vector<128x8xf32>
    %c0_3 = arith.constant 0 : index
    %c0_4 = arith.constant 0 : index
    %3 = vector.load %arg4[%c0_3, %c0_4] : memref<128x32xf32, #tpu.memory_space<vmem>>, vector<128x32xf32>
    %c0_5 = arith.constant 0 : index
    %c0_6 = arith.constant 0 : index
    %4 = vector.load %arg5[%c0_5, %c0_6] : memref<32x128xf32, #tpu.memory_space<vmem>>, vector<32x128xf32>
    %c0_7 = arith.constant 0 : index
    %c0_8 = arith.constant 0 : index
    %5 = vector.load %arg6[%c0_7, %c0_8] : memref<8x128xf32, #tpu.memory_space<vmem>>, vector<8x128xf32>
    %c0_9 = arith.constant 0 : index
    %c0_10 = arith.constant 0 : index
    %6 = vector.load %arg7[%c0_9, %c0_10] : memref<64x64xf32, #tpu.memory_space<vmem>>, vector<64x64xf32>
    %7 = arith.addf %0, %1 : vector<8x64xf32>
    %c0_11 = arith.constant 0 : index
    %c0_12 = arith.constant 0 : index
    %c0_13 = arith.constant 0 : index
    %8 = vector.load %arg8[%c0_11, %c0_12, %c0_13] : memref<2x1x64xf32, #tpu.memory_space<vmem>>, vector<1x1x64xf32>
    %9 = vector.shape_cast %8 : vector<1x1x64xf32> to vector<1x64xf32>
    %c0_14 = arith.constant 0 : index
    %c0_15 = arith.constant 0 : index
    %c0_16 = arith.constant 0 : index
    %10 = vector.load %arg9[%c0_14, %c0_15, %c0_16] : memref<2x1x64xf32, #tpu.memory_space<vmem>>, vector<1x1x64xf32>
    %11 = vector.shape_cast %10 : vector<1x1x64xf32> to vector<1x64xf32>
    %cst_17 = arith.constant dense<0.000000e+00> : vector<8x64xf32>
    %12 = tpu.matmul %7, %6, %cst_17 {dimension_numbers = #tpu.dot_dimension_numbers<[1], [0], [0], [1], [0, 0, 1, 1], [], []>} : vector<8x64xf32>, vector<64x64xf32>, vector<8x64xf32> -> vector<8x64xf32>
    %13 = arith.subf %7, %12 : vector<8x64xf32>
    %14 = arith.mulf %13, %13 : vector<8x64xf32>
    %cst_18 = arith.constant dense<0.000000e+00> : vector<8x64xf32>
    %15 = tpu.matmul %14, %6, %cst_18 {dimension_numbers = #tpu.dot_dimension_numbers<[1], [0], [0], [1], [0, 0, 1, 1], [], []>} : vector<8x64xf32>, vector<64x64xf32>, vector<8x64xf32> -> vector<8x64xf32>
    %cst_19 = arith.constant 9.99999974E-6 : f32
    %16 = vector.broadcast %cst_19 : f32 to vector<8x64xf32>
    %17 = arith.addf %15, %16 : vector<8x64xf32>
    %18 = math.rsqrt %17 : vector<8x64xf32>
    %19 = arith.mulf %13, %18 : vector<8x64xf32>
    %20 = vector.broadcast %9 : vector<1x64xf32> to vector<8x64xf32>
    %21 = arith.mulf %19, %20 : vector<8x64xf32>
    %22 = vector.broadcast %11 : vector<1x64xf32> to vector<8x64xf32>
    %23 = arith.addf %21, %22 : vector<8x64xf32>
    %c0_20 = arith.constant 0 : index
    %c0_21 = arith.constant 0 : index
    %c0_22 = arith.constant 0 : index
    %24 = vector.load %arg10[%c0_20, %c0_21, %c0_22] : memref<2x64x128xf32, #tpu.memory_space<vmem>>, vector<1x64x128xf32>
    %25 = vector.shape_cast %24 : vector<1x64x128xf32> to vector<64x128xf32>
    %cst_23 = arith.constant dense<0.000000e+00> : vector<8x128xf32>
    %26 = tpu.matmul %23, %25, %cst_23 {dimension_numbers = #tpu.dot_dimension_numbers<[1], [0], [0], [1], [0, 0, 1, 1], [], []>} : vector<8x64xf32>, vector<64x128xf32>, vector<8x128xf32> -> vector<8x128xf32>
    %c0_24 = arith.constant 0 : index
    %c0_25 = arith.constant 0 : index
    %c0_26 = arith.constant 0 : index
    %27 = vector.load %arg11[%c0_24, %c0_25, %c0_26] : memref<2x64x128xf32, #tpu.memory_space<vmem>>, vector<1x64x128xf32>
    %28 = vector.shape_cast %27 : vector<1x64x128xf32> to vector<64x128xf32>
    %cst_27 = arith.constant dense<0.000000e+00> : vector<8x128xf32>
    %29 = tpu.matmul %23, %28, %cst_27 {dimension_numbers = #tpu.dot_dimension_numbers<[1], [0], [0], [1], [0, 0, 1, 1], [], []>} : vector<8x64xf32>, vector<64x128xf32>, vector<8x128xf32> -> vector<8x128xf32>
    %c0_28 = arith.constant 0 : index
    %c0_29 = arith.constant 0 : index
    %c0_30 = arith.constant 0 : index
    %30 = vector.load %arg12[%c0_28, %c0_29, %c0_30] : memref<2x4x128xf32, #tpu.memory_space<vmem>>, vector<1x4x128xf32>
    %31 = vector.shape_cast %30 : vector<1x4x128xf32> to vector<4x128xf32>
    %c0_31 = arith.constant 0 : index
    %c0_32 = arith.constant 0 : index
    %c0_33 = arith.constant 0 : index
    %32 = vector.load %arg13[%c0_31, %c0_32, %c0_33] : memref<2x1x128xf32, #tpu.memory_space<vmem>>, vector<1x1x128xf32>
    %33 = vector.shape_cast %32 : vector<1x1x128xf32> to vector<1x128xf32>
    %c0_34 = arith.constant 0 : index
    %c0_35 = arith.constant 0 : index
    %c0_36 = arith.constant 0 : index
    %34 = vector.load %arg2[%c0_34, %c0_35, %c0_36] : memref<4x8x8xf32, #tpu.memory_space<vmem>>, vector<1x8x8xf32>
    %35 = vector.shape_cast %34 : vector<1x8x8xf32> to vector<8x8xf32>
    %cst_37 = arith.constant dense<0.000000e+00> : vector<8x128xf32>
    %36 = tpu.matmul %35, %26, %cst_37 {dimension_numbers = #tpu.dot_dimension_numbers<[1], [0], [0], [1], [0, 0, 1, 1], [], []>} : vector<8x8xf32>, vector<8x128xf32>, vector<8x128xf32> -> vector<8x128xf32>
    %37 = vector.extract_strided_slice %31 {offsets = [0, 0], sizes = [1, 128], strides = [1, 1]} : vector<4x128xf32> to vector<1x128xf32>
    %38 = vector.broadcast %37 : vector<1x128xf32> to vector<8x128xf32>
    %39 = arith.mulf %36, %38 : vector<8x128xf32>
    %40 = vector.broadcast %33 : vector<1x128xf32> to vector<8x128xf32>
    %41 = arith.addf %40, %39 : vector<8x128xf32>
    %c1 = arith.constant 1 : index
    %c0_38 = arith.constant 0 : index
    %c0_39 = arith.constant 0 : index
    %42 = vector.load %arg2[%c1, %c0_38, %c0_39] : memref<4x8x8xf32, #tpu.memory_space<vmem>>, vector<1x8x8xf32>
    %43 = vector.shape_cast %42 : vector<1x8x8xf32> to vector<8x8xf32>
    %cst_40 = arith.constant dense<0.000000e+00> : vector<8x128xf32>
    %44 = tpu.matmul %43, %26, %cst_40 {dimension_numbers = #tpu.dot_dimension_numbers<[1], [0], [0], [1], [0, 0, 1, 1], [], []>} : vector<8x8xf32>, vector<8x128xf32>, vector<8x128xf32> -> vector<8x128xf32>
    %45 = vector.extract_strided_slice %31 {offsets = [1, 0], sizes = [1, 128], strides = [1, 1]} : vector<4x128xf32> to vector<1x128xf32>
    %46 = vector.broadcast %45 : vector<1x128xf32> to vector<8x128xf32>
    %47 = arith.mulf %44, %46 : vector<8x128xf32>
    %48 = arith.addf %41, %47 : vector<8x128xf32>
    %c2 = arith.constant 2 : index
    %c0_41 = arith.constant 0 : index
    %c0_42 = arith.constant 0 : index
    %49 = vector.load %arg2[%c2, %c0_41, %c0_42] : memref<4x8x8xf32, #tpu.memory_space<vmem>>, vector<1x8x8xf32>
    %50 = vector.shape_cast %49 : vector<1x8x8xf32> to vector<8x8xf32>
    %cst_43 = arith.constant dense<0.000000e+00> : vector<8x128xf32>
    %51 = tpu.matmul %50, %26, %cst_43 {dimension_numbers = #tpu.dot_dimension_numbers<[1], [0], [0], [1], [0, 0, 1, 1], [], []>} : vector<8x8xf32>, vector<8x128xf32>, vector<8x128xf32> -> vector<8x128xf32>
    %52 = vector.extract_strided_slice %31 {offsets = [2, 0], sizes = [1, 128], strides = [1, 1]} : vector<4x128xf32> to vector<1x128xf32>
    %53 = vector.broadcast %52 : vector<1x128xf32> to vector<8x128xf32>
    %54 = arith.mulf %51, %53 : vector<8x128xf32>
    %55 = arith.addf %48, %54 : vector<8x128xf32>
    %c3 = arith.constant 3 : index
    %c0_44 = arith.constant 0 : index
    %c0_45 = arith.constant 0 : index
    %56 = vector.load %arg2[%c3, %c0_44, %c0_45] : memref<4x8x8xf32, #tpu.memory_space<vmem>>, vector<1x8x8xf32>
    %57 = vector.shape_cast %56 : vector<1x8x8xf32> to vector<8x8xf32>
    %cst_46 = arith.constant dense<0.000000e+00> : vector<8x128xf32>
    %58 = tpu.matmul %57, %26, %cst_46 {dimension_numbers = #tpu.dot_dimension_numbers<[1], [0], [0], [1], [0, 0, 1, 1], [], []>} : vector<8x8xf32>, vector<8x128xf32>, vector<8x128xf32> -> vector<8x128xf32>
    %59 = vector.extract_strided_slice %31 {offsets = [3, 0], sizes = [1, 128], strides = [1, 1]} : vector<4x128xf32> to vector<1x128xf32>
    %60 = vector.broadcast %59 : vector<1x128xf32> to vector<8x128xf32>
    %61 = arith.mulf %58, %60 : vector<8x128xf32>
    %62 = arith.addf %55, %61 : vector<8x128xf32>
    %cst_47 = arith.constant 0.000000e+00 : f32
    %63 = vector.broadcast %cst_47 : f32 to vector<8x128xf32>
    %64 = arith.subf %63, %62 : vector<8x128xf32>
    %65 = math.exp %64 : vector<8x128xf32>
    %cst_48 = arith.constant 1.000000e+00 : f32
    %66 = vector.broadcast %cst_48 : f32 to vector<8x128xf32>
    %67 = arith.addf %66, %65 : vector<8x128xf32>
    %cst_49 = arith.constant 1.000000e+00 : f32
    %68 = vector.broadcast %cst_49 : f32 to vector<8x128xf32>
    %69 = arith.divf %68, %67 : vector<8x128xf32>
    %70 = arith.mulf %62, %69 : vector<8x128xf32>
    %c0_50 = arith.constant 0 : index
    %c0_51 = arith.constant 0 : index
    %c0_52 = arith.constant 0 : index
    %71 = vector.load %arg14[%c0_50, %c0_51, %c0_52] : memref<2x128x128xf32, #tpu.memory_space<vmem>>, vector<1x128x128xf32>
    %72 = vector.shape_cast %71 : vector<1x128x128xf32> to vector<128x128xf32>
    %cst_53 = arith.constant dense<0.000000e+00> : vector<8x128xf32>
    %73 = tpu.matmul %70, %72, %cst_53 {dimension_numbers = #tpu.dot_dimension_numbers<[1], [0], [0], [1], [0, 0, 1, 1], [], []>} : vector<8x128xf32>, vector<128x128xf32>, vector<8x128xf32> -> vector<8x128xf32>
    %c0_54 = arith.constant 0 : index
    %c0_55 = arith.constant 0 : index
    %c0_56 = arith.constant 0 : index
    %74 = vector.load %arg15[%c0_54, %c0_55, %c0_56] : memref<2x1x128xf32, #tpu.memory_space<vmem>>, vector<1x1x128xf32>
    %75 = vector.shape_cast %74 : vector<1x1x128xf32> to vector<1x128xf32>
    %76 = vector.broadcast %75 : vector<1x128xf32> to vector<8x128xf32>
    %77 = arith.addf %73, %76 : vector<8x128xf32>
    %cst_57 = arith.constant 2.000000e+01 : f32
    %78 = vector.broadcast %cst_57 : f32 to vector<8x128xf32>
    %79 = arith.cmpf ogt, %77, %78 : vector<8x128xf32>
    %80 = math.exp %77 : vector<8x128xf32>
    %cst_58 = arith.constant 1.000000e+00 : f32
    %81 = vector.broadcast %cst_58 : f32 to vector<8x128xf32>
    %82 = arith.addf %81, %80 : vector<8x128xf32>
    %83 = math.log %82 : vector<8x128xf32>
    %84 = arith.select %79, %77, %83 : vector<8x128xi1>, vector<8x128xf32>
    %c0_59 = arith.constant 0 : index
    %c0_60 = arith.constant 0 : index
    %c0_61 = arith.constant 0 : index
    %85 = vector.load %arg16[%c0_59, %c0_60, %c0_61] : memref<2x128x32xf32, #tpu.memory_space<vmem>>, vector<1x128x32xf32>
    %86 = vector.shape_cast %85 : vector<1x128x32xf32> to vector<128x32xf32>
    %cst_62 = arith.constant dense<0.000000e+00> : vector<8x32xf32>
    %87 = tpu.matmul %70, %86, %cst_62 {dimension_numbers = #tpu.dot_dimension_numbers<[1], [0], [0], [1], [0, 0, 1, 1], [], []>} : vector<8x128xf32>, vector<128x32xf32>, vector<8x32xf32> -> vector<8x32xf32>
    %c0_63 = arith.constant 0 : index
    %c0_64 = arith.constant 0 : index
    %c0_65 = arith.constant 0 : index
    %88 = vector.load %arg17[%c0_63, %c0_64, %c0_65] : memref<2x128x32xf32, #tpu.memory_space<vmem>>, vector<1x128x32xf32>
    %89 = vector.shape_cast %88 : vector<1x128x32xf32> to vector<128x32xf32>
    %cst_66 = arith.constant dense<0.000000e+00> : vector<8x32xf32>
    %90 = tpu.matmul %70, %89, %cst_66 {dimension_numbers = #tpu.dot_dimension_numbers<[1], [0], [0], [1], [0, 0, 1, 1], [], []>} : vector<8x128xf32>, vector<128x32xf32>, vector<8x32xf32> -> vector<8x32xf32>
    %cst_67 = arith.constant dense<0.000000e+00> : vector<128x128xf32>
    %91 = tpu.matmul %2, %84, %cst_67 {dimension_numbers = #tpu.dot_dimension_numbers<[1], [0], [0], [1], [0, 0, 1, 1], [], []>} : vector<128x8xf32>, vector<8x128xf32>, vector<128x128xf32> -> vector<128x128xf32>
    %c0_68 = arith.constant 0 : index
    %c0_69 = arith.constant 0 : index
    %c0_70 = arith.constant 0 : index
    %92 = vector.load %arg18[%c0_68, %c0_69, %c0_70] : memref<2x128x128xf32, #tpu.memory_space<vmem>>, vector<1x128x128xf32>
    %93 = vector.shape_cast %92 : vector<1x128x128xf32> to vector<128x128xf32>
    %94 = arith.mulf %91, %93 : vector<128x128xf32>
    %95 = math.exp %94 : vector<128x128xf32>
    %c0_71 = arith.constant 0 : index
    %c0_72 = arith.constant 0 : index
    %96 = vector.load %arg24[%c0_71, %c0_72] : memref<128x128xf32, #tpu.memory_space<vmem>>, vector<128x128xf32>
    tpu.vector_store %arg24[%c0_71, %c0_72], %95 {strides = array<i32>} : memref<128x128xf32, #tpu.memory_space<vmem>>, vector<128x128xf32>,
    %97 = arith.mulf %84, %70 : vector<8x128xf32>
    %cst_73 = arith.constant dense<0.000000e+00> : vector<128x128xf32>
    %98 = tpu.matmul %2, %97, %cst_73 {dimension_numbers = #tpu.dot_dimension_numbers<[1], [0], [0], [1], [0, 0, 1, 1], [], []>} : vector<128x8xf32>, vector<8x128xf32>, vector<128x128xf32> -> vector<128x128xf32>
    %cst_74 = arith.constant dense<0.000000e+00> : vector<128x32xf32>
    %99 = tpu.matmul %2, %87, %cst_74 {dimension_numbers = #tpu.dot_dimension_numbers<[1], [0], [0], [1], [0, 0, 1, 1], [], []>} : vector<128x8xf32>, vector<8x32xf32>, vector<128x32xf32> -> vector<128x32xf32>
    %100 = arith.mulf %99, %3 : vector<128x32xf32>
    %cst_75 = arith.constant dense<0.000000e+00> : vector<128x128xf32>
    %101 = tpu.matmul %100, %4, %cst_75 {dimension_numbers = #tpu.dot_dimension_numbers<[1], [0], [0], [1], [0, 0, 1, 1], [], []>} : vector<128x32xf32>, vector<32x128xf32>, vector<128x128xf32> -> vector<128x128xf32>
    %102 = arith.mulf %98, %101 : vector<128x128xf32>
    %c0_76 = arith.constant 0 : index
    %c0_77 = arith.constant 0 : index
    %103 = vector.load %arg25[%c0_76, %c0_77] : memref<128x128xf32, #tpu.memory_space<vmem>>, vector<128x128xf32>
    tpu.vector_store %arg25[%c0_76, %c0_77], %102 {strides = array<i32>} : memref<128x128xf32, #tpu.memory_space<vmem>>, vector<128x128xf32>,
    %cst_78 = arith.constant dense<0.000000e+00> : vector<128x32xf32>
    %104 = tpu.matmul %2, %90, %cst_78 {dimension_numbers = #tpu.dot_dimension_numbers<[1], [0], [0], [1], [0, 0, 1, 1], [], []>} : vector<128x8xf32>, vector<8x32xf32>, vector<128x32xf32> -> vector<128x32xf32>
    %105 = arith.mulf %104, %3 : vector<128x32xf32>
    %cst_79 = arith.constant dense<0.000000e+00> : vector<128x128xf32>
    %106 = tpu.matmul %105, %4, %cst_79 {dimension_numbers = #tpu.dot_dimension_numbers<[1], [0], [0], [1], [0, 0, 1, 1], [], []>} : vector<128x32xf32>, vector<32x128xf32>, vector<128x128xf32> -> vector<128x128xf32>
    %c0_80 = arith.constant 0 : index
    %c0_81 = arith.constant 0 : index
    %107 = vector.load %arg25[%c0_80, %c0_81] : memref<128x128xf32, #tpu.memory_space<vmem>>, vector<16x128xf32>
    %c16 = arith.constant 16 : index
    %c0_82 = arith.constant 0 : index
    %108 = vector.load %arg24[%c16, %c0_82] : memref<128x128xf32, #tpu.memory_space<vmem>>, vector<16x128xf32>
    %109 = arith.mulf %108, %107 : vector<16x128xf32>
    %c16_83 = arith.constant 16 : index
    %c0_84 = arith.constant 0 : index
    %110 = vector.load %arg25[%c16_83, %c0_84] : memref<128x128xf32, #tpu.memory_space<vmem>>, vector<16x128xf32>
    %111 = arith.addf %109, %110 : vector<16x128xf32>
    %c16_85 = arith.constant 16 : index
    %c0_86 = arith.constant 0 : index
    %112 = vector.load %arg25[%c16_85, %c0_86] : memref<128x128xf32, #tpu.memory_space<vmem>>, vector<16x128xf32>
    tpu.vector_store %arg25[%c16_85, %c0_86], %111 {strides = array<i32>} : memref<128x128xf32, #tpu.memory_space<vmem>>, vector<16x128xf32>,
    %c32 = arith.constant 32 : index
    %c0_87 = arith.constant 0 : index
    %113 = vector.load %arg24[%c32, %c0_87] : memref<128x128xf32, #tpu.memory_space<vmem>>, vector<16x128xf32>
    %114 = arith.mulf %113, %111 : vector<16x128xf32>
    %c32_88 = arith.constant 32 : index
    %c0_89 = arith.constant 0 : index
    %115 = vector.load %arg25[%c32_88, %c0_89] : memref<128x128xf32, #tpu.memory_space<vmem>>, vector<16x128xf32>
    %116 = arith.addf %114, %115 : vector<16x128xf32>
    %c32_90 = arith.constant 32 : index
    %c0_91 = arith.constant 0 : index
    %117 = vector.load %arg25[%c32_90, %c0_91] : memref<128x128xf32, #tpu.memory_space<vmem>>, vector<16x128xf32>
    tpu.vector_store %arg25[%c32_90, %c0_91], %116 {strides = array<i32>} : memref<128x128xf32, #tpu.memory_space<vmem>>, vector<16x128xf32>,
    %c48 = arith.constant 48 : index
    %c0_92 = arith.constant 0 : index
    %118 = vector.load %arg24[%c48, %c0_92] : memref<128x128xf32, #tpu.memory_space<vmem>>, vector<16x128xf32>
    %119 = arith.mulf %118, %116 : vector<16x128xf32>
    %c48_93 = arith.constant 48 : index
    %c0_94 = arith.constant 0 : index
    %120 = vector.load %arg25[%c48_93, %c0_94] : memref<128x128xf32, #tpu.memory_space<vmem>>, vector<16x128xf32>
    %121 = arith.addf %119, %120 : vector<16x128xf32>
    %c48_95 = arith.constant 48 : index
    %c0_96 = arith.constant 0 : index
    %122 = vector.load %arg25[%c48_95, %c0_96] : memref<128x128xf32, #tpu.memory_space<vmem>>, vector<16x128xf32>
    tpu.vector_store %arg25[%c48_95, %c0_96], %121 {strides = array<i32>} : memref<128x128xf32, #tpu.memory_space<vmem>>, vector<16x128xf32>,
    %c64 = arith.constant 64 : index
    %c0_97 = arith.constant 0 : index
    %123 = vector.load %arg24[%c64, %c0_97] : memref<128x128xf32, #tpu.memory_space<vmem>>, vector<16x128xf32>
    %124 = arith.mulf %123, %121 : vector<16x128xf32>
    %c64_98 = arith.constant 64 : index
    %c0_99 = arith.constant 0 : index
    %125 = vector.load %arg25[%c64_98, %c0_99] : memref<128x128xf32, #tpu.memory_space<vmem>>, vector<16x128xf32>
    %126 = arith.addf %124, %125 : vector<16x128xf32>
    %c64_100 = arith.constant 64 : index
    %c0_101 = arith.constant 0 : index
    %127 = vector.load %arg25[%c64_100, %c0_101] : memref<128x128xf32, #tpu.memory_space<vmem>>, vector<16x128xf32>
    tpu.vector_store %arg25[%c64_100, %c0_101], %126 {strides = array<i32>} : memref<128x128xf32, #tpu.memory_space<vmem>>, vector<16x128xf32>,
    %c80 = arith.constant 80 : index
    %c0_102 = arith.constant 0 : index
    %128 = vector.load %arg24[%c80, %c0_102] : memref<128x128xf32, #tpu.memory_space<vmem>>, vector<16x128xf32>
    %129 = arith.mulf %128, %126 : vector<16x128xf32>
    %c80_103 = arith.constant 80 : index
    %c0_104 = arith.constant 0 : index
    %130 = vector.load %arg25[%c80_103, %c0_104] : memref<128x128xf32, #tpu.memory_space<vmem>>, vector<16x128xf32>
    %131 = arith.addf %129, %130 : vector<16x128xf32>
    %c80_105 = arith.constant 80 : index
    %c0_106 = arith.constant 0 : index
    %132 = vector.load %arg25[%c80_105, %c0_106] : memref<128x128xf32, #tpu.memory_space<vmem>>, vector<16x128xf32>
    tpu.vector_store %arg25[%c80_105, %c0_106], %131 {strides = array<i32>} : memref<128x128xf32, #tpu.memory_space<vmem>>, vector<16x128xf32>,
    %c96 = arith.constant 96 : index
    %c0_107 = arith.constant 0 : index
    %133 = vector.load %arg24[%c96, %c0_107] : memref<128x128xf32, #tpu.memory_space<vmem>>, vector<16x128xf32>
    %134 = arith.mulf %133, %131 : vector<16x128xf32>
    %c96_108 = arith.constant 96 : index
    %c0_109 = arith.constant 0 : index
    %135 = vector.load %arg25[%c96_108, %c0_109] : memref<128x128xf32, #tpu.memory_space<vmem>>, vector<16x128xf32>
    %136 = arith.addf %134, %135 : vector<16x128xf32>
    %c96_110 = arith.constant 96 : index
    %c0_111 = arith.constant 0 : index
    %137 = vector.load %arg25[%c96_110, %c0_111] : memref<128x128xf32, #tpu.memory_space<vmem>>, vector<16x128xf32>
    tpu.vector_store %arg25[%c96_110, %c0_111], %136 {strides = array<i32>} : memref<128x128xf32, #tpu.memory_space<vmem>>, vector<16x128xf32>,
    %c112 = arith.constant 112 : index
    %c0_112 = arith.constant 0 : index
    %138 = vector.load %arg24[%c112, %c0_112] : memref<128x128xf32, #tpu.memory_space<vmem>>, vector<16x128xf32>
    %139 = arith.mulf %138, %136 : vector<16x128xf32>
    %c112_113 = arith.constant 112 : index
    %c0_114 = arith.constant 0 : index
    %140 = vector.load %arg25[%c112_113, %c0_114] : memref<128x128xf32, #tpu.memory_space<vmem>>, vector<16x128xf32>
    %141 = arith.addf %139, %140 : vector<16x128xf32>
    %c112_115 = arith.constant 112 : index
    %c0_116 = arith.constant 0 : index
    %142 = vector.load %arg25[%c112_115, %c0_116] : memref<128x128xf32, #tpu.memory_space<vmem>>, vector<16x128xf32>
    tpu.vector_store %arg25[%c112_115, %c0_116], %141 {strides = array<i32>} : memref<128x128xf32, #tpu.memory_space<vmem>>, vector<16x128xf32>,
    %c0_117 = arith.constant 0 : index
    %c0_118 = arith.constant 0 : index
    %143 = vector.load %arg25[%c0_117, %c0_118] : memref<128x128xf32, #tpu.memory_space<vmem>>, vector<128x128xf32>
    %144 = arith.mulf %143, %106 : vector<128x128xf32>
    %cst_119 = arith.constant dense<0.000000e+00> : vector<8x128xf32>
    %145 = tpu.matmul %5, %144, %cst_119 {dimension_numbers = #tpu.dot_dimension_numbers<[1], [0], [0], [1], [0, 0, 1, 1], [], []>} : vector<8x128xf32>, vector<128x128xf32>, vector<8x128xf32> -> vector<8x128xf32>
    %c0_120 = arith.constant 0 : index
    %c0_121 = arith.constant 0 : index
    %c0_122 = arith.constant 0 : index
    %146 = vector.load %arg19[%c0_120, %c0_121, %c0_122] : memref<2x1x128xf32, #tpu.memory_space<vmem>>, vector<1x1x128xf32>
    %147 = vector.shape_cast %146 : vector<1x1x128xf32> to vector<1x128xf32>
    %148 = vector.broadcast %147 : vector<1x128xf32> to vector<8x128xf32>
    %149 = arith.mulf %70, %148 : vector<8x128xf32>
    %150 = arith.addf %145, %149 : vector<8x128xf32>
    %cst_123 = arith.constant 0.000000e+00 : f32
    %151 = vector.broadcast %cst_123 : f32 to vector<8x128xf32>
    %152 = arith.subf %151, %29 : vector<8x128xf32>
    %153 = math.exp %152 : vector<8x128xf32>
    %cst_124 = arith.constant 1.000000e+00 : f32
    %154 = vector.broadcast %cst_124 : f32 to vector<8x128xf32>
    %155 = arith.addf %154, %153 : vector<8x128xf32>
    %cst_125 = arith.constant 1.000000e+00 : f32
    %156 = vector.broadcast %cst_125 : f32 to vector<8x128xf32>
    %157 = arith.divf %156, %155 : vector<8x128xf32>
    %158 = arith.mulf %29, %157 : vector<8x128xf32>
    %159 = arith.mulf %150, %158 : vector<8x128xf32>
    %c0_126 = arith.constant 0 : index
    %c0_127 = arith.constant 0 : index
    %c0_128 = arith.constant 0 : index
    %160 = vector.load %arg20[%c0_126, %c0_127, %c0_128] : memref<2x128x64xf32, #tpu.memory_space<vmem>>, vector<1x128x64xf32>
    %161 = vector.shape_cast %160 : vector<1x128x64xf32> to vector<128x64xf32>
    %cst_129 = arith.constant dense<0.000000e+00> : vector<8x64xf32>
    %162 = tpu.matmul %159, %161, %cst_129 {dimension_numbers = #tpu.dot_dimension_numbers<[1], [0], [0], [1], [0, 0, 1, 1], [], []>} : vector<8x128xf32>, vector<128x64xf32>, vector<8x64xf32> -> vector<8x64xf32>
    %163 = arith.addf %162, %7 : vector<8x64xf32>
    %c1_130 = arith.constant 1 : index
    %c0_131 = arith.constant 0 : index
    %c0_132 = arith.constant 0 : index
    %164 = vector.load %arg8[%c1_130, %c0_131, %c0_132] : memref<2x1x64xf32, #tpu.memory_space<vmem>>, vector<1x1x64xf32>
    %165 = vector.shape_cast %164 : vector<1x1x64xf32> to vector<1x64xf32>
    %c1_133 = arith.constant 1 : index
    %c0_134 = arith.constant 0 : index
    %c0_135 = arith.constant 0 : index
    %166 = vector.load %arg9[%c1_133, %c0_134, %c0_135] : memref<2x1x64xf32, #tpu.memory_space<vmem>>, vector<1x1x64xf32>
    %167 = vector.shape_cast %166 : vector<1x1x64xf32> to vector<1x64xf32>
    %cst_136 = arith.constant dense<0.000000e+00> : vector<8x64xf32>
    %168 = tpu.matmul %163, %6, %cst_136 {dimension_numbers = #tpu.dot_dimension_numbers<[1], [0], [0], [1], [0, 0, 1, 1], [], []>} : vector<8x64xf32>, vector<64x64xf32>, vector<8x64xf32> -> vector<8x64xf32>
    %169 = arith.subf %163, %168 : vector<8x64xf32>
    %170 = arith.mulf %169, %169 : vector<8x64xf32>
    %cst_137 = arith.constant dense<0.000000e+00> : vector<8x64xf32>
    %171 = tpu.matmul %170, %6, %cst_137 {dimension_numbers = #tpu.dot_dimension_numbers<[1], [0], [0], [1], [0, 0, 1, 1], [], []>} : vector<8x64xf32>, vector<64x64xf32>, vector<8x64xf32> -> vector<8x64xf32>
    %cst_138 = arith.constant 9.99999974E-6 : f32
    %172 = vector.broadcast %cst_138 : f32 to vector<8x64xf32>
    %173 = arith.addf %171, %172 : vector<8x64xf32>
    %174 = math.rsqrt %173 : vector<8x64xf32>
    %175 = arith.mulf %169, %174 : vector<8x64xf32>
    %176 = vector.broadcast %165 : vector<1x64xf32> to vector<8x64xf32>
    %177 = arith.mulf %175, %176 : vector<8x64xf32>
    %178 = vector.broadcast %167 : vector<1x64xf32> to vector<8x64xf32>
    %179 = arith.addf %177, %178 : vector<8x64xf32>
    %c1_139 = arith.constant 1 : index
    %c0_140 = arith.constant 0 : index
    %c0_141 = arith.constant 0 : index
    %180 = vector.load %arg10[%c1_139, %c0_140, %c0_141] : memref<2x64x128xf32, #tpu.memory_space<vmem>>, vector<1x64x128xf32>
    %181 = vector.shape_cast %180 : vector<1x64x128xf32> to vector<64x128xf32>
    %cst_142 = arith.constant dense<0.000000e+00> : vector<8x128xf32>
    %182 = tpu.matmul %179, %181, %cst_142 {dimension_numbers = #tpu.dot_dimension_numbers<[1], [0], [0], [1], [0, 0, 1, 1], [], []>} : vector<8x64xf32>, vector<64x128xf32>, vector<8x128xf32> -> vector<8x128xf32>
    %c1_143 = arith.constant 1 : index
    %c0_144 = arith.constant 0 : index
    %c0_145 = arith.constant 0 : index
    %183 = vector.load %arg11[%c1_143, %c0_144, %c0_145] : memref<2x64x128xf32, #tpu.memory_space<vmem>>, vector<1x64x128xf32>
    %184 = vector.shape_cast %183 : vector<1x64x128xf32> to vector<64x128xf32>
    %cst_146 = arith.constant dense<0.000000e+00> : vector<8x128xf32>
    %185 = tpu.matmul %179, %184, %cst_146 {dimension_numbers = #tpu.dot_dimension_numbers<[1], [0], [0], [1], [0, 0, 1, 1], [], []>} : vector<8x64xf32>, vector<64x128xf32>, vector<8x128xf32> -> vector<8x128xf32>
    %c1_147 = arith.constant 1 : index
    %c0_148 = arith.constant 0 : index
    %c0_149 = arith.constant 0 : index
    %186 = vector.load %arg12[%c1_147, %c0_148, %c0_149] : memref<2x4x128xf32, #tpu.memory_space<vmem>>, vector<1x4x128xf32>
    %187 = vector.shape_cast %186 : vector<1x4x128xf32> to vector<4x128xf32>
    %c1_150 = arith.constant 1 : index
    %c0_151 = arith.constant 0 : index
    %c0_152 = arith.constant 0 : index
    %188 = vector.load %arg13[%c1_150, %c0_151, %c0_152] : memref<2x1x128xf32, #tpu.memory_space<vmem>>, vector<1x1x128xf32>
    %189 = vector.shape_cast %188 : vector<1x1x128xf32> to vector<1x128xf32>
    %c0_153 = arith.constant 0 : index
    %c0_154 = arith.constant 0 : index
    %c0_155 = arith.constant 0 : index
    %190 = vector.load %arg2[%c0_153, %c0_154, %c0_155] : memref<4x8x8xf32, #tpu.memory_space<vmem>>, vector<1x8x8xf32>
    %191 = vector.shape_cast %190 : vector<1x8x8xf32> to vector<8x8xf32>
    %cst_156 = arith.constant dense<0.000000e+00> : vector<8x128xf32>
    %192 = tpu.matmul %191, %182, %cst_156 {dimension_numbers = #tpu.dot_dimension_numbers<[1], [0], [0], [1], [0, 0, 1, 1], [], []>} : vector<8x8xf32>, vector<8x128xf32>, vector<8x128xf32> -> vector<8x128xf32>
    %193 = vector.extract_strided_slice %187 {offsets = [0, 0], sizes = [1, 128], strides = [1, 1]} : vector<4x128xf32> to vector<1x128xf32>
    %194 = vector.broadcast %193 : vector<1x128xf32> to vector<8x128xf32>
    %195 = arith.mulf %192, %194 : vector<8x128xf32>
    %196 = vector.broadcast %189 : vector<1x128xf32> to vector<8x128xf32>
    %197 = arith.addf %196, %195 : vector<8x128xf32>
    %c1_157 = arith.constant 1 : index
    %c0_158 = arith.constant 0 : index
    %c0_159 = arith.constant 0 : index
    %198 = vector.load %arg2[%c1_157, %c0_158, %c0_159] : memref<4x8x8xf32, #tpu.memory_space<vmem>>, vector<1x8x8xf32>
    %199 = vector.shape_cast %198 : vector<1x8x8xf32> to vector<8x8xf32>
    %cst_160 = arith.constant dense<0.000000e+00> : vector<8x128xf32>
    %200 = tpu.matmul %199, %182, %cst_160 {dimension_numbers = #tpu.dot_dimension_numbers<[1], [0], [0], [1], [0, 0, 1, 1], [], []>} : vector<8x8xf32>, vector<8x128xf32>, vector<8x128xf32> -> vector<8x128xf32>
    %201 = vector.extract_strided_slice %187 {offsets = [1, 0], sizes = [1, 128], strides = [1, 1]} : vector<4x128xf32> to vector<1x128xf32>
    %202 = vector.broadcast %201 : vector<1x128xf32> to vector<8x128xf32>
    %203 = arith.mulf %200, %202 : vector<8x128xf32>
    %204 = arith.addf %197, %203 : vector<8x128xf32>
    %c2_161 = arith.constant 2 : index
    %c0_162 = arith.constant 0 : index
    %c0_163 = arith.constant 0 : index
    %205 = vector.load %arg2[%c2_161, %c0_162, %c0_163] : memref<4x8x8xf32, #tpu.memory_space<vmem>>, vector<1x8x8xf32>
    %206 = vector.shape_cast %205 : vector<1x8x8xf32> to vector<8x8xf32>
    %cst_164 = arith.constant dense<0.000000e+00> : vector<8x128xf32>
    %207 = tpu.matmul %206, %182, %cst_164 {dimension_numbers = #tpu.dot_dimension_numbers<[1], [0], [0], [1], [0, 0, 1, 1], [], []>} : vector<8x8xf32>, vector<8x128xf32>, vector<8x128xf32> -> vector<8x128xf32>
    %208 = vector.extract_strided_slice %187 {offsets = [2, 0], sizes = [1, 128], strides = [1, 1]} : vector<4x128xf32> to vector<1x128xf32>
    %209 = vector.broadcast %208 : vector<1x128xf32> to vector<8x128xf32>
    %210 = arith.mulf %207, %209 : vector<8x128xf32>
    %211 = arith.addf %204, %210 : vector<8x128xf32>
    %c3_165 = arith.constant 3 : index
    %c0_166 = arith.constant 0 : index
    %c0_167 = arith.constant 0 : index
    %212 = vector.load %arg2[%c3_165, %c0_166, %c0_167] : memref<4x8x8xf32, #tpu.memory_space<vmem>>, vector<1x8x8xf32>
    %213 = vector.shape_cast %212 : vector<1x8x8xf32> to vector<8x8xf32>
    %cst_168 = arith.constant dense<0.000000e+00> : vector<8x128xf32>
    %214 = tpu.matmul %213, %182, %cst_168 {dimension_numbers = #tpu.dot_dimension_numbers<[1], [0], [0], [1], [0, 0, 1, 1], [], []>} : vector<8x8xf32>, vector<8x128xf32>, vector<8x128xf32> -> vector<8x128xf32>
    %215 = vector.extract_strided_slice %187 {offsets = [3, 0], sizes = [1, 128], strides = [1, 1]} : vector<4x128xf32> to vector<1x128xf32>
    %216 = vector.broadcast %215 : vector<1x128xf32> to vector<8x128xf32>
    %217 = arith.mulf %214, %216 : vector<8x128xf32>
    %218 = arith.addf %211, %217 : vector<8x128xf32>
    %cst_169 = arith.constant 0.000000e+00 : f32
    %219 = vector.broadcast %cst_169 : f32 to vector<8x128xf32>
    %220 = arith.subf %219, %218 : vector<8x128xf32>
    %221 = math.exp %220 : vector<8x128xf32>
    %cst_170 = arith.constant 1.000000e+00 : f32
    %222 = vector.broadcast %cst_170 : f32 to vector<8x128xf32>
    %223 = arith.addf %222, %221 : vector<8x128xf32>
    %cst_171 = arith.constant 1.000000e+00 : f32
    %224 = vector.broadcast %cst_171 : f32 to vector<8x128xf32>
    %225 = arith.divf %224, %223 : vector<8x128xf32>
    %226 = arith.mulf %218, %225 : vector<8x128xf32>
    %c1_172 = arith.constant 1 : index
    %c0_173 = arith.constant 0 : index
    %c0_174 = arith.constant 0 : index
    %227 = vector.load %arg14[%c1_172, %c0_173, %c0_174] : memref<2x128x128xf32, #tpu.memory_space<vmem>>, vector<1x128x128xf32>
    %228 = vector.shape_cast %227 : vector<1x128x128xf32> to vector<128x128xf32>
    %cst_175 = arith.constant dense<0.000000e+00> : vector<8x128xf32>
    %229 = tpu.matmul %226, %228, %cst_175 {dimension_numbers = #tpu.dot_dimension_numbers<[1], [0], [0], [1], [0, 0, 1, 1], [], []>} : vector<8x128xf32>, vector<128x128xf32>, vector<8x128xf32> -> vector<8x128xf32>
    %c1_176 = arith.constant 1 : index
    %c0_177 = arith.constant 0 : index
    %c0_178 = arith.constant 0 : index
    %230 = vector.load %arg15[%c1_176, %c0_177, %c0_178] : memref<2x1x128xf32, #tpu.memory_space<vmem>>, vector<1x1x128xf32>
    %231 = vector.shape_cast %230 : vector<1x1x128xf32> to vector<1x128xf32>
    %232 = vector.broadcast %231 : vector<1x128xf32> to vector<8x128xf32>
    %233 = arith.addf %229, %232 : vector<8x128xf32>
    %cst_179 = arith.constant 2.000000e+01 : f32
    %234 = vector.broadcast %cst_179 : f32 to vector<8x128xf32>
    %235 = arith.cmpf ogt, %233, %234 : vector<8x128xf32>
    %236 = math.exp %233 : vector<8x128xf32>
    %cst_180 = arith.constant 1.000000e+00 : f32
    %237 = vector.broadcast %cst_180 : f32 to vector<8x128xf32>
    %238 = arith.addf %237, %236 : vector<8x128xf32>
    %239 = math.log %238 : vector<8x128xf32>
    %240 = arith.select %235, %233, %239 : vector<8x128xi1>, vector<8x128xf32>
    %c1_181 = arith.constant 1 : index
    %c0_182 = arith.constant 0 : index
    %c0_183 = arith.constant 0 : index
    %241 = vector.load %arg16[%c1_181, %c0_182, %c0_183] : memref<2x128x32xf32, #tpu.memory_space<vmem>>, vector<1x128x32xf32>
    %242 = vector.shape_cast %241 : vector<1x128x32xf32> to vector<128x32xf32>
    %cst_184 = arith.constant dense<0.000000e+00> : vector<8x32xf32>
    %243 = tpu.matmul %226, %242, %cst_184 {dimension_numbers = #tpu.dot_dimension_numbers<[1], [0], [0], [1], [0, 0, 1, 1], [], []>} : vector<8x128xf32>, vector<128x32xf32>, vector<8x32xf32> -> vector<8x32xf32>
    %c1_185 = arith.constant 1 : index
    %c0_186 = arith.constant 0 : index
    %c0_187 = arith.constant 0 : index
    %244 = vector.load %arg17[%c1_185, %c0_186, %c0_187] : memref<2x128x32xf32, #tpu.memory_space<vmem>>, vector<1x128x32xf32>
    %245 = vector.shape_cast %244 : vector<1x128x32xf32> to vector<128x32xf32>
    %cst_188 = arith.constant dense<0.000000e+00> : vector<8x32xf32>
    %246 = tpu.matmul %226, %245, %cst_188 {dimension_numbers = #tpu.dot_dimension_numbers<[1], [0], [0], [1], [0, 0, 1, 1], [], []>} : vector<8x128xf32>, vector<128x32xf32>, vector<8x32xf32> -> vector<8x32xf32>
    %cst_189 = arith.constant dense<0.000000e+00> : vector<128x128xf32>
    %247 = tpu.matmul %2, %240, %cst_189 {dimension_numbers = #tpu.dot_dimension_numbers<[1], [0], [0], [1], [0, 0, 1, 1], [], []>} : vector<128x8xf32>, vector<8x128xf32>, vector<128x128xf32> -> vector<128x128xf32>
    %c1_190 = arith.constant 1 : index
    %c0_191 = arith.constant 0 : index
    %c0_192 = arith.constant 0 : index
    %248 = vector.load %arg18[%c1_190, %c0_191, %c0_192] : memref<2x128x128xf32, #tpu.memory_space<vmem>>, vector<1x128x128xf32>
    %249 = vector.shape_cast %248 : vector<1x128x128xf32> to vector<128x128xf32>
    %250 = arith.mulf %247, %249 : vector<128x128xf32>
    %251 = math.exp %250 : vector<128x128xf32>
    %c0_193 = arith.constant 0 : index
    %c0_194 = arith.constant 0 : index
    %252 = vector.load %arg24[%c0_193, %c0_194] : memref<128x128xf32, #tpu.memory_space<vmem>>, vector<128x128xf32>
    tpu.vector_store %arg24[%c0_193, %c0_194], %251 {strides = array<i32>} : memref<128x128xf32, #tpu.memory_space<vmem>>, vector<128x128xf32>,
    %253 = arith.mulf %240, %226 : vector<8x128xf32>
    %cst_195 = arith.constant dense<0.000000e+00> : vector<128x128xf32>
    %254 = tpu.matmul %2, %253, %cst_195 {dimension_numbers = #tpu.dot_dimension_numbers<[1], [0], [0], [1], [0, 0, 1, 1], [], []>} : vector<128x8xf32>, vector<8x128xf32>, vector<128x128xf32> -> vector<128x128xf32>
    %cst_196 = arith.constant dense<0.000000e+00> : vector<128x32xf32>
    %255 = tpu.matmul %2, %243, %cst_196 {dimension_numbers = #tpu.dot_dimension_numbers<[1], [0], [0], [1], [0, 0, 1, 1], [], []>} : vector<128x8xf32>, vector<8x32xf32>, vector<128x32xf32> -> vector<128x32xf32>
    %256 = arith.mulf %255, %3 : vector<128x32xf32>
    %cst_197 = arith.constant dense<0.000000e+00> : vector<128x128xf32>
    %257 = tpu.matmul %256, %4, %cst_197 {dimension_numbers = #tpu.dot_dimension_numbers<[1], [0], [0], [1], [0, 0, 1, 1], [], []>} : vector<128x32xf32>, vector<32x128xf32>, vector<128x128xf32> -> vector<128x128xf32>
    %258 = arith.mulf %254, %257 : vector<128x128xf32>
    %c0_198 = arith.constant 0 : index
    %c0_199 = arith.constant 0 : index
    %259 = vector.load %arg25[%c0_198, %c0_199] : memref<128x128xf32, #tpu.memory_space<vmem>>, vector<128x128xf32>
    tpu.vector_store %arg25[%c0_198, %c0_199], %258 {strides = array<i32>} : memref<128x128xf32, #tpu.memory_space<vmem>>, vector<128x128xf32>,
    %cst_200 = arith.constant dense<0.000000e+00> : vector<128x32xf32>
    %260 = tpu.matmul %2, %246, %cst_200 {dimension_numbers = #tpu.dot_dimension_numbers<[1], [0], [0], [1], [0, 0, 1, 1], [], []>} : vector<128x8xf32>, vector<8x32xf32>, vector<128x32xf32> -> vector<128x32xf32>
    %261 = arith.mulf %260, %3 : vector<128x32xf32>
    %cst_201 = arith.constant dense<0.000000e+00> : vector<128x128xf32>
    %262 = tpu.matmul %261, %4, %cst_201 {dimension_numbers = #tpu.dot_dimension_numbers<[1], [0], [0], [1], [0, 0, 1, 1], [], []>} : vector<128x32xf32>, vector<32x128xf32>, vector<128x128xf32> -> vector<128x128xf32>
    %c0_202 = arith.constant 0 : index
    %c0_203 = arith.constant 0 : index
    %263 = vector.load %arg25[%c0_202, %c0_203] : memref<128x128xf32, #tpu.memory_space<vmem>>, vector<16x128xf32>
    %c16_204 = arith.constant 16 : index
    %c0_205 = arith.constant 0 : index
    %264 = vector.load %arg24[%c16_204, %c0_205] : memref<128x128xf32, #tpu.memory_space<vmem>>, vector<16x128xf32>
    %265 = arith.mulf %264, %263 : vector<16x128xf32>
    %c16_206 = arith.constant 16 : index
    %c0_207 = arith.constant 0 : index
    %266 = vector.load %arg25[%c16_206, %c0_207] : memref<128x128xf32, #tpu.memory_space<vmem>>, vector<16x128xf32>
    %267 = arith.addf %265, %266 : vector<16x128xf32>
    %c16_208 = arith.constant 16 : index
    %c0_209 = arith.constant 0 : index
    %268 = vector.load %arg25[%c16_208, %c0_209] : memref<128x128xf32, #tpu.memory_space<vmem>>, vector<16x128xf32>
    tpu.vector_store %arg25[%c16_208, %c0_209], %267 {strides = array<i32>} : memref<128x128xf32, #tpu.memory_space<vmem>>, vector<16x128xf32>,
    %c32_210 = arith.constant 32 : index
    %c0_211 = arith.constant 0 : index
    %269 = vector.load %arg24[%c32_210, %c0_211] : memref<128x128xf32, #tpu.memory_space<vmem>>, vector<16x128xf32>
    %270 = arith.mulf %269, %267 : vector<16x128xf32>
    %c32_212 = arith.constant 32 : index
    %c0_213 = arith.constant 0 : index
    %271 = vector.load %arg25[%c32_212, %c0_213] : memref<128x128xf32, #tpu.memory_space<vmem>>, vector<16x128xf32>
    %272 = arith.addf %270, %271 : vector<16x128xf32>
    %c32_214 = arith.constant 32 : index
    %c0_215 = arith.constant 0 : index
    %273 = vector.load %arg25[%c32_214, %c0_215] : memref<128x128xf32, #tpu.memory_space<vmem>>, vector<16x128xf32>
    tpu.vector_store %arg25[%c32_214, %c0_215], %272 {strides = array<i32>} : memref<128x128xf32, #tpu.memory_space<vmem>>, vector<16x128xf32>,
    %c48_216 = arith.constant 48 : index
    %c0_217 = arith.constant 0 : index
    %274 = vector.load %arg24[%c48_216, %c0_217] : memref<128x128xf32, #tpu.memory_space<vmem>>, vector<16x128xf32>
    %275 = arith.mulf %274, %272 : vector<16x128xf32>
    %c48_218 = arith.constant 48 : index
    %c0_219 = arith.constant 0 : index
    %276 = vector.load %arg25[%c48_218, %c0_219] : memref<128x128xf32, #tpu.memory_space<vmem>>, vector<16x128xf32>
    %277 = arith.addf %275, %276 : vector<16x128xf32>
    %c48_220 = arith.constant 48 : index
    %c0_221 = arith.constant 0 : index
    %278 = vector.load %arg25[%c48_220, %c0_221] : memref<128x128xf32, #tpu.memory_space<vmem>>, vector<16x128xf32>
    tpu.vector_store %arg25[%c48_220, %c0_221], %277 {strides = array<i32>} : memref<128x128xf32, #tpu.memory_space<vmem>>, vector<16x128xf32>,
    %c64_222 = arith.constant 64 : index
    %c0_223 = arith.constant 0 : index
    %279 = vector.load %arg24[%c64_222, %c0_223] : memref<128x128xf32, #tpu.memory_space<vmem>>, vector<16x128xf32>
    %280 = arith.mulf %279, %277 : vector<16x128xf32>
    %c64_224 = arith.constant 64 : index
    %c0_225 = arith.constant 0 : index
    %281 = vector.load %arg25[%c64_224, %c0_225] : memref<128x128xf32, #tpu.memory_space<vmem>>, vector<16x128xf32>
    %282 = arith.addf %280, %281 : vector<16x128xf32>
    %c64_226 = arith.constant 64 : index
    %c0_227 = arith.constant 0 : index
    %283 = vector.load %arg25[%c64_226, %c0_227] : memref<128x128xf32, #tpu.memory_space<vmem>>, vector<16x128xf32>
    tpu.vector_store %arg25[%c64_226, %c0_227], %282 {strides = array<i32>} : memref<128x128xf32, #tpu.memory_space<vmem>>, vector<16x128xf32>,
    %c80_228 = arith.constant 80 : index
    %c0_229 = arith.constant 0 : index
    %284 = vector.load %arg24[%c80_228, %c0_229] : memref<128x128xf32, #tpu.memory_space<vmem>>, vector<16x128xf32>
    %285 = arith.mulf %284, %282 : vector<16x128xf32>
    %c80_230 = arith.constant 80 : index
    %c0_231 = arith.constant 0 : index
    %286 = vector.load %arg25[%c80_230, %c0_231] : memref<128x128xf32, #tpu.memory_space<vmem>>, vector<16x128xf32>
    %287 = arith.addf %285, %286 : vector<16x128xf32>
    %c80_232 = arith.constant 80 : index
    %c0_233 = arith.constant 0 : index
    %288 = vector.load %arg25[%c80_232, %c0_233] : memref<128x128xf32, #tpu.memory_space<vmem>>, vector<16x128xf32>
    tpu.vector_store %arg25[%c80_232, %c0_233], %287 {strides = array<i32>} : memref<128x128xf32, #tpu.memory_space<vmem>>, vector<16x128xf32>,
    %c96_234 = arith.constant 96 : index
    %c0_235 = arith.constant 0 : index
    %289 = vector.load %arg24[%c96_234, %c0_235] : memref<128x128xf32, #tpu.memory_space<vmem>>, vector<16x128xf32>
    %290 = arith.mulf %289, %287 : vector<16x128xf32>
    %c96_236 = arith.constant 96 : index
    %c0_237 = arith.constant 0 : index
    %291 = vector.load %arg25[%c96_236, %c0_237] : memref<128x128xf32, #tpu.memory_space<vmem>>, vector<16x128xf32>
    %292 = arith.addf %290, %291 : vector<16x128xf32>
    %c96_238 = arith.constant 96 : index
    %c0_239 = arith.constant 0 : index
    %293 = vector.load %arg25[%c96_238, %c0_239] : memref<128x128xf32, #tpu.memory_space<vmem>>, vector<16x128xf32>
    tpu.vector_store %arg25[%c96_238, %c0_239], %292 {strides = array<i32>} : memref<128x128xf32, #tpu.memory_space<vmem>>, vector<16x128xf32>,
    %c112_240 = arith.constant 112 : index
    %c0_241 = arith.constant 0 : index
    %294 = vector.load %arg24[%c112_240, %c0_241] : memref<128x128xf32, #tpu.memory_space<vmem>>, vector<16x128xf32>
    %295 = arith.mulf %294, %292 : vector<16x128xf32>
    %c112_242 = arith.constant 112 : index
    %c0_243 = arith.constant 0 : index
    %296 = vector.load %arg25[%c112_242, %c0_243] : memref<128x128xf32, #tpu.memory_space<vmem>>, vector<16x128xf32>
    %297 = arith.addf %295, %296 : vector<16x128xf32>
    %c112_244 = arith.constant 112 : index
    %c0_245 = arith.constant 0 : index
    %298 = vector.load %arg25[%c112_244, %c0_245] : memref<128x128xf32, #tpu.memory_space<vmem>>, vector<16x128xf32>
    tpu.vector_store %arg25[%c112_244, %c0_245], %297 {strides = array<i32>} : memref<128x128xf32, #tpu.memory_space<vmem>>, vector<16x128xf32>,
    %c0_246 = arith.constant 0 : index
    %c0_247 = arith.constant 0 : index
    %299 = vector.load %arg25[%c0_246, %c0_247] : memref<128x128xf32, #tpu.memory_space<vmem>>, vector<128x128xf32>
    %300 = arith.mulf %299, %262 : vector<128x128xf32>
    %cst_248 = arith.constant dense<0.000000e+00> : vector<8x128xf32>
    %301 = tpu.matmul %5, %300, %cst_248 {dimension_numbers = #tpu.dot_dimension_numbers<[1], [0], [0], [1], [0, 0, 1, 1], [], []>} : vector<8x128xf32>, vector<128x128xf32>, vector<8x128xf32> -> vector<8x128xf32>
    %c1_249 = arith.constant 1 : index
    %c0_250 = arith.constant 0 : index
    %c0_251 = arith.constant 0 : index
    %302 = vector.load %arg19[%c1_249, %c0_250, %c0_251] : memref<2x1x128xf32, #tpu.memory_space<vmem>>, vector<1x1x128xf32>
    %303 = vector.shape_cast %302 : vector<1x1x128xf32> to vector<1x128xf32>
    %304 = vector.broadcast %303 : vector<1x128xf32> to vector<8x128xf32>
    %305 = arith.mulf %226, %304 : vector<8x128xf32>
    %306 = arith.addf %301, %305 : vector<8x128xf32>
    %cst_252 = arith.constant 0.000000e+00 : f32
    %307 = vector.broadcast %cst_252 : f32 to vector<8x128xf32>
    %308 = arith.subf %307, %185 : vector<8x128xf32>
    %309 = math.exp %308 : vector<8x128xf32>
    %cst_253 = arith.constant 1.000000e+00 : f32
    %310 = vector.broadcast %cst_253 : f32 to vector<8x128xf32>
    %311 = arith.addf %310, %309 : vector<8x128xf32>
    %cst_254 = arith.constant 1.000000e+00 : f32
    %312 = vector.broadcast %cst_254 : f32 to vector<8x128xf32>
    %313 = arith.divf %312, %311 : vector<8x128xf32>
    %314 = arith.mulf %185, %313 : vector<8x128xf32>
    %315 = arith.mulf %306, %314 : vector<8x128xf32>
    %c1_255 = arith.constant 1 : index
    %c0_256 = arith.constant 0 : index
    %c0_257 = arith.constant 0 : index
    %316 = vector.load %arg20[%c1_255, %c0_256, %c0_257] : memref<2x128x64xf32, #tpu.memory_space<vmem>>, vector<1x128x64xf32>
    %317 = vector.shape_cast %316 : vector<1x128x64xf32> to vector<128x64xf32>
    %cst_258 = arith.constant dense<0.000000e+00> : vector<8x64xf32>
    %318 = tpu.matmul %315, %317, %cst_258 {dimension_numbers = #tpu.dot_dimension_numbers<[1], [0], [0], [1], [0, 0, 1, 1], [], []>} : vector<8x128xf32>, vector<128x64xf32>, vector<8x64xf32> -> vector<8x64xf32>
    %319 = arith.addf %318, %163 : vector<8x64xf32>
    %c0_259 = arith.constant 0 : index
    %c0_260 = arith.constant 0 : index
    %320 = vector.load %arg21[%c0_259, %c0_260] : memref<1x64xf32, #tpu.memory_space<vmem>>, vector<1x64xf32>
    %c0_261 = arith.constant 0 : index
    %c0_262 = arith.constant 0 : index
    %321 = vector.load %arg22[%c0_261, %c0_262] : memref<1x64xf32, #tpu.memory_space<vmem>>, vector<1x64xf32>
    %cst_263 = arith.constant dense<0.000000e+00> : vector<8x64xf32>
    %322 = tpu.matmul %319, %6, %cst_263 {dimension_numbers = #tpu.dot_dimension_numbers<[1], [0], [0], [1], [0, 0, 1, 1], [], []>} : vector<8x64xf32>, vector<64x64xf32>, vector<8x64xf32> -> vector<8x64xf32>
    %323 = arith.subf %319, %322 : vector<8x64xf32>
    %324 = arith.mulf %323, %323 : vector<8x64xf32>
    %cst_264 = arith.constant dense<0.000000e+00> : vector<8x64xf32>
    %325 = tpu.matmul %324, %6, %cst_264 {dimension_numbers = #tpu.dot_dimension_numbers<[1], [0], [0], [1], [0, 0, 1, 1], [], []>} : vector<8x64xf32>, vector<64x64xf32>, vector<8x64xf32> -> vector<8x64xf32>
    %cst_265 = arith.constant 9.99999974E-6 : f32
    %326 = vector.broadcast %cst_265 : f32 to vector<8x64xf32>
    %327 = arith.addf %325, %326 : vector<8x64xf32>
    %328 = math.rsqrt %327 : vector<8x64xf32>
    %329 = arith.mulf %323, %328 : vector<8x64xf32>
    %330 = vector.broadcast %320 : vector<1x64xf32> to vector<8x64xf32>
    %331 = arith.mulf %329, %330 : vector<8x64xf32>
    %332 = vector.broadcast %321 : vector<1x64xf32> to vector<8x64xf32>
    %333 = arith.addf %331, %332 : vector<8x64xf32>
    %c0_266 = arith.constant 0 : index
    %c0_267 = arith.constant 0 : index
    %334 = vector.load %arg23[%c0_266, %c0_267] : memref<8x64xf32, #tpu.memory_space<vmem>>, vector<8x64xf32>
    tpu.vector_store %arg23[%c0_266, %c0_267], %333 {strides = array<i32>} : memref<8x64xf32, #tpu.memory_space<vmem>>, vector<8x64xf32>,
    return
  }
  func.func @transform_0(%arg0: i32) -> (i32, i32) {
    %c0_i32 = arith.constant 0 : i32
    %c0_i32_0 = arith.constant 0 : i32
    %c0_i32_1 = arith.constant 0 : i32
    return %c0_i32, %c0_i32_0 : i32, i32
  }
  func.func @transform_1(%arg0: i32) -> (i32, i32, i32) {
    %c0_i32 = arith.constant 0 : i32
    %c0_i32_0 = arith.constant 0 : i32
    %c0_i32_1 = arith.constant 0 : i32
    %c0_i32_2 = arith.constant 0 : i32
    return %c0_i32, %c0_i32_0, %c0_i32_1 : i32, i32, i32
  }
  func.func @transform_2(%arg0: i32) -> (i32, i32) {
    %c0_i32 = arith.constant 0 : i32
    %c0_i32_0 = arith.constant 0 : i32
    %c0_i32_1 = arith.constant 0 : i32
    return %c0_i32, %c0_i32_0 : i32, i32
  }
  func.func @transform_3(%arg0: i32) -> (i32, i32) {
    %c0_i32 = arith.constant 0 : i32
    %c0_i32_0 = arith.constant 0 : i32
    %c0_i32_1 = arith.constant 0 : i32
    return %c0_i32, %c0_i32_0 : i32, i32
  }
  func.func @transform_4(%arg0: i32) -> (i32, i32) {
    %c0_i32 = arith.constant 0 : i32
    %c0_i32_0 = arith.constant 0 : i32
    %c0_i32_1 = arith.constant 0 : i32
    return %c0_i32, %c0_i32_0 : i32, i32
  }
  func.func @transform_5(%arg0: i32) -> (i32, i32) {
    %c0_i32 = arith.constant 0 : i32
    %c0_i32_0 = arith.constant 0 : i32
    %c0_i32_1 = arith.constant 0 : i32
    return %c0_i32, %c0_i32_0 : i32, i32
  }
  func.func @transform_6(%arg0: i32) -> (i32, i32) {
    %c0_i32 = arith.constant 0 : i32
    %c0_i32_0 = arith.constant 0 : i32
    %c0_i32_1 = arith.constant 0 : i32
    return %c0_i32, %c0_i32_0 : i32, i32
  }
  func.func @transform_7(%arg0: i32) -> (i32, i32, i32) {
    %c0_i32 = arith.constant 0 : i32
    %c0_i32_0 = arith.constant 0 : i32
    %c0_i32_1 = arith.constant 0 : i32
    %c0_i32_2 = arith.constant 0 : i32
    return %c0_i32, %c0_i32_0, %c0_i32_1 : i32, i32, i32
  }
  func.func @transform_8(%arg0: i32) -> (i32, i32, i32) {
    %c0_i32 = arith.constant 0 : i32
    %c0_i32_0 = arith.constant 0 : i32
    %c0_i32_1 = arith.constant 0 : i32
    %c0_i32_2 = arith.constant 0 : i32
    return %c0_i32, %c0_i32_0, %c0_i32_1 : i32, i32, i32
  }
  func.func @transform_9(%arg0: i32) -> (i32, i32, i32) {
    %c0_i32 = arith.constant 0 : i32
    %c0_i32_0 = arith.constant 0 : i32
    %c0_i32_1 = arith.constant 0 : i32
    %c0_i32_2 = arith.constant 0 : i32
    return %c0_i32, %c0_i32_0, %c0_i32_1 : i32, i32, i32
  }
  func.func @transform_10(%arg0: i32) -> (i32, i32, i32) {
    %c0_i32 = arith.constant 0 : i32
    %c0_i32_0 = arith.constant 0 : i32
    %c0_i32_1 = arith.constant 0 : i32
    %c0_i32_2 = arith.constant 0 : i32
    return %c0_i32, %c0_i32_0, %c0_i32_1 : i32, i32, i32
  }
  func.func @transform_11(%arg0: i32) -> (i32, i32, i32) {
    %c0_i32 = arith.constant 0 : i32
    %c0_i32_0 = arith.constant 0 : i32
    %c0_i32_1 = arith.constant 0 : i32
    %c0_i32_2 = arith.constant 0 : i32
    return %c0_i32, %c0_i32_0, %c0_i32_1 : i32, i32, i32
  }
  func.func @transform_12(%arg0: i32) -> (i32, i32, i32) {
    %c0_i32 = arith.constant 0 : i32
    %c0_i32_0 = arith.constant 0 : i32
    %c0_i32_1 = arith.constant 0 : i32
    %c0_i32_2 = arith.constant 0 : i32
    return %c0_i32, %c0_i32_0, %c0_i32_1 : i32, i32, i32
  }
  func.func @transform_13(%arg0: i32) -> (i32, i32, i32) {
    %c0_i32 = arith.constant 0 : i32
    %c0_i32_0 = arith.constant 0 : i32
    %c0_i32_1 = arith.constant 0 : i32
    %c0_i32_2 = arith.constant 0 : i32
    return %c0_i32, %c0_i32_0, %c0_i32_1 : i32, i32, i32
  }
  func.func @transform_14(%arg0: i32) -> (i32, i32, i32) {
    %c0_i32 = arith.constant 0 : i32
    %c0_i32_0 = arith.constant 0 : i32
    %c0_i32_1 = arith.constant 0 : i32
    %c0_i32_2 = arith.constant 0 : i32
    return %c0_i32, %c0_i32_0, %c0_i32_1 : i32, i32, i32
  }
  func.func @transform_15(%arg0: i32) -> (i32, i32, i32) {
    %c0_i32 = arith.constant 0 : i32
    %c0_i32_0 = arith.constant 0 : i32
    %c0_i32_1 = arith.constant 0 : i32
    %c0_i32_2 = arith.constant 0 : i32
    return %c0_i32, %c0_i32_0, %c0_i32_1 : i32, i32, i32
  }
  func.func @transform_16(%arg0: i32) -> (i32, i32, i32) {
    %c0_i32 = arith.constant 0 : i32
    %c0_i32_0 = arith.constant 0 : i32
    %c0_i32_1 = arith.constant 0 : i32
    %c0_i32_2 = arith.constant 0 : i32
    return %c0_i32, %c0_i32_0, %c0_i32_1 : i32, i32, i32
  }
  func.func @transform_17(%arg0: i32) -> (i32, i32, i32) {
    %c0_i32 = arith.constant 0 : i32
    %c0_i32_0 = arith.constant 0 : i32
    %c0_i32_1 = arith.constant 0 : i32
    %c0_i32_2 = arith.constant 0 : i32
    return %c0_i32, %c0_i32_0, %c0_i32_1 : i32, i32, i32
  }
  func.func @transform_18(%arg0: i32) -> (i32, i32, i32) {
    %c0_i32 = arith.constant 0 : i32
    %c0_i32_0 = arith.constant 0 : i32
    %c0_i32_1 = arith.constant 0 : i32
    %c0_i32_2 = arith.constant 0 : i32
    return %c0_i32, %c0_i32_0, %c0_i32_1 : i32, i32, i32
  }
  func.func @transform_19(%arg0: i32) -> (i32, i32, i32) {
    %c0_i32 = arith.constant 0 : i32
    %c0_i32_0 = arith.constant 0 : i32
    %c0_i32_1 = arith.constant 0 : i32
    %c0_i32_2 = arith.constant 0 : i32
    return %c0_i32, %c0_i32_0, %c0_i32_1 : i32, i32, i32
  }
  func.func @transform_20(%arg0: i32) -> (i32, i32) {
    %c0_i32 = arith.constant 0 : i32
    %c0_i32_0 = arith.constant 0 : i32
    %c0_i32_1 = arith.constant 0 : i32
    return %c0_i32, %c0_i32_0 : i32, i32
  }
  func.func @transform_21(%arg0: i32) -> (i32, i32) {
    %c0_i32 = arith.constant 0 : i32
    %c0_i32_0 = arith.constant 0 : i32
    %c0_i32_1 = arith.constant 0 : i32
    return %c0_i32, %c0_i32_0 : i32, i32
  }
  func.func @transform_22(%arg0: i32) -> (i32, i32) {
    %c0_i32 = arith.constant 0 : i32
    %c0_i32_0 = arith.constant 0 : i32
    %c0_i32_1 = arith.constant 0 : i32
    return %c0_i32, %c0_i32_0 : i32, i32
  }
}

</mosaic_0001>

<bundles_post_ra>
// kernel: mixer_model_forward.1
= control target key start
LH: loop header
LB: loop body
LE: loop exit
PB: predicated region body
PF: predicated region fallthrough
CT: control target
= control target key end

     0   :  { %v9116_v0 = vmov 0.0|0.0   ;;  %vm7248_vm0 = vmmov 0   ;;  %v9118_v4 = vmov 0.0   ;;  %vm120_vm1 = vcmask 523264   ;;  %s9082_s6 = inlined_call_operand.vmem [shape: f32[64,64], index: 6, kind: input, shape index: {}]   ;;  %s9083_s0 = inlined_call_operand.vmem [shape: f32[8,64], index: 0, kind: input, shape index: {}]   ;;  %s9084_s9 = inlined_call_operand.vmem [shape: f32[2,64,128], index: 9, kind: input, shape index: {}]   ;;  %s9085_s10 = inlined_call_operand.vmem [shape: f32[2,64,128], index: 10, kind: input, shape index: {}]   ;;  %s9086_s7 = inlined_call_operand.vmem [shape: f32[2,1,64], index: 7, kind: input, shape index: {}]   ;;  %s9087_s8 = inlined_call_operand.vmem [shape: f32[2,1,64], index: 8, kind: input, shape index: {}]   ;;  %s9088_s1 = inlined_call_operand.vmem [shape: f32[4,8,8], index: 1, kind: input, shape index: {}]   ;;  %s9089_s13 = inlined_call_operand.vmem [shape: f32[2,128,128], index: 13, kind: input, shape index: {}]   ;;  %s9090_s15 = inlined_call_operand.vmem [shape: f32[2,128,32], index: 15, kind: input, shape index: {}]   ;;  %s9091_s11 = inlined_call_operand.vmem [shape: f32[2,4,128], index: 11, kind: input, shape index: {}]   ;;  %s9092_s12 = inlined_call_operand.vmem [shape: f32[2,1,128], index: 12, kind: input, shape index: {}]   ;;  %s9093_s16 = inlined_call_operand.vmem [shape: f32[2,128,32], index: 16, kind: input, shape index: {}]   ;;  %s9094_s2 = inlined_call_operand.vmem [shape: f32[128,8], index: 2, kind: input, shape index: {}]   ;;  %s9095_s14 = inlined_call_operand.vmem [shape: f32[2,1,128], index: 14, kind: input, shape index: {}]   ;;  %s9096_s4 = inlined_call_operand.vmem [shape: f32[32,128], index: 4, kind: input, shape index: {}]   ;;  %s9097_s3 = inlined_call_operand.vmem [shape: f32[128,32], index: 3, kind: input, shape index: {}]   ;;  %s9098_s19 = inlined_call_operand.vmem [shape: f32[2,128,64], index: 19, kind: input, shape index: {}]   ;;  %s9099_s17 = inlined_call_operand.vmem [shape: f32[2,128,128], index: 17, kind: input, shape index: {}]   ;;  %s9100_s5 = inlined_call_operand.vmem [shape: f32[8,128], index: 5, kind: input, shape index: {}]   ;;  %s9101_s18 = inlined_call_operand.vmem [shape: f32[2,1,128], index: 18, kind: input, shape index: {}]   ;;  %s9102_s20 = inlined_call_operand.vmem [shape: f32[1,64], index: 20, kind: input, shape index: {}]   ;;  %s9103_s21 = inlined_call_operand.vmem [shape: f32[1,64], index: 21, kind: input, shape index: {}]   ;;  %s9104_s22 = inlined_call_operand.vmem [shape: f32[8,64], index: 22, kind: output, shape index: {}]  }
   0x1   :  { %9128 = sst [smem:[#allocation8_spill]] %s9082_s6  ;;  %6732 = vmatprep.subr.bf16.mxu0 %v9116_v0  ;;  %5832 = vmatprep.mubr.msk.f32.mxu0 %vm7248_vm0, %v9118_v4  ;;  %vm447_vm2 = vcmask 64512   ;;  %v783_v60 = vld [vmem:[%s9089_s13] sm:$0xff]  ;;  %v784_v61 = vld [vmem:[%s9089_s13 + $0x8] sm:$0xff]  ;;  %vm1635_vm4 = vcmask 261120  }
   0x2   :  { %9129 = sst [smem:[#allocation9_spill]] %s9083_s0  ;;  %s9135_s29 = sld [smem:[#allocation8_spill]]  ;;  %6744 = vmatprep.subr.bf16.mxu1 %v9116_v0  ;;  %5851 = vmatprep.mubr.msk.f32.mxu1 %vm7248_vm0, %v9118_v4  ;;  %v6781_v62 = vpack.c.bf16 %v784_v61, %v783_v60  ;;  %v883_v63 = vld [vmem:[%s9090_s15] sm:$0xff] }
   0x3   :  { %9130 = sst [smem:[#allocation10_spill]] %s9084_s9  ;;  %s9136_s6 = sld [smem:[#allocation9_spill]]  ;;  %v5001_v60 = vld [vmem:[%s9092_s12] ss:$0 sm:$0xff] }
   0x4   :  { %9131 = sst [smem:[#allocation11_spill]] %s9085_s10  ;;  %s9137_s0 = sld [smem:[#allocation10_spill]] }
   0x5   :  { %9132 = sst [smem:[#allocation12_spill]] %s9086_s7  ;;  %s9138_s26 = sld [smem:[#allocation11_spill]] }
   0x6   :  { %9133 = sst [smem:[#allocation13_spill]] %s9087_s8  ;;  %s9139_s30 = sld [smem:[#allocation12_spill]] }
   0x7   :  { %9134 = sst [smem:[#allocation14_spill]] %s9088_s1  ;;  %s9140_s23 = sld [smem:[#allocation13_spill]] }
   0x8   :  { %v109_v1 = vld [vmem:[%s9135_s29] sm:$0xff]  ;;  %v110_v2 = vld [vmem:[%s9135_s29 + $0x8] sm:$0xff]  ;;  %v111_v3 = vld [vmem:[%s9135_s29 + $0x10] sm:$0xff]  ;;  %s9141_s1 = sld [smem:[#allocation14_spill]] }
   0x9   :  { %v7377_v5 = vpack.c.bf16 %v110_v2, %v109_v1  ;;  %v112_v6 = vld [vmem:[%s9135_s29 + $0x18] sm:$0xff]  ;;  %v113_v8 = vld [vmem:[%s9135_s29 + $0x20] sm:$0xff]  ;;  %v114_v9 = vld [vmem:[%s9135_s29 + $0x28] sm:$0xff] }
   0xa   :  { %v7386_v7 = vpack.c.bf16 %v112_v6, %v111_v3  ;;  %v7398_v10 = vpack.c.bf16 %v114_v9, %v113_v8  ;;  %v115_v11 = vld [vmem:[%s9135_s29 + $0x30] sm:$0xff]  ;;  %v116_v12 = vld [vmem:[%s9135_s29 + $0x38] sm:$0xff]  ;;  %v71_v14 = vld [vmem:[%s9136_s6] sm:$0xff] }
   0xb   :  { %6734 = vmatpush3.bf16.msra.mxu0 %v7377_v5  ;;  %6746 = vmatpush3.bf16.msra.mxu1 %v7377_v5  ;;  %v7410_v13 = vpack.c.bf16 %v116_v12, %v115_v11  ;;  %v285_v19 = vld [vmem:[%s9137_s0] sm:$0xff]  ;;  %v286_v20 = vld [vmem:[%s9137_s0 + $0x8] sm:$0xff]  ;;  %v287_v25 = vld [vmem:[%s9137_s0 + $0x10] sm:$0xff] }
   0xc   :  { %6735 = vmatprep.subr.bf16.mxu0 %v9116_v0  ;;  %6747 = vmatprep.subr.bf16.mxu1 %v9116_v0  ;;  %v366_v21 = vld [vmem:[%s9138_s26] sm:$0xff]  ;;  %v6757_v22 = vpack.c.bf16 %v286_v20, %v285_v19  ;;  %v367_v23 = vld [vmem:[%s9138_s26 + $0x8] sm:$0xff]  ;;  %v288_v26 = vld [vmem:[%s9137_s0 + $0x18] sm:$0xff] }
   0xd   :  { %v6769_v24 = vpack.c.bf16 %v367_v23, %v366_v21  ;;  %v368_v27 = vld [vmem:[%s9138_s26 + $0x10] sm:$0xff]  ;;  %v6760_v28 = vpack.c.bf16 %v288_v26, %v287_v25  ;;  %v369_v29 = vld [vmem:[%s9138_s26 + $0x18] sm:$0xff]  ;;  %v289_v31 = vld [vmem:[%s9137_s0 + $0x20] sm:$0xff] }
   0xe   :  { %v6772_v30 = vpack.c.bf16 %v369_v29, %v368_v27  ;;  %v290_v32 = vld [vmem:[%s9137_s0 + $0x28] sm:$0xff]  ;;  %v370_v33 = vld [vmem:[%s9138_s26 + $0x20] sm:$0xff]  ;;  %v291_v37 = vld [vmem:[%s9137_s0 + $0x30] sm:$0xff] }
   0xf   :  { %6737 = vmatpush3.bf16.msra.mxu0 %v7386_v7  ;;  %6749 = vmatpush3.bf16.msra.mxu1 %v7386_v7  ;;  %v6763_v34 = vpack.c.bf16 %v290_v32, %v289_v31  ;;  %v371_v35 = vld [vmem:[%s9138_s26 + $0x28] sm:$0xff]  ;;  %v292_v38 = vld [vmem:[%s9137_s0 + $0x38] sm:$0xff]  ;;  %v372_v39 = vld [vmem:[%s9138_s26 + $0x30] sm:$0xff] }
  0x10   :  { %6738 = vmatprep.subr.bf16.mxu0 %v9116_v0  ;;  %6750 = vmatprep.subr.bf16.mxu1 %v9116_v0  ;;  %v6775_v36 = vpack.c.bf16 %v371_v35, %v370_v33  ;;  %v6766_v40 = vpack.c.bf16 %v292_v38, %v291_v37  ;;  %v373_v41 = vld [vmem:[%s9138_s26 + $0x38] sm:$0xff]  ;;  %v4996_v47 = vld [vmem:[%s9139_s30] ss:$0 sm:$0xff]  ;;  %v5002_v55 = vld [vmem:[%s9141_s1 + $0x8] sm:$0xff] }
  0x11   :  { %v6778_v42 = vpack.c.bf16 %v373_v41, %v372_v39  ;;  %v4997_v49 = vld [vmem:[%s9140_s23] ss:$0 sm:$0xff]  ;;  %v5004_v58 = vld [vmem:[%s9141_s1 + $0x10] sm:$0xff]  ;;  %v5006_v59 = vld [vmem:[%s9141_s1 + $0x18] sm:$0xff] }
  0x12   :  { %v446_v52 = vld [vmem:[%s9141_s1] sm:$0xff]  ;;  %v884_v1 = vld [vmem:[%s9090_s15 + $0x8] sm:$0xff]  ;;  %v785_v3 = vld [vmem:[%s9089_s13 + $0x10] sm:$0xff] }
  0x13   :  { %6740 = vmatpush3.bf16.msra.mxu0 %v7398_v10  ;;  %6752 = vmatpush3.bf16.msra.mxu1 %v7398_v10  ;;  %v6805_v2 = vpack.c.bf16 %v884_v1, %v883_v63  ;;  %v786_v6 = vld [vmem:[%s9089_s13 + $0x18] sm:$0xff]  ;;  %v885_v9 = vld [vmem:[%s9090_s15 + $0x10] sm:$0xff]  ;;  %v791_v26 = vld [vmem:[%s9089_s13 + $0x40] sm:$0xff] }
  0x14   :  { %6741 = vmatprep.subr.bf16.mxu0 %v9116_v0  ;;  %6753 = vmatprep.subr.bf16.mxu1 %v9116_v0  ;;  %v6784_v8 = vpack.c.bf16 %v786_v6, %v785_v3  ;;  %v886_v11 = vld [vmem:[%s9090_s15 + $0x18] sm:$0xff]  ;;  %v789_v20 = vld [vmem:[%s9089_s13 + $0x30] sm:$0xff]  ;;  %v792_v27 = vld [vmem:[%s9089_s13 + $0x48] sm:$0xff] }
  0x15   :  { %v6808_v12 = vpack.c.bf16 %v886_v11, %v885_v9  ;;  %v790_v21 = vld [vmem:[%s9089_s13 + $0x38] sm:$0xff]  ;;  %v889_v23 = vld [vmem:[%s9090_s15 + $0x30] sm:$0xff]  ;;  %v891_v29 = vld [vmem:[%s9090_s15 + $0x40] sm:$0xff] }
  0x16   :  { %v793_v32 = vld [vmem:[%s9089_s13 + $0x50] sm:$0xff]  ;;  %v794_v33 = vld [vmem:[%s9089_s13 + $0x58] sm:$0xff]  ;;  %v795_v38 = vld [vmem:[%s9089_s13 + $0x60] sm:$0xff] }
  0x17   :  { %6743 = vmatpush3.bf16.msra.mxu0 %v7410_v13  ;;  %6755 = vmatpush3.bf16.msra.mxu1 %v7410_v13  ;;  %v893_v35 = vld [vmem:[%s9090_s15 + $0x50] sm:$0xff]  ;;  %v796_v39 = vld [vmem:[%s9089_s13 + $0x68] sm:$0xff]  ;;  %v895_v41 = vld [vmem:[%s9090_s15 + $0x60] sm:$0xff] }
  0x18   :  { %6756 = vmatprep.subr.bf16.mxu0 %v9116_v0  ;;  %6768 = vmatprep.subr.bf16.mxu1 %v9116_v0 }
  0x1a   :  { %5833 = vmatmul.mubr.msk.f32.vlgmr.msra.gmra.mrb[0].mxu0 %vm120_vm1, %v71_v14 }
  0x1b   :  { %5870 = vmatprep.mubr.msk.f32.mxu0 %vm7248_vm0, %v9118_v4  ;;  %6758 = vmatpush3.bf16.msra.mxu0 %v6757_v22  ;;  %v6790_v22 = vpack.c.bf16 %v790_v21, %v789_v20 }
  0x1c   :  { %6759 = vmatprep.subr.bf16.mxu0 %v9116_v0 }
  0x1f   :  { %6761 = vmatpush3.bf16.msra.mxu0 %v6760_v28  ;;  %v6793_v28 = vpack.c.bf16 %v792_v27, %v791_v26  ;;  %v970_v26 = vld [vmem:[%s9093_s16 + $0x8] sm:$0xff] }
  0x20   :  { %6762 = vmatprep.subr.bf16.mxu0 %v9116_v0 }
  0x23   :  { %6764 = vmatpush3.bf16.msra.mxu0 %v6763_v34  ;;  %v6796_v34 = vpack.c.bf16 %v794_v33, %v793_v32  ;;  %v973_v33 = vld [vmem:[%s9093_s16 + $0x20] sm:$0xff] }
  0x24   :  { %6765 = vmatprep.subr.bf16.mxu0 %v9116_v0 }
  0x27   :  { %6767 = vmatpush3.bf16.msra.mxu0 %v6766_v40  ;;  %v6799_v40 = vpack.c.bf16 %v796_v39, %v795_v38  ;;  %v977_v39 = vld [vmem:[%s9093_s16 + $0x40] sm:$0xff] }
  0x28   :  { %5892 = vmatprep.subr.mxu0 %v9118_v4 }
  0xed   :  { %v190_v15 = vpop.f32.mrb[0].mxu0 }
  0xee   :  { %v194_v16 = vsub.f32 %v71_v14, %v190_v15  ;;  %v5834_v17 = vpop.f32.mrb[1].mxu0  ;;  %v787_v14 = vld [vmem:[%s9089_s13 + $0x20] sm:$0xff]  ;;  %v788_v15 = vld [vmem:[%s9089_s13 + $0x28] sm:$0xff] }
  0xef   :  { %v887_v17 = vld [vmem:[%s9090_s15 + $0x20] sm:$0xff] }
  0xf0   :  { %v195_v18 = vmul.f32 %v194_v16, %v194_v16 }
  0xf2   :  { %5852 = vmatmul.mubr.msk.f32.vlgmr.msra.gmra.mrb[0].mxu1 %vm120_vm1, %v195_v18  ;;  %v888_v18 = vld [vmem:[%s9090_s15 + $0x28] sm:$0xff] }
  0xf3   :  { %5889 = vmatprep.mubr.msk.f32.mxu1 %vm7248_vm0, %v9118_v4  ;;  %6770 = vmatpush3.bf16.msra.mxu1 %v6769_v24  ;;  %v6811_v19 = vpack.c.bf16 %v888_v18, %v887_v17  ;;  %v890_v24 = vld [vmem:[%s9090_s15 + $0x38] sm:$0xff] }
  0xf4   :  { %6771 = vmatprep.subr.bf16.mxu1 %v9116_v0  ;;  %v6814_v25 = vpack.c.bf16 %v890_v24, %v889_v23 }
  0xf7   :  { %6773 = vmatpush3.bf16.msra.mxu1 %v6772_v30  ;;  %v892_v30 = vld [vmem:[%s9090_s15 + $0x48] sm:$0xff] }
  0xf8   :  { %6774 = vmatprep.subr.bf16.mxu1 %v9116_v0  ;;  %v6817_v31 = vpack.c.bf16 %v892_v30, %v891_v29  ;;  %v971_v30 = vld [vmem:[%s9093_s16 + $0x10] sm:$0xff] }
  0xfb   :  { %6776 = vmatpush3.bf16.msra.mxu1 %v6775_v36  ;;  %v894_v36 = vld [vmem:[%s9090_s15 + $0x58] sm:$0xff] }
  0xfc   :  { %6777 = vmatprep.subr.bf16.mxu1 %v9116_v0  ;;  %v6820_v37 = vpack.c.bf16 %v894_v36, %v893_v35  ;;  %v975_v36 = vld [vmem:[%s9093_s16 + $0x30] sm:$0xff] }
  0xff   :  { %6779 = vmatpush3.bf16.msra.mxu1 %v6778_v42  ;;  %v896_v42 = vld [vmem:[%s9090_s15 + $0x68] sm:$0xff] }
 0x100   :  { %5897 = vmatprep.subr.mxu1 %v9118_v4 }
 0x1c5   :  { %v265_v43 = vpop.f32.mrb[0].mxu1 }
 0x1c6   :  { %v266_v44 = vadd.f32 1e-05, %v265_v43  ;;  %v5853_v45 = vpop.f32.mrb[1].mxu1  ;;  %v6823_v43 = vpack.c.bf16 %v896_v42, %v895_v41  ;;  %v979_v42 = vld [vmem:[%s9093_s16 + $0x50] sm:$0xff] }
 0x1c7   :  { %v798_v45 = vld [vmem:[%s9089_s13 + $0x78] sm:$0xff] }
 0x1c8   :  { %7127 = vrsqrt.f32 %v266_v44  ;;  %v797_v44 = vld [vmem:[%s9089_s13 + $0x70] sm:$0xff] }
 0x1d2   :  { %v7128_v46 = vpop.eup %7127 }
 0x1d3   :  { %v270_v48 = vmul.f32 %v7128_v46, %v194_v16  ;;  %v6787_v16 = vpack.c.bf16 %v788_v15, %v787_v14  ;;  %v6802_v46 = vpack.c.bf16 %v798_v45, %v797_v44  ;;  %v981_v45 = vld [vmem:[%s9093_s16 + $0x60] sm:$0xff] }
 0x1d5   :  { %v277_v50 = vmul.f32 %v4996_v47, %v270_v48  ;;  %v897_v47 = vld [vmem:[%s9090_s15 + $0x70] sm:$0xff]  ;;  %v898_v48 = vld [vmem:[%s9090_s15 + $0x78] sm:$0xff] }
 0x1d7   :  { %v284_v51 = vadd.f32 %v4997_v49, %v277_v50  ;;  %v6826_v49 = vpack.c.bf16 %v898_v48, %v897_v47  ;;  %v521_v50 = vlaneseq  ;;  %v983_v48 = vld [vmem:[%s9093_s16 + $0x70] sm:$0xff] }
 0x1d9   :  { %5871 = vmatmul.mubr.msk.f32.vlgmr.msra.gmra.mrb[2].mxu0 %vm120_vm1, %v284_v51  ;;  %5890 = vmatmul.mubr.msk.f32.vlgmr.msra.gmra.mrb[2].mxu1 %vm120_vm1, %v284_v51  ;;  %v7637_v51 = vshrl.u32 %v521_v50, 7 }
 0x1da   :  { %5894 = vmatprep.mubr.msk.f32.mxu0 %vm7248_vm0, %v9118_v4  ;;  %5899 = vmatprep.mubr.msk.f32.mxu1 %vm7248_vm0, %v9118_v4 }
 0x1db   :  { %9142 = vst [vmem:[#allocation4_spill] sm:$0xff] %v7637_v51 }
 0x2ac   :  { %v362_v53 = vpop.f32.mrb[2].mxu0  ;;  %v7499_v54 = vpop.f32.mrb[2].mxu1 }
 0x2ad   :  { %v5872_v56 = vpop.f32.mrb[3].mxu0  ;;  %v5891_v57 = vpop.f32.mrb[3].mxu1  ;;  %5893 = vmatpush3.msra.mxu0 %v362_v53  ;;  %5898 = vmatpush3.msra.mxu1 %v362_v53 }
 0x2ae   :  { %5895 = vmatmul.mubr.msk.f32.vlgmr.msra.gmra.mrb[4].mxu0 %vm447_vm2, %v446_v52  ;;  %5902 = vmatprep.subr.mxu0 %v9118_v4  ;;  %v9115_v52 = vsub.s32 0, %v7637_v51  ;;  %v9113_v57 = vsub.s32 2, %v7637_v51 }
 0x2af   :  { %5907 = vmatprep.subr.mxu1 %v9118_v4  ;;  %5900 = vmatmul.mubr.msk.f32.vlgmr.msra.gmra.mrb[4].mxu1 %vm447_vm2, %v5002_v55  ;;  %v9114_v55 = vsub.s32 1, %v7637_v51 }
 0x2b0   :  { %5903 = vmatpush3.msra.mxu0 %v362_v53  ;;  %5908 = vmatpush3.msra.mxu1 %v362_v53  ;;  %v444_v53 = vld [vmem:[%s9091_s11] sm:$0xf] }
 0x2b1   :  { %5904 = vmatprep.mubr.msk.f32.mxu0 %vm7248_vm0, %v9118_v4  ;;  %5909 = vmatprep.mubr.msk.f32.mxu1 %vm7248_vm0, %v9118_v4  ;;  %v524_v56 = vrot.slane %v444_v53, %v9115_v52 }
 0x2b2   :  { %5905 = vmatmul.mubr.msk.f32.vlgmr.msra.gmra.mrb[6].mxu0 %vm447_vm2, %v5004_v58  ;;  %6780 = vmatprep.subr.bf16.mxu0 %v9116_v0  ;;  %v611_v58 = vrot.slane %v444_v53, %v9114_v55 }
 0x2b3   :  { %5910 = vmatmul.mubr.msk.f32.vlgmr.msra.gmra.mrb[6].mxu1 %vm447_vm2, %v5006_v59  ;;  %6804 = vmatprep.subr.bf16.mxu1 %v9116_v0  ;;  %v9112_v59 = vsub.s32 3, %v7637_v51 }
 0x2b4   :  { %5944 = vmatprep.mubr.msk.f32.mxu0 %vm7248_vm0, %v9118_v4  ;;  %5979 = vmatprep.mubr.msk.f32.mxu1 %vm7248_vm0, %v9118_v4 }
 0x2b5   :  { %6782 = vmatpush3.bf16.msra.mxu0 %v6781_v62  ;;  %6806 = vmatpush3.bf16.msra.mxu1 %v6805_v2  ;;  %v692_v2 = vrot.slane %v444_v53, %v9113_v57 }
 0x2b6   :  { %6783 = vmatprep.subr.bf16.mxu0 %v9116_v0  ;;  %6807 = vmatprep.subr.bf16.mxu1 %v9116_v0 }
 0x2b9   :  { %6785 = vmatpush3.bf16.msra.mxu0 %v6784_v8  ;;  %6809 = vmatpush3.bf16.msra.mxu1 %v6808_v12  ;;  %v773_v8 = vrot.slane %v444_v53, %v9112_v59  ;;  %v7722_v53 = vld [vmem:[%s9094_s2] sm:$0xff] }
 0x2ba   :  { %6786 = vmatprep.subr.bf16.mxu0 %v9116_v0  ;;  %6810 = vmatprep.subr.bf16.mxu1 %v9116_v0 }
 0x2bd   :  { %6788 = vmatpush3.bf16.msra.mxu0 %v6787_v16  ;;  %6812 = vmatpush3.bf16.msra.mxu1 %v6811_v19 }
 0x2be   :  { %6789 = vmatprep.subr.bf16.mxu0 %v9116_v0  ;;  %6813 = vmatprep.subr.bf16.mxu1 %v9116_v0 }
 0x2c1   :  { %6791 = vmatpush3.bf16.msra.mxu0 %v6790_v22  ;;  %6815 = vmatpush3.bf16.msra.mxu1 %v6814_v25  ;;  %v969_v25 = vld [vmem:[%s9093_s16] sm:$0xff] }
 0x2c2   :  { %6792 = vmatprep.subr.bf16.mxu0 %v9116_v0  ;;  %6816 = vmatprep.subr.bf16.mxu1 %v9116_v0 }
 0x2c5   :  { %6794 = vmatpush3.bf16.msra.mxu0 %v6793_v28  ;;  %6818 = vmatpush3.bf16.msra.mxu1 %v6817_v31  ;;  %v6829_v28 = vpack.c.bf16 %v970_v26, %v969_v25  ;;  %v972_v31 = vld [vmem:[%s9093_s16 + $0x18] sm:$0xff]  ;;  %v84_v26 = vld [vmem:[%s9094_s2 + $0x60] sm:$0xff] }
 0x2c6   :  { %6795 = vmatprep.subr.bf16.mxu0 %v9116_v0  ;;  %6819 = vmatprep.subr.bf16.mxu1 %v9116_v0  ;;  %v6832_v32 = vpack.c.bf16 %v972_v31, %v971_v30  ;;  %v83_v25 = vld [vmem:[%s9094_s2 + $0x58] sm:$0xff]  ;;  %v104_v31 = vld [vmem:[%s9096_s4] sm:$0xff] }
 0x2c7   :  { %v87_v30 = vld [vmem:[%s9094_s2 + $0x78] sm:$0xff] }
 0x2c9   :  { %6797 = vmatpush3.bf16.msra.mxu0 %v6796_v34  ;;  %6821 = vmatpush3.bf16.msra.mxu1 %v6820_v37  ;;  %v974_v34 = vld [vmem:[%s9093_s16 + $0x28] sm:$0xff]  ;;  %v976_v37 = vld [vmem:[%s9093_s16 + $0x38] sm:$0xff] }
 0x2ca   :  { %6798 = vmatprep.subr.bf16.mxu0 %v9116_v0  ;;  %6822 = vmatprep.subr.bf16.mxu1 %v9116_v0  ;;  %v6835_v35 = vpack.c.bf16 %v974_v34, %v973_v33  ;;  %v6838_v38 = vpack.c.bf16 %v976_v37, %v975_v36  ;;  %v106_v34 = vld [vmem:[%s9096_s4 + $0x10] sm:$0xff] }
 0x2cd   :  { %6800 = vmatpush3.bf16.msra.mxu0 %v6799_v40  ;;  %6824 = vmatpush3.bf16.msra.mxu1 %v6823_v43  ;;  %v978_v40 = vld [vmem:[%s9093_s16 + $0x48] sm:$0xff]  ;;  %v980_v43 = vld [vmem:[%s9093_s16 + $0x58] sm:$0xff] }
 0x2ce   :  { %6801 = vmatprep.subr.bf16.mxu0 %v9116_v0  ;;  %6825 = vmatprep.subr.bf16.mxu1 %v9116_v0  ;;  %v6841_v41 = vpack.c.bf16 %v978_v40, %v977_v39  ;;  %v6844_v44 = vpack.c.bf16 %v980_v43, %v979_v42 }
 0x2d1   :  { %6803 = vmatpush3.bf16.msra.mxu0 %v6802_v46  ;;  %6827 = vmatpush3.bf16.msra.mxu1 %v6826_v49  ;;  %v982_v46 = vld [vmem:[%s9093_s16 + $0x68] sm:$0xff]  ;;  %v984_v49 = vld [vmem:[%s9093_s16 + $0x78] sm:$0xff] }
 0x2d2   :  { %6828 = vmatprep.subr.bf16.mxu0 %v9116_v0  ;;  %v6847_v47 = vpack.c.bf16 %v982_v46, %v981_v45  ;;  %v6850_v50 = vpack.c.bf16 %v984_v49, %v983_v48 }
 0x381   :  { %v517_v61 = vpop.f32.mrb[4].mxu0 }
 0x382   :  { %v525_v62 = vmul.f32 %v524_v56, %v517_v61  ;;  %v5896_v63 = vpop.f32.mrb[5].mxu0  ;;  %v604_v1 = vpop.f32.mrb[4].mxu1  ;;  %v5008_v56 = vld [vmem:[%s9095_s14] ss:$0 sm:$0xff] }
 0x383   :  { %v612_v3 = vmul.f32 %v611_v58, %v604_v1  ;;  %v5901_v6 = vpop.f32.mrb[5].mxu1 }
 0x384   :  { %v532_v9 = vadd.f32 %v5001_v60, %v525_v62 }
 0x385   :  { %v685_v11 = vpop.f32.mrb[6].mxu0 }
 0x386   :  { %v613_v12 = vadd.f32 %v612_v3, %v532_v9  ;;  %v693_v14 = vmul.f32 %v692_v2, %v685_v11  ;;  %v5906_v15 = vpop.f32.mrb[7].mxu0  ;;  %v766_v16 = vpop.f32.mrb[6].mxu1  ;;  %v7734_v11 = vld [vmem:[%s9094_s2 + $0x8] sm:$0xff] }
 0x387   :  { %v774_v17 = vmul.f32 %v773_v8, %v766_v16  ;;  %v5911_v18 = vpop.f32.mrb[7].mxu1  ;;  %v7740_v16 = vld [vmem:[%s9094_s2 + $0x10] sm:$0xff] }
 0x388   :  { %v694_v19 = vadd.f32 %v693_v14, %v613_v12  ;;  %v7754_v18 = vld [vmem:[%s9094_s2 + $0x20] sm:$0xff] }
 0x38a   :  { %v775_v20 = vadd.f32 %v774_v17, %v694_v19  ;;  %v7747_v17 = vld [vmem:[%s9094_s2 + $0x18] sm:$0xff]  ;;  %v77_v19 = vld [vmem:[%s9094_s2 + $0x28] sm:$0xff] }
 0x38c   :  { %v776_v21 = vsub.f32 0.0, %v775_v20 }
 0x38e   :  { %v777_v22 = vmul.f32 1.442695, %v776_v21  ;;  %v79_v21 = vld [vmem:[%s9094_s2 + $0x38] sm:$0xff] }
 0x390   :  { %7129 = vpow2.f32 %v777_v22  ;;  %v80_v22 = vld [vmem:[%s9094_s2 + $0x40] sm:$0xff] }
 0x39a   :  { %v7130_v23 = vpop.eup %7129 }
 0x39b   :  { %v779_v24 = vadd.f32 1.0, %v7130_v23  ;;  %v81_v23 = vld [vmem:[%s9094_s2 + $0x48] sm:$0xff] }
 0x39d   :  { %7131 = vrcp.f32 %v779_v24  ;;  %v82_v24 = vld [vmem:[%s9094_s2 + $0x50] sm:$0xff] }
 0x3a7   :  { %v7132_v27 = vpop.eup %7131 }
 0x3a8   :  { %v7663_v29 = vmul.f32 %v7132_v27, %v775_v20  ;;  %v78_v20 = vld [vmem:[%s9094_s2 + $0x30] sm:$0xff]  ;;  %v85_v27 = vld [vmem:[%s9094_s2 + $0x68] sm:$0xff] }
 0x3aa   :  { %5945 = vmatmul.mubr.f32.vlgmr.msra.gmra.mrb[8].mxu0 %v7663_v29  ;;  %5980 = vmatmul.mubr.f32.vlgmr.msra.gmra.mrb[8].mxu1 %v7663_v29 }
 0x3ab   :  { %6830 = vmatpush3.bf16.msra.mxu0 %v6829_v28  ;;  %6014 = vmatprep.mubr.msk.f32.mxu0 %vm7248_vm0, %v9118_v4  ;;  %v86_v28 = vld [vmem:[%s9094_s2 + $0x70] sm:$0xff] }
 0x3ac   :  { %6831 = vmatprep.subr.bf16.mxu0 %v9116_v0  ;;  %6019 = vmatprep.mubr.msk.f32.mxu1 %vm447_vm2, %v7722_v53 }
 0x3af   :  { %6833 = vmatpush3.bf16.msra.mxu0 %v6832_v32  ;;  %v105_v32 = vld [vmem:[%s9096_s4 + $0x8] sm:$0xff] }
 0x3b0   :  { %6834 = vmatprep.subr.bf16.mxu0 %v9116_v0  ;;  %v7874_v33 = vpack.c.bf16 %v105_v32, %v104_v31  ;;  %v7985_v31 = vld [vmem:[%s9097_s3 + $0x28] sm:$0xff] }
 0x3b2   :  { %9143 = vst [vmem:[#allocation5_spill] sm:$0xff] %v7874_v33 }
 0x3b3   :  { %6836 = vmatpush3.bf16.msra.mxu0 %v6835_v35  ;;  %v107_v35 = vld [vmem:[%s9096_s4 + $0x18] sm:$0xff] }
 0x3b4   :  { %6837 = vmatprep.subr.bf16.mxu0 %v9116_v0  ;;  %v7884_v36 = vpack.c.bf16 %v107_v35, %v106_v34 }
 0x3b6   :  { %9144 = vst [vmem:[#allocation6_spill] sm:$0xff] %v7884_v36 }
 0x3b7   :  { %6839 = vmatpush3.bf16.msra.mxu0 %v6838_v38 }
 0x3b8   :  { %6840 = vmatprep.subr.bf16.mxu0 %v9116_v0 }
 0x3bb   :  { %6842 = vmatpush3.bf16.msra.mxu0 %v6841_v41 }
 0x3bc   :  { %6843 = vmatprep.subr.bf16.mxu0 %v9116_v0 }
 0x3bf   :  { %6845 = vmatpush3.bf16.msra.mxu0 %v6844_v44 }
 0x3c0   :  { %6846 = vmatprep.subr.bf16.mxu0 %v9116_v0 }
 0x3c3   :  { %6848 = vmatpush3.bf16.msra.mxu0 %v6847_v47 }
 0x3c4   :  { %6849 = vmatprep.subr.bf16.mxu0 %v9116_v0 }
 0x3c7   :  { %6851 = vmatpush3.bf16.msra.mxu0 %v6850_v50 }
 0x3ca   :  { %6015 = vmatmul.mubr.f32.vlgmr.msra.gmra.mrb[10].mxu0 %v7663_v29 }
 0x3cb   :  { %6045 = vmatprep.mubr.msk.f32.mxu0 %vm447_vm2, %v7722_v53 }
 0x47d   :  { %v872_v58 = vpop.f32.mrb[8].mxu0  ;;  %v965_v60 = vpop.f32.mrb[8].mxu1 }
 0x47e   :  { %v873_v61 = vadd.f32 %v5008_v56, %v872_v58  ;;  %v5946_v62 = vpop.f32.mrb[9].mxu0  ;;  %v5981_v63 = vpop.f32.mrb[9].mxu1 }
 0x480   :  { %v877_v1 = vmul.f32 1.442695, %v873_v61  ;;  %vm876_vm3 = vcmp.gt.f32.partialorder %v873_v61, 20.0 }
 0x482   :  { %7133 = vpow2.f32 %v877_v1 }
 0x48c   :  { %v7134_v2 = vpop.eup %7133 }
 0x48d   :  { %v879_v3 = vadd.f32 1.0, %v7134_v2 }
 0x48f   :  { %7135 = vlog2.f32 %v879_v3 }
 0x499   :  { %v7136_v6 = vpop.eup %7135 }
 0x49a   :  { %v881_v8 = vmul.f32 0.6931472, %v7136_v6 }
 0x49c   :  { %v882_v9 = vsel %vm876_vm3, %v873_v61, %v881_v8 }
 0x49d   :  { %v1051_v12 = vpop.f32.mrb[10].mxu0  ;;  %6017 = vmatprep.subr.mxu1 %v882_v9  ;;  %v1328_v14 = vmul.f32 %v882_v9, %v7663_v29 }
 0x49e   :  { %v6016_v15 = vpop.f32.mrb[11].mxu0  ;;  %6018 = vmatpush3.msra.mxu1 %v882_v9 }
 0x49f   :  { %6020 = vmatmul.mubr.msk.f32.vlgmr.msra.gmra.mrb[10].mxu1 %vm447_vm2, %v7734_v11  ;;  %6043 = vmatprep.subr.mxu0 %v1328_v14  ;;  %v7948_v15 = vld [vmem:[%s9097_s3] sm:$0xff] }
 0x4a0   :  { %6069 = vmatprep.subr.mxu1 %v965_v60  ;;  %6044 = vmatpush3.msra.mxu0 %v1328_v14 }
 0x4a1   :  { %6070 = vmatpush3.msra.mxu1 %v965_v60  ;;  %6022 = vmatprep.mubr.msk.f32.mxu1 %vm447_vm2, %v7740_v16 }
 0x4a2   :  { %6127 = vmatprep.subr.mxu1 %v1051_v12  ;;  %6046 = vmatmul.mubr.msk.f32.vlgmr.msra.gmra.mrb[12].mxu0 %vm447_vm2, %v7734_v11 }
 0x4a3   :  { %6023 = vmatmul.mubr.msk.f32.gmra.mrb[12].mxu1 %vm447_vm2, %v7747_v17  ;;  %6048 = vmatprep.mubr.msk.f32.mxu0 %vm447_vm2, %v7740_v16 }
 0x4a4   :  { %6025 = vmatprep.mubr.msk.f32.mxu1 %vm447_vm2, %v7754_v18  ;;  %6853 = vmatprep.subr.bf16.mxu0 %v7874_v33 }
 0x4a5   :  { %6855 = vmatpush3.bf16.msra.mxu0 %v7874_v33 }
 0x4a6   :  { %6049 = vmatmul.mubr.msk.f32.gmra.mrb[14].mxu0 %vm447_vm2, %v7747_v17  ;;  %6857 = vmatprep.subr.bf16.mxu0 %v7884_v36 }
 0x4a7   :  { %6026 = vmatmul.mubr.msk.f32.gmra.mrb[14].mxu1 %vm447_vm2, %v77_v19  ;;  %6051 = vmatprep.mubr.msk.f32.mxu0 %vm447_vm2, %v7754_v18 }
 0x4a8   :  { %6028 = vmatprep.mubr.msk.f32.mxu1 %vm447_vm2, %v78_v20 }
 0x4a9   :  { %6859 = vmatpush3.bf16.msra.mxu0 %v7884_v36 }
 0x4aa   :  { %6052 = vmatmul.mubr.msk.f32.gmra.mrb[16].mxu0 %vm447_vm2, %v77_v19  ;;  %6861 = vmatprep.subr.bf16.mxu0 %v7874_v33 }
 0x4ab   :  { %6029 = vmatmul.mubr.msk.f32.gmra.mrb[16].mxu1 %vm447_vm2, %v79_v21  ;;  %6054 = vmatprep.mubr.msk.f32.mxu0 %vm447_vm2, %v78_v20 }
 0x4ac   :  { %6031 = vmatprep.mubr.msk.f32.mxu1 %vm447_vm2, %v80_v22 }
 0x4ae   :  { %6055 = vmatmul.mubr.msk.f32.gmra.mrb[18].mxu0 %vm447_vm2, %v79_v21 }
 0x4af   :  { %6032 = vmatmul.mubr.msk.f32.gmra.mrb[18].mxu1 %vm447_vm2, %v81_v23  ;;  %6057 = vmatprep.mubr.msk.f32.mxu0 %vm447_vm2, %v80_v22 }
 0x4b0   :  { %6034 = vmatprep.mubr.msk.f32.mxu1 %vm447_vm2, %v82_v24 }
 0x4b2   :  { %6058 = vmatmul.mubr.msk.f32.gmra.mrb[20].mxu0 %vm447_vm2, %v81_v23 }
 0x4b3   :  { %6035 = vmatmul.mubr.msk.f32.gmra.mrb[20].mxu1 %vm447_vm2, %v83_v25  ;;  %6060 = vmatprep.mubr.msk.f32.mxu0 %vm447_vm2, %v82_v24 }
 0x4b4   :  { %6037 = vmatprep.mubr.msk.f32.mxu1 %vm447_vm2, %v84_v26 }
 0x4b6   :  { %6061 = vmatmul.mubr.msk.f32.gmra.mrb[22].mxu0 %vm447_vm2, %v83_v25 }
 0x4b7   :  { %6038 = vmatmul.mubr.msk.f32.gmra.mrb[22].mxu1 %vm447_vm2, %v85_v27  ;;  %6063 = vmatprep.mubr.msk.f32.mxu0 %vm447_vm2, %v84_v26 }
 0x4b8   :  { %6040 = vmatprep.mubr.msk.f32.mxu1 %vm447_vm2, %v86_v28 }
 0x4ba   :  { %6064 = vmatmul.mubr.msk.f32.gmra.mrb[24].mxu0 %vm447_vm2, %v85_v27 }
 0x4bb   :  { %6041 = vmatmul.mubr.msk.f32.gmra.mrb[24].mxu1 %vm447_vm2, %v87_v30  ;;  %6066 = vmatprep.mubr.msk.f32.mxu0 %vm447_vm2, %v86_v28 }
 0x4bc   :  { %6071 = vmatprep.mubr.msk.f32.mxu1 %vm447_vm2, %v7722_v53 }
 0x4be   :  { %6067 = vmatmul.mubr.msk.f32.gmra.mrb[26].mxu0 %vm447_vm2, %v87_v30 }
 0x4bf   :  { %6072 = vmatmul.mubr.msk.f32.vlgmr.msra.gmra.mrb[26].mxu1 %vm447_vm2, %v7734_v11 }
 0x4c0   :  { %6128 = vmatpush3.msra.mxu1 %v1051_v12  ;;  %6074 = vmatprep.mubr.msk.f32.mxu1 %vm447_vm2, %v7740_v16 }
 0x4c1   :  { %6868 = vmatprep.subr.bf16.mxu1 %v9116_v0 }
 0x4c3   :  { %6075 = vmatmul.mubr.msk.f32.gmra.mrb[28].mxu1 %vm447_vm2, %v7747_v17 }
 0x4c4   :  { %6077 = vmatprep.mubr.msk.f32.mxu1 %vm447_vm2, %v7754_v18 }
 0x4c7   :  { %6078 = vmatmul.mubr.msk.f32.gmra.mrb[30].mxu1 %vm447_vm2, %v77_v19 }
 0x4c8   :  { %6080 = vmatprep.mubr.msk.f32.mxu1 %vm447_vm2, %v78_v20 }
 0x4cb   :  { %6081 = vmatmul.mubr.msk.f32.gmra.mrb[32].mxu1 %vm447_vm2, %v79_v21 }
 0x4cc   :  { %6083 = vmatprep.mubr.msk.f32.mxu1 %vm447_vm2, %v80_v22 }
 0x4cf   :  { %6084 = vmatmul.mubr.msk.f32.gmra.mrb[34].mxu1 %vm447_vm2, %v81_v23 }
 0x4d0   :  { %6086 = vmatprep.mubr.msk.f32.mxu1 %vm447_vm2, %v82_v24 }
 0x4d3   :  { %6087 = vmatmul.mubr.msk.f32.gmra.mrb[36].mxu1 %vm447_vm2, %v83_v25 }
 0x4d4   :  { %6089 = vmatprep.mubr.msk.f32.mxu1 %vm447_vm2, %v84_v26 }
 0x4d7   :  { %6090 = vmatmul.mubr.msk.f32.gmra.mrb[38].mxu1 %vm447_vm2, %v85_v27 }
 0x4d8   :  { %6092 = vmatprep.mubr.msk.f32.mxu1 %vm447_vm2, %v86_v28 }
 0x4db   :  { %6093 = vmatmul.mubr.msk.f32.gmra.mrb[40].mxu1 %vm447_vm2, %v87_v30 }
 0x4dc   :  { %6129 = vmatprep.mubr.msk.f32.mxu1 %vm447_vm2, %v7722_v53 }
 0x4df   :  { %6130 = vmatmul.mubr.msk.f32.vlgmr.msra.gmra.mrb[42].mxu1 %vm447_vm2, %v7734_v11 }
 0x4e0   :  { %6132 = vmatprep.mubr.msk.f32.mxu1 %vm447_vm2, %v7740_v16 }
 0x4e3   :  { %6133 = vmatmul.mubr.msk.f32.gmra.mrb[44].mxu1 %vm447_vm2, %v7747_v17  ;;  %v7955_v17 = vld [vmem:[%s9097_s3 + $0x8] sm:$0xff] }
 0x4e4   :  { %6135 = vmatprep.mubr.msk.f32.mxu1 %vm447_vm2, %v7754_v18 }
 0x4e7   :  { %6136 = vmatmul.mubr.msk.f32.gmra.mrb[46].mxu1 %vm447_vm2, %v77_v19 }
 0x4e8   :  { %6138 = vmatprep.mubr.msk.f32.mxu1 %vm447_vm2, %v78_v20 }
 0x4eb   :  { %6139 = vmatmul.mubr.msk.f32.gmra.mrb[48].mxu1 %vm447_vm2, %v79_v21 }
 0x4ec   :  { %6141 = vmatprep.mubr.msk.f32.mxu1 %vm447_vm2, %v80_v22 }
 0x4ef   :  { %6142 = vmatmul.mubr.msk.f32.gmra.mrb[50].mxu1 %vm447_vm2, %v81_v23  ;;  %v7964_v23 = vld [vmem:[%s9097_s3 + $0x10] sm:$0xff] }
 0x4f0   :  { %6144 = vmatprep.mubr.msk.f32.mxu1 %vm447_vm2, %v82_v24  ;;  %v7969_v24 = vld [vmem:[%s9097_s3 + $0x18] sm:$0xff] }
 0x4f3   :  { %6145 = vmatmul.mubr.msk.f32.gmra.mrb[52].mxu1 %vm447_vm2, %v83_v25 }
 0x4f4   :  { %6147 = vmatprep.mubr.msk.f32.mxu1 %vm447_vm2, %v84_v26 }
 0x4f7   :  { %6148 = vmatmul.mubr.msk.f32.gmra.mrb[54].mxu1 %vm447_vm2, %v85_v27 }
 0x4f8   :  { %6150 = vmatprep.mubr.msk.f32.mxu1 %vm447_vm2, %v86_v28 }
 0x4fb   :  { %6151 = vmatmul.mubr.msk.f32.gmra.mrb[56].mxu1 %vm447_vm2, %v87_v30  ;;  %v7979_v30 = vld [vmem:[%s9097_s3 + $0x20] sm:$0xff] }
 0x4fc   :  { %6217 = vmatprep.mubr.msk.f32.mxu1 %vm7248_vm0, %v9118_v4 }
 0x572   :  { %v6021_v37 = vpop.f32.mrb[10].mxu1 }
 0x573   :  { %v1169_v38 = vpop.f32.mrb[11].mxu1 }
 0x574   :  { %v7995_v38 = vld [vmem:[%s9097_s3 + $0x30] sm:$0xff] }
 0x575   :  { %v7889_v39 = vpop.f32.mrb[12].mxu0 }
 0x576   :  { %v7891_v40 = vpop.f32.mrb[12].mxu1  ;;  %v7893_v41 = vpop.f32.mrb[13].mxu0 }
 0x577   :  { %v7895_v42 = vpop.f32.mrb[13].mxu1 }
 0x579   :  { %v7897_v43 = vpop.f32.mrb[14].mxu0 }
 0x57a   :  { %v7899_v44 = vpop.f32.mrb[14].mxu1  ;;  %v7901_v45 = vpop.f32.mrb[15].mxu0 }
 0x57b   :  { %v7903_v46 = vpop.f32.mrb[15].mxu1 }
 0x57d   :  { %v7905_v47 = vpop.f32.mrb[16].mxu0 }
 0x57e   :  { %v7907_v48 = vpop.f32.mrb[16].mxu1  ;;  %v7909_v49 = vpop.f32.mrb[17].mxu0 }
 0x57f   :  { %v7911_v50 = vpop.f32.mrb[17].mxu1 }
 0x581   :  { %v7913_v53 = vpop.f32.mrb[18].mxu0 }
 0x582   :  { %v7915_v56 = vpop.f32.mrb[18].mxu1  ;;  %v7917_v58 = vpop.f32.mrb[19].mxu0 }
 0x583   :  { %v7919_v60 = vpop.f32.mrb[19].mxu1 }
 0x585   :  { %v7921_v61 = vpop.f32.mrb[20].mxu0 }
 0x586   :  { %v7923_v62 = vpop.f32.mrb[20].mxu1  ;;  %v7925_v63 = vpop.f32.mrb[21].mxu0 }
 0x587   :  { %v7927_v1 = vpop.f32.mrb[21].mxu1 }
 0x589   :  { %v7929_v2 = vpop.f32.mrb[22].mxu0 }
 0x58a   :  { %v7931_v3 = vpop.f32.mrb[22].mxu1  ;;  %v7933_v6 = vpop.f32.mrb[23].mxu0 }
 0x58b   :  { %v7935_v8 = vpop.f32.mrb[23].mxu1 }
 0x58d   :  { %v7937_v9 = vpop.f32.mrb[24].mxu0 }
 0x58e   :  { %v7939_v11 = vpop.f32.mrb[24].mxu1  ;;  %v7941_v12 = vpop.f32.mrb[25].mxu0 }
 0x58f   :  { %v7943_v14 = vpop.f32.mrb[25].mxu1 }
 0x591   :  { %v7950_v16 = vpop.f32.mrb[26].mxu0 }
 0x592   :  { %v6073_v18 = vpop.f32.mrb[26].mxu1  ;;  %v7957_v19 = vpop.f32.mrb[27].mxu0 }
 0x593   :  { %v1540_v20 = vpop.f32.mrb[27].mxu1  ;;  %v1620_v22 = vmul.f32 %v6073_v18, %v7955_v17  ;;  %v95_v18 = vld [vmem:[%s9097_s3 + $0x38] sm:$0xff] }
 0x594   :  { %v1619_v21 = vmul.f32 %v1540_v20, %v7948_v15 }
 0x596   :  { %v6076_v25 = vpop.f32.mrb[28].mxu1  ;;  %6103 = vmatprep.mubr.msk.f32.mxu0 %vm1635_vm4, %v1619_v21 }
 0x597   :  { %v1550_v26 = vpop.f32.mrb[29].mxu1  ;;  %6104 = vmatmul.mubr.msk.f32.vlgmr.msra.gmra.mrb[28].mxu0 %vm1635_vm4, %v1620_v22  ;;  %v1622_v28 = vmul.f32 %v6076_v25, %v7969_v24 }
 0x598   :  { %v1621_v27 = vmul.f32 %v1550_v26, %v7964_v23  ;;  %6863 = vmatpush3.bf16.msra.mxu0 %v7874_v33  ;;  %v96_v26 = vld [vmem:[%s9097_s3 + $0x40] sm:$0xff] }
 0x599   :  { %6865 = vmatprep.subr.bf16.mxu0 %v7884_v36 }
 0x59a   :  { %v6079_v32 = vpop.f32.mrb[30].mxu1  ;;  %6106 = vmatprep.mubr.msk.f32.mxu0 %vm1635_vm4, %v1621_v27  ;;  %v97_v27 = vld [vmem:[%s9097_s3 + $0x48] sm:$0xff] }
 0x59b   :  { %v1560_v34 = vpop.f32.mrb[31].mxu1  ;;  %6107 = vmatmul.mubr.msk.f32.gmra.mrb[30].mxu0 %vm1635_vm4, %v1622_v28  ;;  %v1624_v37 = vmul.f32 %v6079_v32, %v7985_v31 }
 0x59c   :  { %v1623_v35 = vmul.f32 %v1560_v34, %v7979_v30  ;;  %6867 = vmatpush3.bf16.msra.mxu0 %v7884_v36 }
 0x59d   :  { %6892 = vmatprep.subr.bf16.mxu0 %v9116_v0 }
 0x59e   :  { %v6082_v20 = vpop.f32.mrb[32].mxu1  ;;  %6109 = vmatprep.mubr.msk.f32.mxu0 %vm1635_vm4, %v1623_v35 }
 0x59f   :  { %v1570_v21 = vpop.f32.mrb[33].mxu1  ;;  %6110 = vmatmul.mubr.msk.f32.gmra.mrb[32].mxu0 %vm1635_vm4, %v1624_v37  ;;  %v1626_v25 = vmul.f32 %v6082_v20, %v95_v18  ;;  %v98_v37 = vld [vmem:[%s9097_s3 + $0x50] sm:$0xff]  ;;  %v99_v20 = vld [vmem:[%s9097_s3 + $0x58] sm:$0xff] }
 0x5a0   :  { %v1625_v22 = vmul.f32 %v1570_v21, %v7995_v38 }
 0x5a2   :  { %v6085_v28 = vpop.f32.mrb[34].mxu1  ;;  %6112 = vmatprep.mubr.msk.f32.mxu0 %vm1635_vm4, %v1625_v22 }
 0x5a3   :  { %v1580_v32 = vpop.f32.mrb[35].mxu1  ;;  %6113 = vmatmul.mubr.msk.f32.gmra.mrb[34].mxu0 %vm1635_vm4, %v1626_v25  ;;  %v1628_v35 = vmul.f32 %v6085_v28, %v97_v27  ;;  %v100_v25 = vld [vmem:[%s9097_s3 + $0x60] sm:$0xff]  ;;  %v101_v28 = vld [vmem:[%s9097_s3 + $0x68] sm:$0xff] }
 0x5a4   :  { %v1627_v34 = vmul.f32 %v1580_v32, %v96_v26 }
 0x5a6   :  { %v6088_v21 = vpop.f32.mrb[36].mxu1  ;;  %6115 = vmatprep.mubr.msk.f32.mxu0 %vm1635_vm4, %v1627_v34 }
 0x5a7   :  { %v1590_v59 = vpop.f32.mrb[37].mxu1  ;;  %6116 = vmatmul.mubr.msk.f32.gmra.mrb[36].mxu0 %vm1635_vm4, %v1628_v35  ;;  %v1630_v57 = vmul.f32 %v6088_v21, %v99_v20  ;;  %v103_v35 = vld [vmem:[%s9097_s3 + $0x78] sm:$0xff] }
 0x5a8   :  { %v1629_v22 = vmul.f32 %v1590_v59, %v98_v37  ;;  %v102_v59 = vld [vmem:[%s9097_s3 + $0x70] sm:$0xff] }
 0x5aa   :  { %v6091_v32 = vpop.f32.mrb[38].mxu1  ;;  %6118 = vmatprep.mubr.msk.f32.mxu0 %vm1635_vm4, %v1629_v22 }
 0x5ab   :  { %v1600_v55 = vpop.f32.mrb[39].mxu1  ;;  %6119 = vmatmul.mubr.msk.f32.gmra.mrb[38].mxu0 %vm1635_vm4, %v1630_v57  ;;  %v1632_v52 = vmul.f32 %v6091_v32, %v101_v28 }
 0x5ac   :  { %v1631_v34 = vmul.f32 %v1600_v55, %v100_v25 }
 0x5ae   :  { %v6094_v21 = vpop.f32.mrb[40].mxu1  ;;  %6121 = vmatprep.mubr.msk.f32.mxu0 %vm1635_vm4, %v1631_v34 }
 0x5af   :  { %v1610_v0 = vpop.f32.mrb[41].mxu1  ;;  %6122 = vmatmul.mubr.msk.f32.gmra.mrb[40].mxu0 %vm1635_vm4, %v1632_v52  ;;  %v1634_v4 = vmul.f32 %v6094_v21, %v103_v35 }
 0x5b0   :  { %v1633_v22 = vmul.f32 %v1610_v0, %v102_v59 }
 0x5b2   :  { %6124 = vmatprep.mubr.msk.f32.mxu0 %vm1635_vm4, %v1633_v22  ;;  %v6131_v55 = vpop.f32.mrb[42].mxu1 }
 0x5b3   :  { %6125 = vmatmul.mubr.msk.f32.gmra.mrb[42].mxu0 %vm1635_vm4, %v1634_v4  ;;  %v1927_v57 = vpop.f32.mrb[43].mxu1  ;;  %v2007_v36 = vmul.f32 %v6131_v55, %v7955_v17 }
 0x5b4   :  { %v2006_v32 = vmul.f32 %v1927_v57, %v7948_v15 }
 0x5b6   :  { %v6134_v33 = vpop.f32.mrb[44].mxu1  ;;  %6161 = vmatprep.mubr.msk.f32.mxu0 %vm1635_vm4, %v2006_v32 }
 0x5b7   :  { %v1937_v51 = vpop.f32.mrb[45].mxu1  ;;  %6162 = vmatmul.mubr.msk.f32.vlgmr.msra.gmra.mrb[44].mxu0 %vm1635_vm4, %v2007_v36  ;;  %v2009_v0 = vmul.f32 %v6134_v33, %v7969_v24 }
 0x5b8   :  { %v2008_v52 = vmul.f32 %v1937_v51, %v7964_v23 }
 0x5ba   :  { %v6137_v34 = vpop.f32.mrb[46].mxu1  ;;  %6164 = vmatprep.mubr.msk.f32.mxu0 %vm1635_vm4, %v2008_v52 }
 0x5bb   :  { %v1947_v21 = vpop.f32.mrb[47].mxu1  ;;  %6165 = vmatmul.mubr.msk.f32.gmra.mrb[46].mxu0 %vm1635_vm4, %v2009_v0  ;;  %v2011_v15 = vmul.f32 %v6137_v34, %v7985_v31 }
 0x5bc   :  { %v2010_v4 = vmul.f32 %v1947_v21, %v7979_v30 }
 0x5be   :  { %v6140_v17 = vpop.f32.mrb[48].mxu1  ;;  %6167 = vmatprep.mubr.msk.f32.mxu0 %vm1635_vm4, %v2010_v4 }
 0x5bf   :  { %v1957_v22 = vpop.f32.mrb[49].mxu1  ;;  %6168 = vmatmul.mubr.msk.f32.gmra.mrb[48].mxu0 %vm1635_vm4, %v2011_v15  ;;  %v2013_v36 = vmul.f32 %v6140_v17, %v95_v18  ;;  %v9146_v15 = vmov 0.0|0.0   ;;  %v2409_v17 = vld [vmem:[%s9098_s19 + $0x20] sm:$0xff] }
 0x5c0   :  { %v2012_v51 = vmul.f32 %v1957_v22, %v7995_v38  ;;  %v2410_v22 = vld [vmem:[%s9098_s19 + $0x28] sm:$0xff] }
 0x5c2   :  { %v6143_v33 = vpop.f32.mrb[50].mxu1  ;;  %6170 = vmatprep.mubr.msk.f32.mxu0 %vm1635_vm4, %v2012_v51  ;;  %v6899_v51 = vpack.c.bf16 %v2410_v22, %v2409_v17 }
 0x5c3   :  { %v1967_v23 = vpop.f32.mrb[51].mxu1  ;;  %6171 = vmatmul.mubr.msk.f32.gmra.mrb[50].mxu0 %vm1635_vm4, %v2013_v36  ;;  %v2015_v55 = vmul.f32 %v6143_v33, %v97_v27  ;;  %v2411_v36 = vld [vmem:[%s9098_s19 + $0x30] sm:$0xff]  ;;  %v2412_v33 = vld [vmem:[%s9098_s19 + $0x38] sm:$0xff] }
 0x5c4   :  { %v2014_v24 = vmul.f32 %v1967_v23, %v96_v26  ;;  %v6902_v23 = vpack.c.bf16 %v2412_v33, %v2411_v36 }
 0x5c6   :  { %v6146_v30 = vpop.f32.mrb[52].mxu1  ;;  %6173 = vmatprep.mubr.msk.f32.mxu0 %vm1635_vm4, %v2014_v24  ;;  %v2413_v24 = vld [vmem:[%s9098_s19 + $0x40] sm:$0xff] }
 0x5c7   :  { %v1977_v31 = vpop.f32.mrb[53].mxu1  ;;  %6174 = vmatmul.mubr.msk.f32.gmra.mrb[52].mxu0 %vm1635_vm4, %v2015_v55  ;;  %v2017_v32 = vmul.f32 %v6146_v30, %v99_v20  ;;  %v2405_v20 = vld [vmem:[%s9098_s19] sm:$0xff]  ;;  %v2414_v55 = vld [vmem:[%s9098_s19 + $0x48] sm:$0xff] }
 0x5c8   :  { %v2016_v57 = vmul.f32 %v1977_v31, %v98_v37  ;;  %v9145_v37 = vmov 0.0   ;;  %v6905_v30 = vpack.c.bf16 %v2414_v55, %v2413_v24  ;;  %v2415_v31 = vld [vmem:[%s9098_s19 + $0x50] sm:$0xff] }
 0x5c9   :  { %v1258_v24 = vld [vmem:[%s9099_s17 + $0x50] sm:$0xff] }
 0x5ca   :  { %v6149_v52 = vpop.f32.mrb[54].mxu1  ;;  %6176 = vmatprep.mubr.msk.f32.mxu0 %vm1635_vm4, %v2016_v57  ;;  %v2416_v57 = vld [vmem:[%s9098_s19 + $0x58] sm:$0xff] }
 0x5cb   :  { %v1987_v38 = vpop.f32.mrb[55].mxu1  ;;  %6177 = vmatmul.mubr.msk.f32.gmra.mrb[54].mxu0 %vm1635_vm4, %v2017_v32  ;;  %v2019_v0 = vmul.f32 %v6149_v52, %v101_v28  ;;  %v2407_v28 = vld [vmem:[%s9098_s19 + $0x10] sm:$0xff]  ;;  %v6908_v32 = vpack.c.bf16 %v2416_v57, %v2415_v31  ;;  %v2417_v52 = vld [vmem:[%s9098_s19 + $0x60] sm:$0xff] }
 0x5cc   :  { %v2018_v18 = vmul.f32 %v1987_v38, %v100_v25  ;;  %v2406_v25 = vld [vmem:[%s9098_s19 + $0x8] sm:$0xff] }
 0x5cd   :  { %v2418_v38 = vld [vmem:[%s9098_s19 + $0x68] sm:$0xff] }
 0x5ce   :  { %v6152_v34 = vpop.f32.mrb[56].mxu1  ;;  %6179 = vmatprep.mubr.msk.f32.mxu0 %vm1635_vm4, %v2018_v18  ;;  %v6911_v18 = vpack.c.bf16 %v2418_v38, %v2417_v52 }
 0x5cf   :  { %v1997_v26 = vpop.f32.mrb[57].mxu1  ;;  %6180 = vmatmul.mubr.msk.f32.gmra.mrb[56].mxu0 %vm1635_vm4, %v2019_v0  ;;  %v2021_v21 = vmul.f32 %v6152_v34, %v103_v35  ;;  %v2408_v35 = vld [vmem:[%s9098_s19 + $0x18] sm:$0xff]  ;;  %v1250_v34 = vld [vmem:[%s9099_s17 + $0x10] sm:$0xff] }
 0x5d0   :  { %v2020_v27 = vmul.f32 %v1997_v26, %v102_v59  ;;  %v6893_v59 = vpack.c.bf16 %v2406_v25, %v2405_v20  ;;  %v6896_v4 = vpack.c.bf16 %v2408_v35, %v2407_v28  ;;  %v1251_v0 = vld [vmem:[%s9099_s17 + $0x18] sm:$0xff]  ;;  %v1252_v25 = vld [vmem:[%s9099_s17 + $0x20] sm:$0xff] }
 0x5d1   :  { %v1267_v26 = vmul.f32 %v7891_v40, %v1251_v0  ;;  %v1268_v35 = vmul.f32 %v1252_v25, %v7903_v46  ;;  %v1255_v40 = vld [vmem:[%s9099_s17 + $0x38] sm:$0xff]  ;;  %v1256_v46 = vld [vmem:[%s9099_s17 + $0x40] sm:$0xff]  ;;  %v1261_v0 = vld [vmem:[%s9099_s17 + $0x68] sm:$0xff] }
 0x5d2   :  { %6182 = vmatprep.mubr.msk.f32.mxu0 %vm1635_vm4, %v2020_v27  ;;  %6894 = vmatpush3.bf16.msra.mxu0 %v6893_v59  ;;  %v1266_v27 = vmul.f32 %v1250_v34, %v7895_v42  ;;  %v1254_v42 = vld [vmem:[%s9099_s17 + $0x30] sm:$0xff]  ;;  %v1271_v17 = vmul.f32 %v7907_v48, %v1255_v40 }
 0x5d3   :  { %6183 = vmatmul.mubr.msk.f32.gmra.mrb[58].mxu0 %vm1635_vm4, %v2021_v21  ;;  %6895 = vmatprep.subr.bf16.mxu0 %v9146_v15  ;;  %v1253_v21 = vld [vmem:[%s9099_s17 + $0x28] sm:$0xff]  ;;  %v1286_v20 = vmul.f32 1.442695, %v1267_v26  ;;  %v1288_v22 = vmul.f32 1.442695, %v1268_v35 }
 0x5d4   :  { %6252 = vmatprep.mubr.msk.f32.mxu0 %vm7248_vm0, %v9145_v37  ;;  %v1284_v28 = vmul.f32 1.442695, %v1266_v27  ;;  %v1269_v59 = vmul.f32 %v7899_v44, %v1253_v21  ;;  %v1257_v44 = vld [vmem:[%s9099_s17 + $0x48] sm:$0xff]  ;;  %v1294_v36 = vmul.f32 1.442695, %v1271_v17 }
 0x5d5   :  { %7137 = vpow2.f32 %v1286_v20  ;;  %v1273_v33 = vmul.f32 %v7915_v56, %v1257_v44 }
 0x5d6   :  { %6897 = vmatpush3.bf16.msra.mxu0 %v6896_v4  ;;  %7139 = vpow2.f32 %v1284_v28  ;;  %v1290_v4 = vmul.f32 1.442695, %v1269_v59  ;;  %v1263_v59 = vld [vmem:[%s9099_s17 + $0x78] sm:$0xff] }
 0x5d7   :  { %6898 = vmatprep.subr.bf16.mxu0 %v9146_v15 }
 0x5d8   :  { %7141 = vpow2.f32 %v1290_v4 }
 0x5d9   :  { %7143 = vpow2.f32 %v1288_v22 }
 0x5da   :  { %6900 = vmatpush3.bf16.msra.mxu0 %v6899_v51  ;;  %v1270_v51 = vmul.f32 %v1254_v42, %v7911_v50  ;;  %v1272_v50 = vmul.f32 %v1256_v46, %v7919_v60  ;;  %7145 = vpow2.f32 %v1294_v36 }
 0x5db   :  { %6901 = vmatprep.subr.bf16.mxu0 %v9146_v15 }
 0x5dc   :  { %v1292_v48 = vmul.f32 1.442695, %v1270_v51  ;;  %v1296_v60 = vmul.f32 1.442695, %v1272_v50  ;;  %v1279_v51 = vmul.f32 %v7939_v11, %v1263_v59 }
 0x5de   :  { %6903 = vmatpush3.bf16.msra.mxu0 %v6902_v23  ;;  %v1259_v23 = vld [vmem:[%s9099_s17 + $0x58] sm:$0xff]  ;;  %7147 = vpow2.f32 %v1292_v48 }
 0x5df   :  { %6904 = vmatprep.subr.bf16.mxu0 %v9146_v15  ;;  %v7138_v56 = vpop.eup %7137 }
 0x5e0   :  { %v7140_v38 = vpop.eup %7139 }
 0x5e2   :  { %6906 = vmatpush3.bf16.msra.mxu0 %v6905_v30  ;;  %v1275_v30 = vmul.f32 %v7923_v62, %v1259_v23  ;;  %v7142_v40 = vpop.eup %7141 }
 0x5e3   :  { %6907 = vmatprep.subr.bf16.mxu0 %v9146_v15 }
 0x5e6   :  { %6909 = vmatpush3.bf16.msra.mxu0 %v6908_v32  ;;  %v1298_v32 = vmul.f32 1.442695, %v1273_v33 }
 0x5e7   :  { %6910 = vmatprep.subr.bf16.mxu0 %v9146_v15 }
 0x5e8   :  { %7149 = vpow2.f32 %v1298_v32 }
 0x5e9   :  { %7151 = vpow2.f32 %v1296_v60 }
 0x5ea   :  { %6912 = vmatpush3.bf16.msra.mxu0 %v6911_v18  ;;  %v1274_v18 = vmul.f32 %v1258_v24, %v7927_v1  ;;  %v1277_v1 = vmul.f32 %v7931_v3, %v1261_v0  ;;  %v7144_v3 = vpop.eup %7143 }
 0x5eb   :  { %6913 = vmatprep.subr.bf16.mxu0 %v9146_v15  ;;  %v7146_v48 = vpop.eup %7145 }
 0x5ec   :  { %v1300_v25 = vmul.f32 1.442695, %v1274_v18  ;;  %v1306_v22 = vmul.f32 1.442695, %v1277_v1 }
 0x66a   :  { %v6105_v55 = vpop.f32.mrb[28].mxu0 }
 0x66b   :  { %v8152_v31 = vmul.f32 %v6105_v55, %v7889_v39  ;;  %v1750_v57 = vpop.f32.mrb[29].mxu0  ;;  %v1260_v39 = vld [vmem:[%s9099_s17 + $0x60] sm:$0xff] }
 0x66c   :  { %v8155_v52 = vmul.f32 %v1750_v57, %v7893_v41  ;;  %v1302_v41 = vmul.f32 1.442695, %v1275_v30  ;;  %v1276_v28 = vmul.f32 %v1260_v39, %v7935_v8 }
 0x66d   :  { %v2220_v62 = vmul.f32 %v7138_v56, %v8152_v31 }
 0x66e   :  { %v2219_v34 = vmul.f32 %v7140_v38, %v8155_v52  ;;  %v6108_v26 = vpop.f32.mrb[30].mxu0  ;;  %7153 = vpow2.f32 %v1302_v41  ;;  %v1304_v36 = vmul.f32 1.442695, %v1276_v28 }
 0x66f   :  { %v1832_v27 = vmul.f32 %v6108_v26, %v7897_v43  ;;  %v1760_v21 = vpop.f32.mrb[31].mxu0  ;;  %v1262_v43 = vld [vmem:[%s9099_s17 + $0x70] sm:$0xff]  ;;  %7155 = vpow2.f32 %v1300_v25 }
 0x670   :  { %v1831_v20 = vmul.f32 %v1760_v21, %v7901_v45  ;;  %v1278_v33 = vmul.f32 %v1262_v43, %v7943_v14  ;;  %7157 = vpow2.f32 %v1306_v22 }
 0x671   :  { %v8173_v35 = vadd.f32 %v2220_v62, %v1832_v27  ;;  %7159 = vpow2.f32 %v1304_v36 }
 0x672   :  { %v6111_v42 = vpop.f32.mrb[32].mxu0  ;;  %v8178_v4 = vadd.f32 %v2219_v34, %v1831_v20  ;;  %v1308_v14 = vmul.f32 1.442695, %v1278_v33 }
 0x673   :  { %v1834_v45 = vmul.f32 %v6111_v42, %v7905_v47  ;;  %v1770_v17 = vpop.f32.mrb[33].mxu0  ;;  %v2230_v8 = vmul.f32 %v7142_v40, %v8173_v35  ;;  %v7148_v47 = vpop.eup %7147 }
 0x674   :  { %v1833_v44 = vmul.f32 %v1770_v17, %v7909_v49  ;;  %v2229_v46 = vmul.f32 %v7144_v3, %v8178_v4  ;;  %v1310_v49 = vmul.f32 1.442695, %v1279_v51  ;;  %v7150_v38 = vpop.eup %7149 }
 0x675   :  { %v8186_v23 = vadd.f32 %v2230_v8, %v1834_v45  ;;  %v7152_v0 = vpop.eup %7151 }
 0x676   :  { %v6114_v50 = vpop.f32.mrb[34].mxu0  ;;  %v8188_v24 = vadd.f32 %v2229_v46, %v1833_v44  ;;  %7161 = vpow2.f32 %v1310_v49 }
 0x677   :  { %v1836_v55 = vmul.f32 %v6114_v50, %v7913_v53  ;;  %v1780_v30 = vpop.f32.mrb[35].mxu0  ;;  %v2240_v11 = vmul.f32 %v7146_v48, %v8186_v23  ;;  %7163 = vpow2.f32 %v1308_v14 }
 0x678   :  { %v1835_v57 = vmul.f32 %v1780_v30, %v7917_v58  ;;  %v2239_v56 = vmul.f32 %v7148_v47, %v8188_v24  ;;  %v7154_v26 = vpop.eup %7153 }
 0x679   :  { %v8194_v32 = vadd.f32 %v2240_v11, %v1836_v55  ;;  %v7156_v1 = vpop.eup %7155 }
 0x67a   :  { %v6117_v60 = vpop.f32.mrb[36].mxu0  ;;  %v8196_v18 = vadd.f32 %v2239_v56, %v1835_v57  ;;  %v7158_v43 = vpop.eup %7157 }
 0x67b   :  { %v1838_v53 = vmul.f32 %v6117_v60, %v7921_v61  ;;  %v1790_v62 = vpop.f32.mrb[37].mxu0  ;;  %v2250_v39 = vmul.f32 %v7150_v38, %v8194_v32 }
 0x67c   :  { %v1837_v34 = vmul.f32 %v1790_v62, %v7925_v63  ;;  %v2249_v58 = vmul.f32 %v7152_v0, %v8196_v18  ;;  %v7160_v63 = vpop.eup %7159 }
 0x67d   :  { %v2254_v41 = vadd.f32 %v2250_v39, %v1838_v53 }
 0x67e   :  { %v6120_v27 = vpop.f32.mrb[38].mxu0  ;;  %v2253_v21 = vadd.f32 %v2249_v58, %v1837_v34 }
 0x67f   :  { %v1840_v20 = vmul.f32 %v6120_v27, %v7929_v2  ;;  %v1800_v25 = vpop.f32.mrb[39].mxu0  ;;  %v2260_v28 = vmul.f32 %v7154_v26, %v2254_v41 }
 0x680   :  { %v1839_v61 = vmul.f32 %v1800_v25, %v7933_v6  ;;  %v2259_v59 = vmul.f32 %v7156_v1, %v2253_v21  ;;  %v7162_v46 = vpop.eup %7161 }
 0x681   :  { %v2264_v40 = vadd.f32 %v2260_v28, %v1840_v20  ;;  %v7164_v33 = vpop.eup %7163 }
 0x682   :  { %v6123_v42 = vpop.f32.mrb[40].mxu0  ;;  %v2263_v3 = vadd.f32 %v2259_v59, %v1839_v61 }
 0x683   :  { %v1842_v45 = vmul.f32 %v6123_v42, %v7937_v9  ;;  %v1810_v17 = vpop.f32.mrb[41].mxu0  ;;  %v2270_v8 = vmul.f32 %v7158_v43, %v2264_v40 }
 0x684   :  { %v1841_v22 = vmul.f32 %v1810_v17, %v7941_v12  ;;  %v2269_v51 = vmul.f32 %v7160_v63, %v2263_v3 }
 0x685   :  { %v2274_v44 = vadd.f32 %v2270_v8, %v1842_v45  ;;  %v2419_v8 = vld [vmem:[%s9098_s19 + $0x70] sm:$0xff] }
 0x686   :  { %v6126_v2 = vpop.f32.mrb[42].mxu0  ;;  %v2273_v36 = vadd.f32 %v2269_v51, %v1841_v22  ;;  %v2420_v22 = vld [vmem:[%s9098_s19 + $0x78] sm:$0xff] }
 0x687   :  { %v1844_v6 = vmul.f32 %v6126_v2, %v7950_v16  ;;  %v1820_v48 = vpop.f32.mrb[43].mxu0  ;;  %v2280_v50 = vmul.f32 %v7162_v46, %v2274_v44  ;;  %v6914_v51 = vpack.c.bf16 %v2420_v22, %v2419_v8  ;;  %v5134_v22 = vld [vmem:[%s9141_s1 + $0x8] sm:$0xff] }
 0x688   :  { %v1843_v47 = vmul.f32 %v1820_v48, %v7957_v19  ;;  %v2279_v55 = vmul.f32 %v7164_v33, %v2273_v36  ;;  %v5105_v33 = vld [vmem:[%s9101_s18] ss:$0 sm:$0xff] }
 0x689   :  { %v2284_v30 = vadd.f32 %v2280_v50, %v1844_v6  ;;  %6915 = vmatpush3.bf16.msra.mxu0 %v6914_v51  ;;  %v2326_v48 = vmul.f32 %v5105_v33, %v7663_v29  ;;  %v5141_v33 = vld [vmem:[%s9089_s13 + $0x88] sm:$0xff] }
 0x68a   :  { %v6163_v11 = vpop.f32.mrb[44].mxu0  ;;  %v2283_v9 = vadd.f32 %v2279_v55, %v1843_v47  ;;  %6940 = vmatprep.subr.bf16.mxu0 %v9146_v15 }
 0x68b   :  { %v2304_v49 = vmul.f32 %v6163_v11, %v8152_v31  ;;  %v2136_v57 = vpop.f32.mrb[45].mxu0 }
 0x68c   :  { %v2303_v12 = vmul.f32 %v2136_v57, %v8155_v52 }
 0x68e   :  { %v6869_v56 = vpack.c.bf16 %v2304_v49, %v2303_v12  ;;  %v6166_v14 = vpop.f32.mrb[46].mxu0  ;;  %v7213_v49 = vld [vmem:[%s9136_s6] sm:$0xff] }
 0x68f   :  { %v2306_v38 = vmul.f32 %v6166_v14, %v8173_v35  ;;  %v2146_v60 = vpop.f32.mrb[47].mxu0 }
 0x690   :  { %v2305_v16 = vmul.f32 %v8178_v4, %v2146_v60  ;;  %6870 = vmatpush3.bf16.msra.mxu1 %v6869_v56  ;;  %v5113_v60 = vld [vmem:[%s9137_s0 + $0x48] sm:$0xff] }
 0x691   :  { %6871 = vmatprep.subr.bf16.mxu1 %v9146_v15 }
 0x692   :  { %v6872_v19 = vpack.c.bf16 %v2306_v38, %v2305_v16  ;;  %v6169_v0 = vpop.f32.mrb[48].mxu0  ;;  %v5112_v38 = vld [vmem:[%s9137_s0 + $0x40] sm:$0xff] }
 0x693   :  { %v2308_v53 = vmul.f32 %v6169_v0, %v8186_v23  ;;  %v2156_v62 = vpop.f32.mrb[49].mxu0  ;;  %v5121_v16 = vld [vmem:[%s9138_s26 + $0x40] sm:$0xff]  ;;  %v5122_v0 = vld [vmem:[%s9138_s26 + $0x48] sm:$0xff] }
 0x694   :  { %v2307_v31 = vmul.f32 %v8188_v24, %v2156_v62  ;;  %6873 = vmatpush3.bf16.msra.mxu1 %v6872_v19  ;;  %v6941_v19 = vpack.c.bf16 %v5113_v60, %v5112_v38  ;;  %v5114_v62 = vld [vmem:[%s9137_s0 + $0x50] sm:$0xff]  ;;  %v5163_v38 = vld [vmem:[%s9090_s15 + $0xa8] sm:$0xff] }
 0x695   :  { %6874 = vmatprep.subr.bf16.mxu1 %v9146_v15 }
 0x696   :  { %v6875_v52 = vpack.c.bf16 %v2308_v53, %v2307_v31  ;;  %v6172_v39 = vpop.f32.mrb[50].mxu0  ;;  %v6953_v53 = vpack.c.bf16 %v5122_v0, %v5121_v16  ;;  %v5115_v31 = vld [vmem:[%s9137_s0 + $0x58] sm:$0xff]  ;;  %v5146_v16 = vld [vmem:[%s9089_s13 + $0xb0] sm:$0xff] }
 0x697   :  { %v2310_v35 = vmul.f32 %v6172_v39, %v8194_v32  ;;  %v2166_v34 = vpop.f32.mrb[51].mxu0  ;;  %v6944_v39 = vpack.c.bf16 %v5115_v31, %v5114_v62  ;;  %v5165_v62 = vld [vmem:[%s9090_s15 + $0xb8] sm:$0xff] }
 0x698   :  { %v2309_v4 = vmul.f32 %v8196_v18, %v2166_v34  ;;  %6876 = vmatpush3.bf16.msra.mxu1 %v6875_v52  ;;  %v5123_v52 = vld [vmem:[%s9138_s26 + $0x50] sm:$0xff] }
 0x699   :  { %6877 = vmatprep.subr.bf16.mxu1 %v9146_v15 }
 0x69a   :  { %v6878_v58 = vpack.c.bf16 %v2310_v35, %v2309_v4  ;;  %v6175_v26 = vpop.f32.mrb[52].mxu0  ;;  %v5124_v35 = vld [vmem:[%s9138_s26 + $0x58] sm:$0xff]  ;;  %v5116_v4 = vld [vmem:[%s9137_s0 + $0x60] sm:$0xff] }
 0x69b   :  { %v2312_v27 = vmul.f32 %v6175_v26, %v2254_v41  ;;  %v2176_v23 = vpop.f32.mrb[53].mxu0  ;;  %v6956_v34 = vpack.c.bf16 %v5124_v35, %v5123_v52  ;;  %v5125_v26 = vld [vmem:[%s9138_s26 + $0x60] sm:$0xff] }
 0x69c   :  { %v2311_v1 = vmul.f32 %v2253_v21, %v2176_v23  ;;  %6879 = vmatpush3.bf16.msra.mxu1 %v6878_v58  ;;  %v5117_v58 = vld [vmem:[%s9137_s0 + $0x68] sm:$0xff]  ;;  %v5148_v52 = vld [vmem:[%s9089_s13 + $0xc0] sm:$0xff] }
 0x69d   :  { %6880 = vmatprep.subr.bf16.mxu1 %v9146_v15  ;;  %v5126_v23 = vld [vmem:[%s9138_s26 + $0x68] sm:$0xff] }
 0x69e   :  { %v6881_v24 = vpack.c.bf16 %v2312_v27, %v2311_v1  ;;  %v6178_v20 = vpop.f32.mrb[54].mxu0  ;;  %v6947_v27 = vpack.c.bf16 %v5117_v58, %v5116_v4  ;;  %v6959_v1 = vpack.c.bf16 %v5126_v23, %v5125_v26  ;;  %v5167_v4 = vld [vmem:[%s9090_s15 + $0xc8] sm:$0xff]  ;;  %v5150_v26 = vld [vmem:[%s9089_s13 + $0xd0] sm:$0xff] }
 0x69f   :  { %v2314_v25 = vmul.f32 %v6178_v20, %v2264_v40  ;;  %v2186_v28 = vpop.f32.mrb[55].mxu0  ;;  %v5119_v20 = vld [vmem:[%s9137_s0 + $0x78] sm:$0xff] }
 0x6a0   :  { %v2313_v61 = vmul.f32 %v2263_v3, %v2186_v28  ;;  %6882 = vmatpush3.bf16.msra.mxu1 %v6881_v24  ;;  %v108_v3 = vld [vmem:[%s9100_s5] sm:$0xff]  ;;  %v5118_v24 = vld [vmem:[%s9137_s0 + $0x70] sm:$0xff] }
 0x6a1   :  { %6883 = vmatprep.subr.bf16.mxu1 %v9146_v15  ;;  %v6950_v28 = vpack.c.bf16 %v5119_v20, %v5118_v24  ;;  %v5169_v24 = vld [vmem:[%s9090_s15 + $0xd8] sm:$0xff] }
 0x6a2   :  { %v6884_v32 = vpack.c.bf16 %v2314_v25, %v2313_v61  ;;  %v6181_v18 = vpop.f32.mrb[56].mxu0  ;;  %v5127_v25 = vld [vmem:[%s9138_s26 + $0x70] sm:$0xff]  ;;  %v5128_v61 = vld [vmem:[%s9138_s26 + $0x78] sm:$0xff] }
 0x6a3   :  { %v2316_v59 = vmul.f32 %v6181_v18, %v2274_v44  ;;  %v2196_v43 = vpop.f32.mrb[57].mxu0  ;;  %v2397_v44 = vsub.f32 0.0, %v7499_v54 }
 0x6a4   :  { %v2315_v42 = vmul.f32 %v2273_v36, %v2196_v43  ;;  %6885 = vmatpush3.bf16.msra.mxu1 %v6884_v32  ;;  %v6962_v32 = vpack.c.bf16 %v5128_v61, %v5127_v25  ;;  %v5152_v25 = vld [vmem:[%s9089_s13 + $0xe0] sm:$0xff] }
 0x6a5   :  { %6886 = vmatprep.subr.bf16.mxu1 %v9146_v15  ;;  %v2398_v46 = vmul.f32 1.442695, %v2397_v44 }
 0x6a6   :  { %v6887_v41 = vpack.c.bf16 %v2316_v59, %v2315_v42  ;;  %v6184_v21 = vpop.f32.mrb[58].mxu0 }
 0x6a7   :  { %v2318_v63 = vmul.f32 %v6184_v21, %v2284_v30  ;;  %v2206_v45 = vpop.f32.mrb[59].mxu0  ;;  %7165 = vpow2.f32 %v2398_v46  ;;  %v5136_v46 = vld [vmem:[%s9141_s1 + $0x10] sm:$0xff] }
 0x6a8   :  { %v2317_v17 = vmul.f32 %v2283_v9, %v2206_v45  ;;  %6888 = vmatpush3.bf16.msra.mxu1 %v6887_v41  ;;  %v5110_v41 = vld [vmem:[%s9139_s30 + $0x1] ss:$0 sm:$0xff] }
 0x6a9   :  { %6889 = vmatprep.subr.bf16.mxu1 %v9146_v15 }
 0x6aa   :  { %v6890_v40 = vpack.c.bf16 %v2318_v63, %v2317_v17  ;;  %v5111_v63 = vld [vmem:[%s9140_s23 + $0x1] ss:$0 sm:$0xff] }
 0x6ac   :  { %6891 = vmatpush3.bf16.msra.mxu1 %v6890_v40  ;;  %v2824_v40 = vld [vmem:[%s9141_s1] sm:$0xff] }
 0x6ad   :  { %6916 = vmatprep.subr.bf16.mxu1 %v9146_v15 }
 0x6af   :  { %6218 = vmatmul.mubr.f32.vlgmr.msra.gmra.mrb[58].mxu1 %v108_v3 }
 0x6b0   :  { %6918 = vmatpush3.bf16.msra.mxu1 %v7377_v5  ;;  %6271 = vmatprep.mubr.msk.f32.mxu1 %vm7248_vm0, %v9145_v37 }
 0x6b1   :  { %6919 = vmatprep.subr.bf16.mxu1 %v9146_v15  ;;  %v7166_v2 = vpop.eup %7165 }
 0x6b2   :  { %v2400_v36 = vadd.f32 1.0, %v7166_v2  ;;  %v5138_v2 = vld [vmem:[%s9141_s1 + $0x18] sm:$0xff] }
 0x6b4   :  { %6921 = vmatpush3.bf16.msra.mxu1 %v7386_v7  ;;  %7167 = vrcp.f32 %v2400_v36  ;;  %v5140_v36 = vld [vmem:[%s9089_s13 + $0x80] sm:$0xff] }
 0x6b5   :  { %6922 = vmatprep.subr.bf16.mxu1 %v9146_v15 }
 0x6b8   :  { %6924 = vmatpush3.bf16.msra.mxu1 %v7398_v10 }
 0x6b9   :  { %6925 = vmatprep.subr.bf16.mxu1 %v9146_v15 }
 0x6bc   :  { %6927 = vmatpush3.bf16.msra.mxu1 %v7410_v13 }
 0x6bd   :  { %6928 = vmatprep.subr.bf16.mxu1 %v9146_v15 }
 0x6be   :  { %v7168_v6 = vpop.eup %7167 }
 0x6bf   :  { %v2403_v47 = vmul.f32 %v7168_v6, %v7499_v54  ;;  %v6965_v6 = vpack.c.bf16 %v5141_v33, %v5140_v36 }
 0x782   :  { %v2393_v50 = vpop.f32.mrb[58].mxu1 }
 0x783   :  { %v2394_v55 = vadd.f32 %v2393_v50, %v2326_v48  ;;  %v6219_v30 = vpop.f32.mrb[59].mxu1  ;;  %v5158_v48 = vld [vmem:[%s9090_s15 + $0x80] sm:$0xff]  ;;  %v5159_v50 = vld [vmem:[%s9090_s15 + $0x88] sm:$0xff] }
 0x784   :  { %v5143_v30 = vld [vmem:[%s9089_s13 + $0x98] sm:$0xff] }
 0x785   :  { %v2404_v11 = vmul.f32 %v2403_v47, %v2394_v55  ;;  %v6989_v47 = vpack.c.bf16 %v5159_v50, %v5158_v48  ;;  %v5142_v55 = vld [vmem:[%s9089_s13 + $0x90] sm:$0xff] }
 0x787   :  { %6253 = vmatmul.mubr.f32.vlgmr.msra.gmra.mrb[60].mxu0 %v2404_v11  ;;  %v6968_v11 = vpack.c.bf16 %v5143_v30, %v5142_v55 }
 0x788   :  { %6309 = vmatprep.mubr.msk.f32.mxu0 %vm7248_vm0, %v9145_v37  ;;  %6942 = vmatpush3.bf16.msra.mxu0 %v6941_v19  ;;  %v5147_v19 = vld [vmem:[%s9089_s13 + $0xb8] sm:$0xff] }
 0x789   :  { %6943 = vmatprep.subr.bf16.mxu0 %v9146_v15  ;;  %v6974_v0 = vpack.c.bf16 %v5147_v19, %v5146_v16 }
 0x78c   :  { %6945 = vmatpush3.bf16.msra.mxu0 %v6944_v39  ;;  %v5149_v39 = vld [vmem:[%s9089_s13 + $0xc8] sm:$0xff] }
 0x78d   :  { %6946 = vmatprep.subr.bf16.mxu0 %v9146_v15  ;;  %v6977_v35 = vpack.c.bf16 %v5149_v39, %v5148_v52  ;;  %v5175_v52 = vld [vmem:[%s9093_s16 + $0x88] sm:$0xff] }
 0x790   :  { %6948 = vmatpush3.bf16.msra.mxu0 %v6947_v27  ;;  %v5151_v27 = vld [vmem:[%s9089_s13 + $0xd8] sm:$0xff] }
 0x791   :  { %6949 = vmatprep.subr.bf16.mxu0 %v9146_v15  ;;  %v6980_v23 = vpack.c.bf16 %v5151_v27, %v5150_v26  ;;  %v5178_v27 = vld [vmem:[%s9093_s16 + $0xa0] sm:$0xff] }
 0x794   :  { %6951 = vmatpush3.bf16.msra.mxu0 %v6950_v28  ;;  %v5153_v28 = vld [vmem:[%s9089_s13 + $0xe8] sm:$0xff] }
 0x795   :  { %6331 = vmatprep.subr.mxu0 %v9145_v37  ;;  %v6983_v61 = vpack.c.bf16 %v5153_v28, %v5152_v25  ;;  %v5181_v25 = vld [vmem:[%s9093_s16 + $0xb8] sm:$0xff] }
 0x85a   :  { %v2487_v9 = vpop.f32.mrb[60].mxu0 }
 0x85b   :  { %v8255_v57 = vadd.f32 %v7213_v49, %v2487_v9  ;;  %v6254_v12 = vpop.f32.mrb[61].mxu0  ;;  %v5160_v9 = vld [vmem:[%s9090_s15 + $0x90] sm:$0xff]  ;;  %v5161_v49 = vld [vmem:[%s9090_s15 + $0x98] sm:$0xff] }
 0x85c   :  { %v6992_v12 = vpack.c.bf16 %v5161_v49, %v5160_v9 }
 0x85d   :  { %9147 = vst [vmem:[#allocation7_spill] sm:$0xff] %v8255_v57  ;;  %6272 = vmatmul.mubr.msk.f32.vlgmr.msra.gmra.mrb[60].mxu1 %vm120_vm1, %v8255_v57 }
 0x85e   :  { %6930 = vmatpush3.bf16.msra.mxu1 %v7377_v5  ;;  %6290 = vmatprep.mubr.msk.f32.mxu1 %vm7248_vm0, %v9145_v37 }
 0x85f   :  { %6931 = vmatprep.subr.bf16.mxu1 %v9146_v15 }
 0x862   :  { %6933 = vmatpush3.bf16.msra.mxu1 %v7386_v7 }
 0x863   :  { %6934 = vmatprep.subr.bf16.mxu1 %v9146_v15 }
 0x866   :  { %6936 = vmatpush3.bf16.msra.mxu1 %v7398_v10 }
 0x867   :  { %6937 = vmatprep.subr.bf16.mxu1 %v9146_v15 }
 0x86a   :  { %6939 = vmatpush3.bf16.msra.mxu1 %v7410_v13 }
 0x86b   :  { %6952 = vmatprep.subr.bf16.mxu1 %v9146_v15 }
 0x930   :  { %v2564_v54 = vpop.f32.mrb[60].mxu1 }
 0x931   :  { %v2568_v29 = vsub.f32 %v8255_v57, %v2564_v54  ;;  %v6273_v56 = vpop.f32.mrb[61].mxu1  ;;  %v5144_v54 = vld [vmem:[%s9089_s13 + $0xa0] sm:$0xff] }
 0x933   :  { %v2569_v14 = vmul.f32 %v2568_v29, %v2568_v29 }
 0x935   :  { %6291 = vmatmul.mubr.msk.f32.vlgmr.msra.gmra.mrb[62].mxu1 %vm120_vm1, %v2569_v14  ;;  %v5162_v14 = vld [vmem:[%s9090_s15 + $0xa0] sm:$0xff] }
 0x936   :  { %6328 = vmatprep.mubr.msk.f32.mxu1 %vm7248_vm0, %v9145_v37  ;;  %6954 = vmatpush3.bf16.msra.mxu1 %v6953_v53  ;;  %v6995_v60 = vpack.c.bf16 %v5163_v38, %v5162_v14  ;;  %v5164_v53 = vld [vmem:[%s9090_s15 + $0xb0] sm:$0xff] }
 0x937   :  { %6955 = vmatprep.subr.bf16.mxu1 %v9146_v15  ;;  %v6998_v31 = vpack.c.bf16 %v5165_v62, %v5164_v53 }
 0x93a   :  { %6957 = vmatpush3.bf16.msra.mxu1 %v6956_v34  ;;  %v5166_v34 = vld [vmem:[%s9090_s15 + $0xc0] sm:$0xff] }
 0x93b   :  { %6958 = vmatprep.subr.bf16.mxu1 %v9146_v15  ;;  %v7001_v58 = vpack.c.bf16 %v5167_v4, %v5166_v34  ;;  %v5176_v4 = vld [vmem:[%s9093_s16 + $0x90] sm:$0xff] }
 0x93e   :  { %6960 = vmatpush3.bf16.msra.mxu1 %v6959_v1  ;;  %v5168_v1 = vld [vmem:[%s9090_s15 + $0xd0] sm:$0xff] }
 0x93f   :  { %6961 = vmatprep.subr.bf16.mxu1 %v9146_v15  ;;  %v7004_v20 = vpack.c.bf16 %v5169_v24, %v5168_v1  ;;  %v8524_v1 = vld [vmem:[%s9094_s2] sm:$0xff] }
 0x942   :  { %6963 = vmatpush3.bf16.msra.mxu1 %v6962_v32  ;;  %v5170_v32 = vld [vmem:[%s9090_s15 + $0xe0] sm:$0xff] }
 0x943   :  { %6336 = vmatprep.subr.mxu1 %v9145_v37 }
 0xa08   :  { %v2639_v18 = vpop.f32.mrb[62].mxu1 }
 0xa09   :  { %v2640_v59 = vadd.f32 1e-05, %v2639_v18  ;;  %v6292_v43 = vpop.f32.mrb[63].mxu1  ;;  %v5171_v18 = vld [vmem:[%s9090_s15 + $0xe8] sm:$0xff] }
 0xa0a   :  { %v5154_v43 = vld [vmem:[%s9089_s13 + $0xf0] sm:$0xff] }
 0xa0b   :  { %7169 = vrsqrt.f32 %v2640_v59  ;;  %v7007_v59 = vpack.c.bf16 %v5171_v18, %v5170_v32  ;;  %v5183_v32 = vld [vmem:[%s9093_s16 + $0xc8] sm:$0xff] }
 0xa15   :  { %v7170_v42 = vpop.eup %7169 }
 0xa16   :  { %v2644_v21 = vmul.f32 %v7170_v42, %v2568_v29  ;;  %v5145_v29 = vld [vmem:[%s9089_s13 + $0xa8] sm:$0xff]  ;;  %v5155_v42 = vld [vmem:[%s9089_s13 + $0xf8] sm:$0xff] }
 0xa17   :  { %v6971_v56 = vpack.c.bf16 %v5145_v29, %v5144_v54 }
 0xa18   :  { %v2651_v45 = vmul.f32 %v5110_v41, %v2644_v21  ;;  %v6986_v41 = vpack.c.bf16 %v5155_v42, %v5154_v43  ;;  %v5172_v21 = vld [vmem:[%s9090_s15 + $0xf0] sm:$0xff]  ;;  %v5185_v43 = vld [vmem:[%s9093_s16 + $0xd8] sm:$0xff] }
 0xa1a   :  { %v2658_v17 = vadd.f32 %v5111_v63, %v2651_v45  ;;  %v5173_v63 = vld [vmem:[%s9090_s15 + $0xf8] sm:$0xff] }
 0xa1b   :  { %v7010_v45 = vpack.c.bf16 %v5173_v63, %v5172_v21  ;;  %v5187_v21 = vld [vmem:[%s9093_s16 + $0xe8] sm:$0xff] }
 0xa1c   :  { %6310 = vmatmul.mubr.msk.f32.vlgmr.msra.gmra.mrb[62].mxu0 %vm120_vm1, %v2658_v17  ;;  %6329 = vmatmul.mubr.msk.f32.vlgmr.msra.gmra.mrb[64].mxu1 %vm120_vm1, %v2658_v17  ;;  %v5130_v17 = vld [vmem:[%s9091_s11 + $0x4] sm:$0xf] }
 0xa1d   :  { %6333 = vmatprep.mubr.msk.f32.mxu0 %vm7248_vm0, %v9145_v37  ;;  %6338 = vmatprep.mubr.msk.f32.mxu1 %vm7248_vm0, %v9145_v37 }
 0xaef   :  { %v2737_v3 = vpop.f32.mrb[62].mxu0  ;;  %v8344_v8 = vpop.f32.mrb[64].mxu1 }
 0xaf0   :  { %v6311_v51 = vpop.f32.mrb[63].mxu0  ;;  %v6330_v44 = vpop.f32.mrb[65].mxu1  ;;  %6332 = vmatpush3.msra.mxu0 %v2737_v3  ;;  %6337 = vmatpush3.msra.mxu1 %v2737_v3 }
 0xaf1   :  { %6334 = vmatmul.mubr.msk.f32.vlgmr.msra.gmra.mrb[64].mxu0 %vm447_vm2, %v2824_v40  ;;  %6341 = vmatprep.subr.mxu0 %v9145_v37  ;;  %v9148_v40 = vld [vmem:[#allocation4_spill] sm:$0xff] }
 0xaf2   :  { %6346 = vmatprep.subr.mxu1 %v9145_v37  ;;  %6339 = vmatmul.mubr.msk.f32.vlgmr.msra.gmra.mrb[66].mxu1 %vm447_vm2, %v5134_v22  ;;  %v9150_v51 = vsub.s32 1, %v9148_v40  ;;  %v9151_v48 = vsub.s32 2, %v9148_v40  ;;  %v9152_v30 = vsub.s32 3, %v9148_v40 }
 0xaf3   :  { %6342 = vmatpush3.msra.mxu0 %v2737_v3  ;;  %6347 = vmatpush3.msra.mxu1 %v2737_v3  ;;  %v9149_v3 = vsub.s32 0, %v9148_v40 }
 0xaf4   :  { %6343 = vmatprep.mubr.msk.f32.mxu0 %vm7248_vm0, %v9145_v37  ;;  %6348 = vmatprep.mubr.msk.f32.mxu1 %vm7248_vm0, %v9145_v37  ;;  %v2987_v44 = vrot.slane %v5130_v17, %v9150_v51  ;;  %v3067_v50 = vrot.slane %v5130_v17, %v9151_v48 }
 0xaf5   :  { %6344 = vmatmul.mubr.msk.f32.vlgmr.msra.gmra.mrb[66].mxu0 %vm447_vm2, %v5136_v46  ;;  %6964 = vmatprep.subr.bf16.mxu0 %v9146_v15  ;;  %v2901_v22 = vrot.slane %v5130_v17, %v9149_v3  ;;  %v5133_v46 = vld [vmem:[%s9092_s12 + $0x1] ss:$0 sm:$0xff] }
 0xaf6   :  { %6349 = vmatmul.mubr.msk.f32.vlgmr.msra.gmra.mrb[68].mxu1 %vm447_vm2, %v5138_v2  ;;  %6988 = vmatprep.subr.bf16.mxu1 %v9146_v15  ;;  %v5157_v3 = vld [vmem:[%s9095_s14 + $0x1] ss:$0 sm:$0xff] }
 0xaf7   :  { %6383 = vmatprep.mubr.msk.f32.mxu0 %vm7248_vm0, %v9145_v37  ;;  %6418 = vmatprep.mubr.msk.f32.mxu1 %vm7248_vm0, %v9145_v37 }
 0xaf8   :  { %6966 = vmatpush3.bf16.msra.mxu0 %v6965_v6  ;;  %6990 = vmatpush3.bf16.msra.mxu1 %v6989_v47 }
 0xaf9   :  { %6967 = vmatprep.subr.bf16.mxu0 %v9146_v15  ;;  %6991 = vmatprep.subr.bf16.mxu1 %v9146_v15 }
 0xafc   :  { %6969 = vmatpush3.bf16.msra.mxu0 %v6968_v11  ;;  %6993 = vmatpush3.bf16.msra.mxu1 %v6992_v12  ;;  %v3147_v11 = vrot.slane %v5130_v17, %v9152_v30  ;;  %v5189_v17 = vld [vmem:[%s9093_s16 + $0xf8] sm:$0xff] }
 0xafd   :  { %6970 = vmatprep.subr.bf16.mxu0 %v9146_v15  ;;  %6994 = vmatprep.subr.bf16.mxu1 %v9146_v15 }
 0xb00   :  { %6972 = vmatpush3.bf16.msra.mxu0 %v6971_v56  ;;  %6996 = vmatpush3.bf16.msra.mxu1 %v6995_v60 }
 0xb01   :  { %6973 = vmatprep.subr.bf16.mxu0 %v9146_v15  ;;  %6997 = vmatprep.subr.bf16.mxu1 %v9146_v15 }
 0xb04   :  { %6975 = vmatpush3.bf16.msra.mxu0 %v6974_v0  ;;  %6999 = vmatpush3.bf16.msra.mxu1 %v6998_v31  ;;  %v5174_v31 = vld [vmem:[%s9093_s16 + $0x80] sm:$0xff] }
 0xb05   :  { %6976 = vmatprep.subr.bf16.mxu0 %v9146_v15  ;;  %7000 = vmatprep.subr.bf16.mxu1 %v9146_v15 }
 0xb08   :  { %6978 = vmatpush3.bf16.msra.mxu0 %v6977_v35  ;;  %7002 = vmatpush3.bf16.msra.mxu1 %v7001_v58  ;;  %v7013_v35 = vpack.c.bf16 %v5175_v52, %v5174_v31  ;;  %v5177_v58 = vld [vmem:[%s9093_s16 + $0x98] sm:$0xff]  ;;  %v7227_v31 = vld [vmem:[%s9094_s2 + $0x68] sm:$0xff]  ;;  %v7228_v52 = vld [vmem:[%s9094_s2 + $0x70] sm:$0xff] }
 0xb09   :  { %6979 = vmatprep.subr.bf16.mxu0 %v9146_v15  ;;  %7003 = vmatprep.subr.bf16.mxu1 %v9146_v15  ;;  %v7016_v26 = vpack.c.bf16 %v5177_v58, %v5176_v4 }
 0xb0c   :  { %6981 = vmatpush3.bf16.msra.mxu0 %v6980_v23  ;;  %7005 = vmatpush3.bf16.msra.mxu1 %v7004_v20  ;;  %v5179_v23 = vld [vmem:[%s9093_s16 + $0xa8] sm:$0xff]  ;;  %v5180_v20 = vld [vmem:[%s9093_s16 + $0xb0] sm:$0xff] }
 0xb0d   :  { %6982 = vmatprep.subr.bf16.mxu0 %v9146_v15  ;;  %7006 = vmatprep.subr.bf16.mxu1 %v9146_v15  ;;  %v7019_v24 = vpack.c.bf16 %v5179_v23, %v5178_v27  ;;  %v7022_v28 = vpack.c.bf16 %v5181_v25, %v5180_v20 }
 0xb10   :  { %6984 = vmatpush3.bf16.msra.mxu0 %v6983_v61  ;;  %7008 = vmatpush3.bf16.msra.mxu1 %v7007_v59  ;;  %v5182_v61 = vld [vmem:[%s9093_s16 + $0xc0] sm:$0xff]  ;;  %v5184_v59 = vld [vmem:[%s9093_s16 + $0xd0] sm:$0xff] }
 0xb11   :  { %6985 = vmatprep.subr.bf16.mxu0 %v9146_v15  ;;  %7009 = vmatprep.subr.bf16.mxu1 %v9146_v15  ;;  %v7025_v18 = vpack.c.bf16 %v5183_v32, %v5182_v61  ;;  %v7028_v42 = vpack.c.bf16 %v5185_v43, %v5184_v59 }
 0xb14   :  { %6987 = vmatpush3.bf16.msra.mxu0 %v6986_v41  ;;  %7011 = vmatpush3.bf16.msra.mxu1 %v7010_v45  ;;  %v5186_v41 = vld [vmem:[%s9093_s16 + $0xe0] sm:$0xff]  ;;  %v5188_v45 = vld [vmem:[%s9093_s16 + $0xf0] sm:$0xff] }
 0xb15   :  { %7012 = vmatprep.subr.bf16.mxu0 %v9146_v15  ;;  %v7031_v63 = vpack.c.bf16 %v5187_v21, %v5186_v41  ;;  %v7034_v40 = vpack.c.bf16 %v5189_v17, %v5188_v45 }
 0xbc4   :  { %v2894_v2 = vpop.f32.mrb[64].mxu0 }
 0xbc5   :  { %v2902_v36 = vmul.f32 %v2901_v22, %v2894_v2  ;;  %v6335_v33 = vpop.f32.mrb[65].mxu0  ;;  %v2980_v6 = vpop.f32.mrb[66].mxu1 }
 0xbc6   :  { %v2988_v47 = vmul.f32 %v2987_v44, %v2980_v6  ;;  %v6340_v55 = vpop.f32.mrb[67].mxu1 }
 0xbc7   :  { %v2909_v9 = vadd.f32 %v5133_v46, %v2902_v36 }
 0xbc8   :  { %v3060_v49 = vpop.f32.mrb[66].mxu0 }
 0xbc9   :  { %v2989_v12 = vadd.f32 %v2988_v47, %v2909_v9  ;;  %v3068_v54 = vmul.f32 %v3067_v50, %v3060_v49  ;;  %v6345_v29 = vpop.f32.mrb[67].mxu0  ;;  %v3140_v56 = vpop.f32.mrb[68].mxu1  ;;  %v8574_v9 = vld [vmem:[%s9094_s2 + $0x8] sm:$0xff]  ;;  %v8581_v49 = vld [vmem:[%s9094_s2 + $0x10] sm:$0xff] }
 0xbca   :  { %v3148_v14 = vmul.f32 %v3147_v11, %v3140_v56  ;;  %v6350_v38 = vpop.f32.mrb[69].mxu1  ;;  %v8598_v29 = vld [vmem:[%s9094_s2 + $0x20] sm:$0xff]  ;;  %v9155_v56 = vld [vmem:[#allocation6_spill] sm:$0xff] }
 0xbcb   :  { %v3069_v60 = vadd.f32 %v3068_v54, %v2989_v12  ;;  %v8590_v12 = vld [vmem:[%s9094_s2 + $0x18] sm:$0xff]  ;;  %v9154_v54 = vld [vmem:[#allocation5_spill] sm:$0xff]  ;;  %v7220_v38 = vld [vmem:[%s9094_s2 + $0x30] sm:$0xff] }
 0xbcd   :  { %v3149_v16 = vadd.f32 %v3148_v14, %v3069_v60  ;;  %v7219_v14 = vld [vmem:[%s9094_s2 + $0x28] sm:$0xff]  ;;  %v7221_v60 = vld [vmem:[%s9094_s2 + $0x38] sm:$0xff] }
 0xbcf   :  { %v3150_v19 = vsub.f32 0.0, %v3149_v16 }
 0xbd1   :  { %v3151_v0 = vmul.f32 1.442695, %v3150_v19  ;;  %v7223_v19 = vld [vmem:[%s9094_s2 + $0x48] sm:$0xff] }
 0xbd3   :  { %7171 = vpow2.f32 %v3151_v0  ;;  %v7224_v0 = vld [vmem:[%s9094_s2 + $0x50] sm:$0xff] }
 0xbdd   :  { %v7172_v53 = vpop.eup %7171 }
 0xbde   :  { %v3153_v62 = vadd.f32 1.0, %v7172_v53  ;;  %v7225_v53 = vld [vmem:[%s9094_s2 + $0x58] sm:$0xff] }
 0xbe0   :  { %7173 = vrcp.f32 %v3153_v62  ;;  %v7226_v62 = vld [vmem:[%s9094_s2 + $0x60] sm:$0xff] }
 0xbea   :  { %v7174_v39 = vpop.eup %7173 }
 0xbeb   :  { %v8502_v34 = vmul.f32 %v7174_v39, %v3149_v16  ;;  %v7222_v16 = vld [vmem:[%s9094_s2 + $0x40] sm:$0xff]  ;;  %v7229_v39 = vld [vmem:[%s9094_s2 + $0x78] sm:$0xff] }
 0xbed   :  { %9153 = vst [vmem:[#allocation4_spill] sm:$0xff] %v8502_v34  ;;  %6384 = vmatmul.mubr.f32.vlgmr.msra.gmra.mrb[68].mxu0 %v8502_v34  ;;  %6419 = vmatmul.mubr.f32.vlgmr.msra.gmra.mrb[70].mxu1 %v8502_v34 }
 0xbee   :  { %7014 = vmatpush3.bf16.msra.mxu0 %v7013_v35  ;;  %6453 = vmatprep.mubr.msk.f32.mxu0 %vm7248_vm0, %v9145_v37 }
 0xbef   :  { %7015 = vmatprep.subr.bf16.mxu0 %v9146_v15  ;;  %6458 = vmatprep.mubr.msk.f32.mxu1 %vm447_vm2, %v8524_v1 }
 0xbf2   :  { %7017 = vmatpush3.bf16.msra.mxu0 %v7016_v26 }
 0xbf3   :  { %7018 = vmatprep.subr.bf16.mxu0 %v9146_v15 }
 0xbf6   :  { %7020 = vmatpush3.bf16.msra.mxu0 %v7019_v24 }
 0xbf7   :  { %7021 = vmatprep.subr.bf16.mxu0 %v9146_v15 }
 0xbfa   :  { %7023 = vmatpush3.bf16.msra.mxu0 %v7022_v28 }
 0xbfb   :  { %7024 = vmatprep.subr.bf16.mxu0 %v9146_v15 }
 0xbfe   :  { %7026 = vmatpush3.bf16.msra.mxu0 %v7025_v18 }
 0xbff   :  { %7027 = vmatprep.subr.bf16.mxu0 %v9146_v15 }
 0xc02   :  { %7029 = vmatpush3.bf16.msra.mxu0 %v7028_v42 }
 0xc03   :  { %7030 = vmatprep.subr.bf16.mxu0 %v9146_v15 }
 0xc06   :  { %7032 = vmatpush3.bf16.msra.mxu0 %v7031_v63 }
 0xc07   :  { %7033 = vmatprep.subr.bf16.mxu0 %v9146_v15 }
 0xc0a   :  { %7035 = vmatpush3.bf16.msra.mxu0 %v7034_v40 }
 0xc0d   :  { %6454 = vmatmul.mubr.f32.vlgmr.msra.gmra.mrb[70].mxu0 %v8502_v34 }
 0xc0e   :  { %6484 = vmatprep.mubr.msk.f32.mxu0 %vm447_vm2, %v8524_v1 }
 0xcc0   :  { %v3248_v22 = vpop.f32.mrb[68].mxu0  ;;  %v3342_v51 = vpop.f32.mrb[70].mxu1 }
 0xcc1   :  { %v3249_v44 = vadd.f32 %v5157_v3, %v3248_v22  ;;  %v6385_v46 = vpop.f32.mrb[69].mxu0  ;;  %v6420_v2 = vpop.f32.mrb[71].mxu1 }
 0xcc3   :  { %v3253_v36 = vmul.f32 1.442695, %v3249_v44  ;;  %vm3252_vm5 = vcmp.gt.f32.partialorder %v3249_v44, 20.0 }
 0xcc5   :  { %7175 = vpow2.f32 %v3253_v36 }
 0xccf   :  { %v7176_v33 = vpop.eup %7175 }
 0xcd0   :  { %v3255_v6 = vadd.f32 1.0, %v7176_v33 }
 0xcd2   :  { %7177 = vlog2.f32 %v3255_v6 }
 0xcdc   :  { %v7178_v48 = vpop.eup %7177 }
 0xcdd   :  { %v3257_v50 = vmul.f32 0.6931472, %v7178_v48 }
 0xcdf   :  { %v3258_v47 = vsel %vm3252_vm5, %v3249_v44, %v3257_v50 }
 0xce0   :  { %v3429_v55 = vpop.f32.mrb[70].mxu0  ;;  %6456 = vmatprep.subr.mxu1 %v3258_v47  ;;  %v3659_v30 = vmul.f32 %v3258_v47, %v8502_v34 }
 0xce1   :  { %v6455_v11 = vpop.f32.mrb[71].mxu0  ;;  %6457 = vmatpush3.msra.mxu1 %v3258_v47  ;;  %v8775_v47 = vld [vmem:[%s9097_s3] sm:$0xff] }
 0xce2   :  { %6459 = vmatmul.mubr.msk.f32.vlgmr.msra.gmra.mrb[72].mxu1 %vm447_vm2, %v8574_v9  ;;  %6482 = vmatprep.subr.mxu0 %v3659_v30 }
 0xce3   :  { %6508 = vmatprep.subr.mxu1 %v3342_v51  ;;  %6483 = vmatpush3.msra.mxu0 %v3659_v30  ;;  %v8781_v30 = vld [vmem:[%s9097_s3 + $0x8] sm:$0xff] }
 0xce4   :  { %6509 = vmatpush3.msra.mxu1 %v3342_v51  ;;  %6461 = vmatprep.mubr.msk.f32.mxu1 %vm447_vm2, %v8581_v49 }
 0xce5   :  { %6566 = vmatprep.subr.mxu1 %v3429_v55  ;;  %6485 = vmatmul.mubr.msk.f32.vlgmr.msra.gmra.mrb[72].mxu0 %vm447_vm2, %v8574_v9 }
 0xce6   :  { %6462 = vmatmul.mubr.msk.f32.gmra.mrb[74].mxu1 %vm447_vm2, %v8590_v12  ;;  %7037 = vmatprep.subr.bf16.mxu0 %v9154_v54 }
 0xce7   :  { %6464 = vmatprep.mubr.msk.f32.mxu1 %vm447_vm2, %v8598_v29  ;;  %6487 = vmatprep.mubr.msk.f32.mxu0 %vm447_vm2, %v8581_v49 }
 0xce8   :  { %7039 = vmatpush3.bf16.msra.mxu0 %v9154_v54 }
 0xce9   :  { %6488 = vmatmul.mubr.msk.f32.gmra.mrb[74].mxu0 %vm447_vm2, %v8590_v12  ;;  %7041 = vmatprep.subr.bf16.mxu0 %v9155_v56 }
 0xcea   :  { %6465 = vmatmul.mubr.msk.f32.gmra.mrb[76].mxu1 %vm447_vm2, %v7219_v14  ;;  %6490 = vmatprep.mubr.msk.f32.mxu0 %vm447_vm2, %v8598_v29 }
 0xceb   :  { %6467 = vmatprep.mubr.msk.f32.mxu1 %vm447_vm2, %v7220_v38 }
 0xcec   :  { %7043 = vmatpush3.bf16.msra.mxu0 %v9155_v56 }
 0xced   :  { %6491 = vmatmul.mubr.msk.f32.gmra.mrb[76].mxu0 %vm447_vm2, %v7219_v14  ;;  %7045 = vmatprep.subr.bf16.mxu0 %v9154_v54 }
 0xcee   :  { %6468 = vmatmul.mubr.msk.f32.gmra.mrb[78].mxu1 %vm447_vm2, %v7221_v60  ;;  %6493 = vmatprep.mubr.msk.f32.mxu0 %vm447_vm2, %v7220_v38 }
 0xcef   :  { %6470 = vmatprep.mubr.msk.f32.mxu1 %vm447_vm2, %v7222_v16 }
 0xcf1   :  { %6494 = vmatmul.mubr.msk.f32.gmra.mrb[78].mxu0 %vm447_vm2, %v7221_v60 }
 0xcf2   :  { %6471 = vmatmul.mubr.msk.f32.gmra.mrb[80].mxu1 %vm447_vm2, %v7223_v19  ;;  %6496 = vmatprep.mubr.msk.f32.mxu0 %vm447_vm2, %v7222_v16 }
 0xcf3   :  { %6473 = vmatprep.mubr.msk.f32.mxu1 %vm447_vm2, %v7224_v0 }
 0xcf5   :  { %6497 = vmatmul.mubr.msk.f32.gmra.mrb[80].mxu0 %vm447_vm2, %v7223_v19 }
 0xcf6   :  { %6474 = vmatmul.mubr.msk.f32.gmra.mrb[82].mxu1 %vm447_vm2, %v7225_v53  ;;  %6499 = vmatprep.mubr.msk.f32.mxu0 %vm447_vm2, %v7224_v0 }
 0xcf7   :  { %6476 = vmatprep.mubr.msk.f32.mxu1 %vm447_vm2, %v7226_v62 }
 0xcf9   :  { %6500 = vmatmul.mubr.msk.f32.gmra.mrb[82].mxu0 %vm447_vm2, %v7225_v53 }
 0xcfa   :  { %6477 = vmatmul.mubr.msk.f32.gmra.mrb[84].mxu1 %vm447_vm2, %v7227_v31  ;;  %6502 = vmatprep.mubr.msk.f32.mxu0 %vm447_vm2, %v7226_v62 }
 0xcfb   :  { %6479 = vmatprep.mubr.msk.f32.mxu1 %vm447_vm2, %v7228_v52 }
 0xcfd   :  { %6503 = vmatmul.mubr.msk.f32.gmra.mrb[84].mxu0 %vm447_vm2, %v7227_v31 }
 0xcfe   :  { %6480 = vmatmul.mubr.msk.f32.gmra.mrb[86].mxu1 %vm447_vm2, %v7229_v39  ;;  %6505 = vmatprep.mubr.msk.f32.mxu0 %vm447_vm2, %v7228_v52 }
 0xcff   :  { %6510 = vmatprep.mubr.msk.f32.mxu1 %vm447_vm2, %v8524_v1 }
 0xd01   :  { %6506 = vmatmul.mubr.msk.f32.gmra.mrb[86].mxu0 %vm447_vm2, %v7229_v39 }
 0xd02   :  { %6511 = vmatmul.mubr.msk.f32.vlgmr.msra.gmra.mrb[88].mxu1 %vm447_vm2, %v8574_v9 }
 0xd03   :  { %6567 = vmatpush3.msra.mxu1 %v3429_v55  ;;  %6513 = vmatprep.mubr.msk.f32.mxu1 %vm447_vm2, %v8581_v49 }
 0xd04   :  { %7052 = vmatprep.subr.bf16.mxu1 %v9146_v15 }
 0xd06   :  { %6514 = vmatmul.mubr.msk.f32.gmra.mrb[90].mxu1 %vm447_vm2, %v8590_v12 }
 0xd07   :  { %6516 = vmatprep.mubr.msk.f32.mxu1 %vm447_vm2, %v8598_v29 }
 0xd0a   :  { %6517 = vmatmul.mubr.msk.f32.gmra.mrb[92].mxu1 %vm447_vm2, %v7219_v14 }
 0xd0b   :  { %6519 = vmatprep.mubr.msk.f32.mxu1 %vm447_vm2, %v7220_v38 }
 0xd0e   :  { %6520 = vmatmul.mubr.msk.f32.gmra.mrb[94].mxu1 %vm447_vm2, %v7221_v60 }
 0xd0f   :  { %6522 = vmatprep.mubr.msk.f32.mxu1 %vm447_vm2, %v7222_v16 }
 0xd12   :  { %6523 = vmatmul.mubr.msk.f32.gmra.mrb[96].mxu1 %vm447_vm2, %v7223_v19 }
 0xd13   :  { %6525 = vmatprep.mubr.msk.f32.mxu1 %vm447_vm2, %v7224_v0 }
 0xd16   :  { %6526 = vmatmul.mubr.msk.f32.gmra.mrb[98].mxu1 %vm447_vm2, %v7225_v53 }
 0xd17   :  { %6528 = vmatprep.mubr.msk.f32.mxu1 %vm447_vm2, %v7226_v62 }
 0xd1a   :  { %6529 = vmatmul.mubr.msk.f32.gmra.mrb[100].mxu1 %vm447_vm2, %v7227_v31 }
 0xd1b   :  { %6531 = vmatprep.mubr.msk.f32.mxu1 %vm447_vm2, %v7228_v52 }
 0xd1e   :  { %6532 = vmatmul.mubr.msk.f32.gmra.mrb[102].mxu1 %vm447_vm2, %v7229_v39 }
 0xd1f   :  { %6568 = vmatprep.mubr.msk.f32.mxu1 %vm447_vm2, %v8524_v1 }
 0xd22   :  { %6569 = vmatmul.mubr.msk.f32.vlgmr.msra.gmra.mrb[104].mxu1 %vm447_vm2, %v8574_v9 }
 0xd23   :  { %6571 = vmatprep.mubr.msk.f32.mxu1 %vm447_vm2, %v8581_v49 }
 0xd26   :  { %6572 = vmatmul.mubr.msk.f32.gmra.mrb[106].mxu1 %vm447_vm2, %v8590_v12  ;;  %v8789_v12 = vld [vmem:[%s9097_s3 + $0x10] sm:$0xff] }
 0xd27   :  { %6574 = vmatprep.mubr.msk.f32.mxu1 %vm447_vm2, %v8598_v29 }
 0xd2a   :  { %6575 = vmatmul.mubr.msk.f32.gmra.mrb[108].mxu1 %vm447_vm2, %v7219_v14  ;;  %v8796_v14 = vld [vmem:[%s9097_s3 + $0x18] sm:$0xff] }
 0xd2b   :  { %6577 = vmatprep.mubr.msk.f32.mxu1 %vm447_vm2, %v7220_v38 }
 0xd2e   :  { %6578 = vmatmul.mubr.msk.f32.gmra.mrb[110].mxu1 %vm447_vm2, %v7221_v60 }
 0xd2f   :  { %6580 = vmatprep.mubr.msk.f32.mxu1 %vm447_vm2, %v7222_v16 }
 0xd32   :  { %6581 = vmatmul.mubr.msk.f32.gmra.mrb[112].mxu1 %vm447_vm2, %v7223_v19  ;;  %v7234_v19 = vld [vmem:[%s9097_s3 + $0x20] sm:$0xff] }
 0xd33   :  { %6583 = vmatprep.mubr.msk.f32.mxu1 %vm447_vm2, %v7224_v0  ;;  %v7235_v0 = vld [vmem:[%s9097_s3 + $0x28] sm:$0xff] }
 0xd36   :  { %6584 = vmatmul.mubr.msk.f32.gmra.mrb[114].mxu1 %vm447_vm2, %v7225_v53 }
 0xd37   :  { %6586 = vmatprep.mubr.msk.f32.mxu1 %vm447_vm2, %v7226_v62 }
 0xd3a   :  { %6587 = vmatmul.mubr.msk.f32.gmra.mrb[116].mxu1 %vm447_vm2, %v7227_v31 }
 0xd3b   :  { %6589 = vmatprep.mubr.msk.f32.mxu1 %vm447_vm2, %v7228_v52  ;;  %v7236_v52 = vld [vmem:[%s9097_s3 + $0x30] sm:$0xff] }
 0xd3e   :  { %6590 = vmatmul.mubr.msk.f32.gmra.mrb[118].mxu1 %vm447_vm2, %v7229_v39 }
 0xd3f   :  { %6656 = vmatprep.mubr.msk.f32.mxu1 %vm7248_vm0, %v9145_v37 }
 0xdb5   :  { %v6460_v35 = vpop.f32.mrb[72].mxu1 }
 0xdb6   :  { %v3499_v4 = vpop.f32.mrb[73].mxu1 }
 0xdb8   :  { %v8712_v58 = vpop.f32.mrb[72].mxu0 }
 0xdb9   :  { %v8714_v26 = vpop.f32.mrb[74].mxu1  ;;  %v8716_v27 = vpop.f32.mrb[73].mxu0 }
 0xdba   :  { %v8718_v23 = vpop.f32.mrb[75].mxu1 }
 0xdbc   :  { %v8720_v1 = vpop.f32.mrb[74].mxu0 }
 0xdbd   :  { %v8722_v24 = vpop.f32.mrb[76].mxu1  ;;  %v8724_v20 = vpop.f32.mrb[75].mxu0 }
 0xdbe   :  { %v8726_v25 = vpop.f32.mrb[77].mxu1 }
 0xdc0   :  { %v8728_v28 = vpop.f32.mrb[76].mxu0 }
 0xdc1   :  { %v8730_v61 = vpop.f32.mrb[78].mxu1  ;;  %v8732_v32 = vpop.f32.mrb[77].mxu0 }
 0xdc2   :  { %v8734_v18 = vpop.f32.mrb[79].mxu1 }
 0xdc4   :  { %v8736_v59 = vpop.f32.mrb[78].mxu0 }
 0xdc5   :  { %v8738_v43 = vpop.f32.mrb[80].mxu1  ;;  %v8740_v42 = vpop.f32.mrb[79].mxu0 }
 0xdc6   :  { %v8742_v41 = vpop.f32.mrb[81].mxu1 }
 0xdc8   :  { %v8744_v21 = vpop.f32.mrb[80].mxu0 }
 0xdc9   :  { %v8746_v63 = vpop.f32.mrb[82].mxu1  ;;  %v8748_v45 = vpop.f32.mrb[81].mxu0 }
 0xdca   :  { %v8750_v17 = vpop.f32.mrb[83].mxu1 }
 0xdcc   :  { %v8752_v40 = vpop.f32.mrb[82].mxu0 }
 0xdcd   :  { %v8754_v3 = vpop.f32.mrb[84].mxu1  ;;  %v8756_v22 = vpop.f32.mrb[83].mxu0 }
 0xdce   :  { %v8758_v51 = vpop.f32.mrb[85].mxu1 }
 0xdd0   :  { %v8760_v44 = vpop.f32.mrb[84].mxu0 }
 0xdd1   :  { %v8762_v46 = vpop.f32.mrb[86].mxu1  ;;  %v8764_v2 = vpop.f32.mrb[85].mxu0 }
 0xdd2   :  { %v8766_v36 = vpop.f32.mrb[87].mxu1 }
 0xdd4   :  { %v8768_v33 = vpop.f32.mrb[86].mxu0 }
 0xdd5   :  { %v6512_v6 = vpop.f32.mrb[88].mxu1  ;;  %v8770_v48 = vpop.f32.mrb[87].mxu0 }
 0xdd6   :  { %v3871_v50 = vpop.f32.mrb[89].mxu1  ;;  %v3951_v11 = vmul.f32 %v8781_v30, %v6512_v6 }
 0xdd7   :  { %v3950_v55 = vmul.f32 %v8775_v47, %v3871_v50  ;;  %v7238_v50 = vld [vmem:[%s9097_s3 + $0x40] sm:$0xff] }
 0xdd9   :  { %v6515_v9 = vpop.f32.mrb[90].mxu1  ;;  %6542 = vmatprep.mubr.msk.f32.mxu0 %vm1635_vm4, %v3950_v55 }
 0xdda   :  { %v3881_v49 = vpop.f32.mrb[91].mxu1  ;;  %6543 = vmatmul.mubr.msk.f32.vlgmr.msra.gmra.mrb[88].mxu0 %vm1635_vm4, %v3951_v11  ;;  %v3953_v38 = vmul.f32 %v8796_v14, %v6515_v9  ;;  %v7239_v11 = vld [vmem:[%s9097_s3 + $0x48] sm:$0xff] }
 0xddb   :  { %v3952_v29 = vmul.f32 %v8789_v12, %v3881_v49  ;;  %7047 = vmatpush3.bf16.msra.mxu0 %v9154_v54 }
 0xddc   :  { %7049 = vmatprep.subr.bf16.mxu0 %v9155_v56 }
 0xddd   :  { %v6518_v60 = vpop.f32.mrb[92].mxu1  ;;  %6545 = vmatprep.mubr.msk.f32.mxu0 %vm1635_vm4, %v3952_v29 }
 0xdde   :  { %v3891_v16 = vpop.f32.mrb[93].mxu1  ;;  %6546 = vmatmul.mubr.msk.f32.gmra.mrb[90].mxu0 %vm1635_vm4, %v3953_v38  ;;  %v3955_v53 = vmul.f32 %v7235_v0, %v6518_v60  ;;  %v7240_v38 = vld [vmem:[%s9097_s3 + $0x50] sm:$0xff] }
 0xddf   :  { %v3954_v54 = vmul.f32 %v7234_v19, %v3891_v16  ;;  %7051 = vmatpush3.bf16.msra.mxu0 %v9155_v56  ;;  %v7237_v56 = vld [vmem:[%s9097_s3 + $0x38] sm:$0xff] }
 0xde0   :  { %7076 = vmatprep.subr.bf16.mxu0 %v9146_v15  ;;  %v7241_v16 = vld [vmem:[%s9097_s3 + $0x58] sm:$0xff] }
 0xde1   :  { %v6521_v62 = vpop.f32.mrb[94].mxu1  ;;  %6548 = vmatprep.mubr.msk.f32.mxu0 %vm1635_vm4, %v3954_v54 }
 0xde2   :  { %v3901_v31 = vpop.f32.mrb[95].mxu1  ;;  %6549 = vmatmul.mubr.msk.f32.gmra.mrb[92].mxu0 %vm1635_vm4, %v3955_v53  ;;  %v3957_v35 = vmul.f32 %v7237_v56, %v6521_v62 }
 0xde3   :  { %v3956_v39 = vmul.f32 %v7236_v52, %v3901_v31  ;;  %v7242_v31 = vld [vmem:[%s9097_s3 + $0x60] sm:$0xff] }
 0xde5   :  { %v6524_v4 = vpop.f32.mrb[96].mxu1  ;;  %6551 = vmatprep.mubr.msk.f32.mxu0 %vm1635_vm4, %v3956_v39 }
 0xde6   :  { %v3911_v6 = vpop.f32.mrb[97].mxu1  ;;  %6552 = vmatmul.mubr.msk.f32.gmra.mrb[94].mxu0 %vm1635_vm4, %v3957_v35  ;;  %v3959_v9 = vmul.f32 %v7239_v11, %v6524_v4  ;;  %v7243_v35 = vld [vmem:[%s9097_s3 + $0x68] sm:$0xff] }
 0xde7   :  { %v3958_v55 = vmul.f32 %v7238_v50, %v3911_v6 }
 0xde9   :  { %v6527_v49 = vpop.f32.mrb[98].mxu1  ;;  %6554 = vmatprep.mubr.msk.f32.mxu0 %vm1635_vm4, %v3958_v55 }
 0xdea   :  { %v3921_v29 = vpop.f32.mrb[99].mxu1  ;;  %6555 = vmatmul.mubr.msk.f32.gmra.mrb[96].mxu0 %vm1635_vm4, %v3959_v9  ;;  %v3961_v54 = vmul.f32 %v7241_v16, %v6527_v49  ;;  %v7244_v9 = vld [vmem:[%s9097_s3 + $0x70] sm:$0xff] }
 0xdeb   :  { %v3960_v60 = vmul.f32 %v7240_v38, %v3921_v29  ;;  %v7245_v29 = vld [vmem:[%s9097_s3 + $0x78] sm:$0xff] }
 0xded   :  { %v6530_v53 = vpop.f32.mrb[100].mxu1  ;;  %6557 = vmatprep.mubr.msk.f32.mxu0 %vm1635_vm4, %v3960_v60 }
 0xdee   :  { %v3931_v62 = vpop.f32.mrb[101].mxu1  ;;  %6558 = vmatmul.mubr.msk.f32.gmra.mrb[98].mxu0 %vm1635_vm4, %v3961_v54  ;;  %v3963_v4 = vmul.f32 %v7243_v35, %v6530_v53 }
 0xdef   :  { %v3962_v39 = vmul.f32 %v7242_v31, %v3931_v62 }
 0xdf1   :  { %v6533_v6 = vpop.f32.mrb[102].mxu1  ;;  %6560 = vmatprep.mubr.msk.f32.mxu0 %vm1635_vm4, %v3962_v39 }
 0xdf2   :  { %v3941_v55 = vpop.f32.mrb[103].mxu1  ;;  %6561 = vmatmul.mubr.msk.f32.gmra.mrb[100].mxu0 %vm1635_vm4, %v3963_v4  ;;  %v3965_v60 = vmul.f32 %v7245_v29, %v6533_v6 }
 0xdf3   :  { %v3964_v49 = vmul.f32 %v7244_v9, %v3941_v55 }
 0xdf5   :  { %6563 = vmatprep.mubr.msk.f32.mxu0 %vm1635_vm4, %v3964_v49  ;;  %v6570_v54 = vpop.f32.mrb[104].mxu1 }
 0xdf6   :  { %6564 = vmatmul.mubr.msk.f32.gmra.mrb[102].mxu0 %vm1635_vm4, %v3965_v60  ;;  %v4257_v53 = vpop.f32.mrb[105].mxu1  ;;  %v4337_v39 = vmul.f32 %v8781_v30, %v6570_v54 }
 0xdf7   :  { %v4336_v62 = vmul.f32 %v8775_v47, %v4257_v53 }
 0xdf9   :  { %v6573_v4 = vpop.f32.mrb[106].mxu1  ;;  %6600 = vmatprep.mubr.msk.f32.mxu0 %vm1635_vm4, %v4336_v62 }
 0xdfa   :  { %v4267_v57 = vpop.f32.mrb[107].mxu1  ;;  %6601 = vmatmul.mubr.msk.f32.vlgmr.msra.gmra.mrb[104].mxu0 %vm1635_vm4, %v4337_v39  ;;  %v4339_v6 = vmul.f32 %v8796_v14, %v6573_v4 }
 0xdfb   :  { %v4338_v55 = vmul.f32 %v8789_v12, %v4267_v57 }
 0xdfd   :  { %v6576_v34 = vpop.f32.mrb[108].mxu1  ;;  %6603 = vmatprep.mubr.msk.f32.mxu0 %vm1635_vm4, %v4338_v55 }
 0xdfe   :  { %v4277_v49 = vpop.f32.mrb[109].mxu1  ;;  %6604 = vmatmul.mubr.msk.f32.gmra.mrb[106].mxu0 %vm1635_vm4, %v4339_v6  ;;  %v4341_v47 = vmul.f32 %v7235_v0, %v6576_v34 }
 0xdff   :  { %v4340_v60 = vmul.f32 %v7234_v19, %v4277_v49 }
 0xe01   :  { %v6579_v53 = vpop.f32.mrb[110].mxu1  ;;  %6606 = vmatprep.mubr.msk.f32.mxu0 %vm1635_vm4, %v4340_v60 }
 0xe02   :  { %v4287_v30 = vpop.f32.mrb[111].mxu1  ;;  %6607 = vmatmul.mubr.msk.f32.gmra.mrb[108].mxu0 %vm1635_vm4, %v4341_v47  ;;  %v4343_v62 = vmul.f32 %v7237_v56, %v6579_v53  ;;  %v5308_v47 = vld [vmem:[%s9098_s19 + $0xa0] sm:$0xff]  ;;  %v5309_v53 = vld [vmem:[%s9098_s19 + $0xa8] sm:$0xff] }
 0xe03   :  { %v4342_v54 = vmul.f32 %v7236_v52, %v4287_v30  ;;  %v7083_v30 = vpack.c.bf16 %v5309_v53, %v5308_v47 }
 0xe05   :  { %v6582_v39 = vpop.f32.mrb[112].mxu1  ;;  %6609 = vmatprep.mubr.msk.f32.mxu0 %vm1635_vm4, %v4342_v54  ;;  %v5310_v54 = vld [vmem:[%s9098_s19 + $0xb0] sm:$0xff] }
 0xe06   :  { %v4297_v57 = vpop.f32.mrb[113].mxu1  ;;  %6610 = vmatmul.mubr.msk.f32.gmra.mrb[110].mxu0 %vm1635_vm4, %v4343_v62  ;;  %v4345_v14 = vmul.f32 %v7239_v11, %v6582_v39  ;;  %v5311_v62 = vld [vmem:[%s9098_s19 + $0xb8] sm:$0xff] }
 0xe07   :  { %v4344_v12 = vmul.f32 %v7238_v50, %v4297_v57  ;;  %v7086_v39 = vpack.c.bf16 %v5311_v62, %v5310_v54  ;;  %v5312_v57 = vld [vmem:[%s9098_s19 + $0xc0] sm:$0xff]  ;;  %v5217_v62 = vld [vmem:[%s9099_s17 + $0xd8] sm:$0xff] }
 0xe09   :  { %v6585_v4 = vpop.f32.mrb[114].mxu1  ;;  %6612 = vmatprep.mubr.msk.f32.mxu0 %vm1635_vm4, %v4344_v12  ;;  %v5313_v12 = vld [vmem:[%s9098_s19 + $0xc8] sm:$0xff] }
 0xe0a   :  { %v4307_v34 = vpop.f32.mrb[115].mxu1  ;;  %6613 = vmatmul.mubr.msk.f32.gmra.mrb[112].mxu0 %vm1635_vm4, %v4345_v14  ;;  %v4347_v0 = vmul.f32 %v7241_v16, %v6585_v4  ;;  %v5305_v16 = vld [vmem:[%s9098_s19 + $0x88] sm:$0xff]  ;;  %v7089_v14 = vpack.c.bf16 %v5313_v12, %v5312_v57  ;;  %v5314_v4 = vld [vmem:[%s9098_s19 + $0xd0] sm:$0xff]  ;;  %v3606_v12 = vmul.f32 %v8746_v63, %v5217_v62 }
 0xe0b   :  { %v4346_v19 = vmul.f32 %v7240_v38, %v4307_v34  ;;  %v5304_v38 = vld [vmem:[%s9098_s19 + $0x80] sm:$0xff]  ;;  %v5315_v34 = vld [vmem:[%s9098_s19 + $0xd8] sm:$0xff] }
 0xe0d   :  { %v6588_v55 = vpop.f32.mrb[116].mxu1  ;;  %6615 = vmatprep.mubr.msk.f32.mxu0 %vm1635_vm4, %v4346_v19  ;;  %v7092_v19 = vpack.c.bf16 %v5315_v34, %v5314_v4 }
 0xe0e   :  { %v4317_v52 = vpop.f32.mrb[117].mxu1  ;;  %6616 = vmatmul.mubr.msk.f32.gmra.mrb[114].mxu0 %vm1635_vm4, %v4347_v0  ;;  %v4349_v6 = vmul.f32 %v7243_v35, %v6588_v55  ;;  %v7077_v35 = vpack.c.bf16 %v5305_v16, %v5304_v38  ;;  %v5316_v0 = vld [vmem:[%s9098_s19 + $0xe0] sm:$0xff]  ;;  %v5317_v55 = vld [vmem:[%s9098_s19 + $0xe8] sm:$0xff] }
 0xe0f   :  { %v4348_v56 = vmul.f32 %v7242_v31, %v4317_v52  ;;  %v5306_v31 = vld [vmem:[%s9098_s19 + $0x90] sm:$0xff]  ;;  %v7095_v52 = vpack.c.bf16 %v5317_v55, %v5316_v0  ;;  %v5210_v38 = vld [vmem:[%s9099_s17 + $0xa0] sm:$0xff] }
 0xe10   :  { %7078 = vmatpush3.bf16.msra.mxu0 %v7077_v35  ;;  %v3599_v35 = vmul.f32 %v5210_v38, %v8726_v25  ;;  %v5214_v25 = vld [vmem:[%s9099_s17 + $0xc0] sm:$0xff] }
 0xe11   :  { %v6591_v49 = vpop.f32.mrb[118].mxu1  ;;  %6618 = vmatprep.mubr.msk.f32.mxu0 %vm1635_vm4, %v4348_v56  ;;  %7079 = vmatprep.subr.bf16.mxu0 %v9146_v15  ;;  %v5209_v56 = vld [vmem:[%s9099_s17 + $0x98] sm:$0xff] }
 0xe12   :  { %v4327_v50 = vpop.f32.mrb[119].mxu1  ;;  %6619 = vmatmul.mubr.msk.f32.gmra.mrb[116].mxu0 %vm1635_vm4, %v4349_v6  ;;  %v4351_v60 = vmul.f32 %v7245_v29, %v6591_v49  ;;  %v5208_v6 = vld [vmem:[%s9099_s17 + $0x90] sm:$0xff]  ;;  %v3598_v49 = vmul.f32 %v8714_v26, %v5209_v56  ;;  %v5213_v26 = vld [vmem:[%s9099_s17 + $0xb8] sm:$0xff]  ;;  %v3619_v47 = vmul.f32 1.442695, %v3599_v35 }
 0xe13   :  { %v4350_v11 = vmul.f32 %v7244_v9, %v4327_v50  ;;  %v5307_v9 = vld [vmem:[%s9098_s19 + $0x98] sm:$0xff]  ;;  %v3597_v50 = vmul.f32 %v5208_v6, %v8718_v23  ;;  %v5212_v23 = vld [vmem:[%s9099_s17 + $0xb0] sm:$0xff] }
 0xe14   :  { %v7080_v29 = vpack.c.bf16 %v5307_v9, %v5306_v31  ;;  %v3601_v53 = vmul.f32 %v5212_v23, %v8734_v18  ;;  %v3603_v18 = vmul.f32 %v5214_v25, %v8742_v41 }
 0xe15   :  { %6621 = vmatprep.mubr.msk.f32.mxu0 %vm1635_vm4, %v4350_v11  ;;  %v5211_v11 = vld [vmem:[%s9099_s17 + $0xa8] sm:$0xff]  ;;  %v3615_v16 = vmul.f32 1.442695, %v3597_v50 }
 0xe16   :  { %6622 = vmatmul.mubr.msk.f32.gmra.mrb[118].mxu0 %vm1635_vm4, %v4351_v60  ;;  %v3617_v60 = vmul.f32 1.442695, %v3598_v49  ;;  %v3600_v31 = vmul.f32 %v8722_v24, %v5211_v11  ;;  %v5215_v24 = vld [vmem:[%s9099_s17 + $0xc8] sm:$0xff]  ;;  %v3627_v41 = vmul.f32 1.442695, %v3603_v18 }
 0xe17   :  { %6691 = vmatprep.mubr.msk.f32.mxu0 %vm7248_vm0, %v9145_v37  ;;  %7081 = vmatpush3.bf16.msra.mxu0 %v7080_v29  ;;  %v3602_v29 = vmul.f32 %v8730_v61, %v5213_v26  ;;  %v3604_v54 = vmul.f32 %v8738_v43, %v5215_v24  ;;  %v3623_v61 = vmul.f32 1.442695, %v3601_v53 }
 0xe18   :  { %7082 = vmatprep.subr.bf16.mxu0 %v9146_v15  ;;  %7179 = vpow2.f32 %v3617_v60  ;;  %v3621_v9 = vmul.f32 1.442695, %v3600_v31 }
 0xe19   :  { %7181 = vpow2.f32 %v3615_v16  ;;  %v3629_v34 = vmul.f32 1.442695, %v3604_v54  ;;  %v5221_v16 = vld [vmem:[%s9099_s17 + $0xf8] sm:$0xff] }
 0xe1a   :  { %7183 = vpow2.f32 %v3621_v9 }
 0xe1b   :  { %7084 = vmatpush3.bf16.msra.mxu0 %v7083_v30  ;;  %v3625_v30 = vmul.f32 1.442695, %v3602_v29  ;;  %7185 = vpow2.f32 %v3619_v47  ;;  %v3610_v47 = vmul.f32 %v8762_v46, %v5221_v16 }
 0xe1c   :  { %7085 = vmatprep.subr.bf16.mxu0 %v9146_v15 }
 0xe1d   :  { %7187 = vpow2.f32 %v3625_v30 }
 0xe1e   :  { %7189 = vpow2.f32 %v3623_v61 }
 0xe1f   :  { %7087 = vmatpush3.bf16.msra.mxu0 %v7086_v39  ;;  %v5216_v39 = vld [vmem:[%s9099_s17 + $0xd0] sm:$0xff]  ;;  %7191 = vpow2.f32 %v3629_v34 }
 0xe20   :  { %7088 = vmatprep.subr.bf16.mxu0 %v9146_v15  ;;  %v3605_v55 = vmul.f32 %v5216_v39, %v8750_v17  ;;  %7193 = vpow2.f32 %v3627_v41 }
 0xe22   :  { %v7180_v43 = vpop.eup %7179  ;;  %v3631_v60 = vmul.f32 1.442695, %v3605_v55 }
 0xe23   :  { %7090 = vmatpush3.bf16.msra.mxu0 %v7089_v14  ;;  %v7182_v0 = vpop.eup %7181 }
 0xe24   :  { %7091 = vmatprep.subr.bf16.mxu0 %v9146_v15  ;;  %v7184_v35 = vpop.eup %7183 }
 0xe27   :  { %7093 = vmatpush3.bf16.msra.mxu0 %v7092_v19 }
 0xe28   :  { %7094 = vmatprep.subr.bf16.mxu0 %v9146_v15 }
 0xe2b   :  { %7096 = vmatpush3.bf16.msra.mxu0 %v7095_v52  ;;  %v5219_v52 = vld [vmem:[%s9099_s17 + $0xe8] sm:$0xff] }
 0xe2c   :  { %7097 = vmatprep.subr.bf16.mxu0 %v9146_v15  ;;  %v3608_v17 = vmul.f32 %v8754_v3, %v5219_v52  ;;  %v7186_v3 = vpop.eup %7185 }
 0xe2d   :  { %v7188_v62 = vpop.eup %7187 }
 0xe2e   :  { %v3637_v29 = vmul.f32 1.442695, %v3608_v17 }
 0xead   :  { %v6544_v57 = vpop.f32.mrb[88].mxu0 }
 0xeae   :  { %v8963_v14 = vmul.f32 %v6544_v57, %v8712_v58  ;;  %v4080_v4 = vpop.f32.mrb[89].mxu0  ;;  %v5218_v58 = vld [vmem:[%s9099_s17 + $0xe0] sm:$0xff] }
 0xeaf   :  { %v8966_v19 = vmul.f32 %v4080_v4, %v8716_v27  ;;  %v3633_v27 = vmul.f32 1.442695, %v3606_v12  ;;  %v3607_v38 = vmul.f32 %v5218_v58, %v8758_v51 }
 0xeb0   :  { %v4550_v63 = vmul.f32 %v7180_v43, %v8963_v14 }
 0xeb1   :  { %v4549_v56 = vmul.f32 %v7182_v0, %v8966_v19  ;;  %v6547_v6 = vpop.f32.mrb[90].mxu0  ;;  %7195 = vpow2.f32 %v3633_v27  ;;  %v3635_v25 = vmul.f32 1.442695, %v3607_v38 }
 0xeb2   :  { %v4162_v49 = vmul.f32 %v6547_v6, %v8720_v1  ;;  %v4090_v50 = vpop.f32.mrb[91].mxu0  ;;  %v5220_v1 = vld [vmem:[%s9099_s17 + $0xf0] sm:$0xff]  ;;  %7197 = vpow2.f32 %v3631_v60 }
 0xeb3   :  { %v4161_v11 = vmul.f32 %v4090_v50, %v8724_v20  ;;  %v3609_v30 = vmul.f32 %v5220_v1, %v8766_v36  ;;  %7199 = vpow2.f32 %v3637_v29 }
 0xeb4   :  { %v8984_v31 = vadd.f32 %v4550_v63, %v4162_v49  ;;  %7201 = vpow2.f32 %v3635_v25 }
 0xeb5   :  { %v6550_v26 = vpop.f32.mrb[92].mxu0  ;;  %v8989_v23 = vadd.f32 %v4549_v56, %v4161_v11  ;;  %v3639_v36 = vmul.f32 1.442695, %v3609_v30 }
 0xeb6   :  { %v4164_v20 = vmul.f32 %v6550_v26, %v8728_v28  ;;  %v4100_v9 = vpop.f32.mrb[93].mxu0  ;;  %v4560_v51 = vmul.f32 %v7184_v35, %v8984_v31  ;;  %v7190_v28 = vpop.eup %7189 }
 0xeb7   :  { %v4163_v53 = vmul.f32 %v4100_v9, %v8732_v32  ;;  %v4559_v24 = vmul.f32 %v7186_v3, %v8989_v23  ;;  %v3641_v32 = vmul.f32 1.442695, %v3610_v47  ;;  %v7192_v34 = vpop.eup %7191 }
 0xeb8   :  { %v8997_v54 = vadd.f32 %v4560_v51, %v4164_v20  ;;  %v7194_v55 = vpop.eup %7193 }
 0xeb9   :  { %v6553_v61 = vpop.f32.mrb[94].mxu0  ;;  %v8999_v18 = vadd.f32 %v4559_v24, %v4163_v53  ;;  %7203 = vpow2.f32 %v3641_v32 }
 0xeba   :  { %v4166_v39 = vmul.f32 %v6553_v61, %v8736_v59  ;;  %v4110_v57 = vpop.f32.mrb[95].mxu0  ;;  %v4570_v46 = vmul.f32 %v7188_v62, %v8997_v54  ;;  %7205 = vpow2.f32 %v3639_v36 }
 0xebb   :  { %v4165_v12 = vmul.f32 %v4110_v57, %v8740_v42  ;;  %v4569_v4 = vmul.f32 %v7190_v28, %v8999_v18  ;;  %v7196_v56 = vpop.eup %7195 }
 0xebc   :  { %v9005_v43 = vadd.f32 %v4570_v46, %v4166_v39  ;;  %v7198_v50 = vpop.eup %7197 }
 0xebd   :  { %v6556_v0 = vpop.f32.mrb[96].mxu0  ;;  %v9007_v41 = vadd.f32 %v4569_v4, %v4165_v12  ;;  %v7200_v35 = vpop.eup %7199 }
 0xebe   :  { %v4168_v59 = vmul.f32 %v6556_v0, %v8744_v21  ;;  %v4120_v52 = vpop.f32.mrb[97].mxu0  ;;  %v4580_v63 = vmul.f32 %v7192_v34, %v9005_v43 }
 0xebf   :  { %v4167_v58 = vmul.f32 %v4120_v52, %v8748_v45  ;;  %v4579_v42 = vmul.f32 %v7194_v55, %v9007_v41  ;;  %v7202_v45 = vpop.eup %7201 }
 0xec0   :  { %v4584_v6 = vadd.f32 %v4580_v63, %v4168_v59 }
 0xec1   :  { %v6559_v27 = vpop.f32.mrb[98].mxu0  ;;  %v4583_v49 = vadd.f32 %v4579_v42, %v4167_v58 }
 0xec2   :  { %v4170_v17 = vmul.f32 %v6559_v27, %v8752_v40  ;;  %v4130_v11 = vpop.f32.mrb[99].mxu0  ;;  %v4590_v60 = vmul.f32 %v7196_v56, %v4584_v6 }
 0xec3   :  { %v4169_v21 = vmul.f32 %v4130_v11, %v8756_v22  ;;  %v4589_v38 = vmul.f32 %v7198_v50, %v4583_v49  ;;  %v7204_v53 = vpop.eup %7203 }
 0xec4   :  { %v4594_v16 = vadd.f32 %v4590_v60, %v4170_v17  ;;  %v7206_v25 = vpop.eup %7205 }
 0xec5   :  { %v6562_v1 = vpop.f32.mrb[100].mxu0  ;;  %v4593_v26 = vadd.f32 %v4589_v38, %v4169_v21 }
 0xec6   :  { %v4172_v3 = vmul.f32 %v6562_v1, %v8760_v44  ;;  %v4140_v20 = vpop.f32.mrb[101].mxu0  ;;  %v4600_v9 = vmul.f32 %v7200_v35, %v4594_v16 }
 0xec7   :  { %v4171_v51 = vmul.f32 %v4140_v20, %v8764_v2  ;;  %v4599_v29 = vmul.f32 %v7202_v45, %v4593_v26  ;;  %v5318_v20 = vld [vmem:[%s9098_s19 + $0xf0] sm:$0xff] }
 0xec8   :  { %v4604_v47 = vadd.f32 %v4600_v9, %v4172_v3  ;;  %v5319_v9 = vld [vmem:[%s9098_s19 + $0xf8] sm:$0xff] }
 0xec9   :  { %v6565_v40 = vpop.f32.mrb[102].mxu0  ;;  %v4603_v24 = vadd.f32 %v4599_v29, %v4171_v51  ;;  %v7098_v51 = vpack.c.bf16 %v5319_v9, %v5318_v20  ;;  %v4728_v29 = vsub.f32 0.0, %v8344_v8 }
 0xeca   :  { %v4174_v22 = vmul.f32 %v6565_v40, %v8768_v33  ;;  %v4150_v30 = vpop.f32.mrb[103].mxu0  ;;  %v4610_v62 = vmul.f32 %v7204_v53, %v4604_v47 }
 0xecb   :  { %v4173_v61 = vmul.f32 %v4150_v30, %v8770_v48  ;;  %v4609_v28 = vmul.f32 %v7206_v25, %v4603_v24  ;;  %7099 = vmatpush3.bf16.msra.mxu0 %v7098_v51 }
 0xecc   :  { %v4614_v39 = vadd.f32 %v4610_v62, %v4174_v22  ;;  %v9156_v22 = vld [vmem:[#allocation4_spill] sm:$0xff] }
 0xecd   :  { %v6602_v57 = vpop.f32.mrb[104].mxu0  ;;  %v4613_v44 = vadd.f32 %v4609_v28, %v4173_v61 }
 0xece   :  { %v4634_v46 = vmul.f32 %v6602_v57, %v8963_v14  ;;  %v4466_v32 = vpop.f32.mrb[105].mxu0 }
 0xecf   :  { %v4633_v2 = vmul.f32 %v4466_v32, %v8966_v19 }
 0xed1   :  { %v7053_v12 = vpack.c.bf16 %v4634_v46, %v4633_v2  ;;  %v6605_v4 = vpop.f32.mrb[106].mxu0  ;;  %v9157_v46 = vld [vmem:[#allocation7_spill] sm:$0xff] }
 0xed2   :  { %v4636_v36 = vmul.f32 %v6605_v4, %v8984_v31  ;;  %v4476_v34 = vpop.f32.mrb[107].mxu0 }
 0xed3   :  { %v4635_v33 = vmul.f32 %v8989_v23, %v4476_v34  ;;  %7054 = vmatpush3.bf16.msra.mxu1 %v7053_v12 }
 0xed4   :  { %7055 = vmatprep.subr.bf16.mxu1 %v9146_v15 }
 0xed5   :  { %v7056_v48 = vpack.c.bf16 %v4636_v36, %v4635_v33  ;;  %v6608_v0 = vpop.f32.mrb[108].mxu0 }
 0xed6   :  { %v4638_v55 = vmul.f32 %v6608_v0, %v8997_v54  ;;  %v4486_v59 = vpop.f32.mrb[109].mxu0 }
 0xed7   :  { %v4637_v14 = vmul.f32 %v8999_v18, %v4486_v59  ;;  %7057 = vmatpush3.bf16.msra.mxu1 %v7056_v48 }
 0xed8   :  { %7058 = vmatprep.subr.bf16.mxu1 %v9146_v15 }
 0xed9   :  { %v7059_v19 = vpack.c.bf16 %v4638_v55, %v4637_v14  ;;  %v6611_v52 = vpop.f32.mrb[110].mxu0 }
 0xeda   :  { %v4640_v31 = vmul.f32 %v6611_v52, %v9005_v43  ;;  %v4496_v63 = vpop.f32.mrb[111].mxu0 }
 0xedb   :  { %v4639_v23 = vmul.f32 %v9007_v41, %v4496_v63  ;;  %7060 = vmatpush3.bf16.msra.mxu1 %v7059_v19 }
 0xedc   :  { %7061 = vmatprep.subr.bf16.mxu1 %v9146_v15 }
 0xedd   :  { %v7062_v58 = vpack.c.bf16 %v4640_v31, %v4639_v23  ;;  %v6614_v42 = vpop.f32.mrb[112].mxu0 }
 0xede   :  { %v4642_v56 = vmul.f32 %v6614_v42, %v4584_v6  ;;  %v4506_v54 = vpop.f32.mrb[113].mxu0 }
 0xedf   :  { %v4641_v27 = vmul.f32 %v4583_v49, %v4506_v54  ;;  %7063 = vmatpush3.bf16.msra.mxu1 %v7062_v58 }
 0xee0   :  { %7064 = vmatprep.subr.bf16.mxu1 %v9146_v15 }
 0xee1   :  { %v7065_v18 = vpack.c.bf16 %v4642_v56, %v4641_v27  ;;  %v6617_v50 = vpop.f32.mrb[114].mxu0 }
 0xee2   :  { %v4644_v17 = vmul.f32 %v6617_v50, %v4594_v16  ;;  %v4516_v11 = vpop.f32.mrb[115].mxu0 }
 0xee3   :  { %v4643_v60 = vmul.f32 %v4593_v26, %v4516_v11  ;;  %7066 = vmatpush3.bf16.msra.mxu1 %v7065_v18  ;;  %v7246_v26 = vld [vmem:[%s9100_s5] sm:$0xff] }
 0xee4   :  { %7067 = vmatprep.subr.bf16.mxu1 %v9146_v15 }
 0xee5   :  { %v7068_v43 = vpack.c.bf16 %v4644_v17, %v4643_v60  ;;  %v6620_v41 = vpop.f32.mrb[116].mxu0 }
 0xee6   :  { %v4646_v21 = vmul.f32 %v6620_v41, %v4604_v47  ;;  %v4526_v38 = vpop.f32.mrb[117].mxu0  ;;  %v4729_v47 = vmul.f32 1.442695, %v4728_v29 }
 0xee7   :  { %v4645_v35 = vmul.f32 %v4603_v24, %v4526_v38  ;;  %7069 = vmatpush3.bf16.msra.mxu1 %v7068_v43  ;;  %v5303_v24 = vld [vmem:[%s9101_s18 + $0x1] ss:$0 sm:$0xff] }
 0xee8   :  { %7070 = vmatprep.subr.bf16.mxu1 %v9146_v15  ;;  %7207 = vpow2.f32 %v4729_v47  ;;  %v4657_v30 = vmul.f32 %v5303_v24, %v9156_v22 }
 0xee9   :  { %v7071_v6 = vpack.c.bf16 %v4646_v21, %v4645_v35  ;;  %v6623_v49 = vpop.f32.mrb[118].mxu0 }
 0xeea   :  { %v4648_v1 = vmul.f32 %v6623_v49, %v4614_v39  ;;  %v4536_v45 = vpop.f32.mrb[119].mxu0 }
 0xeeb   :  { %v4647_v3 = vmul.f32 %v4613_v44, %v4536_v45  ;;  %7072 = vmatpush3.bf16.msra.mxu1 %v7071_v6 }
 0xeec   :  { %7073 = vmatprep.subr.bf16.mxu1 %v9146_v15 }
 0xeed   :  { %v7074_v16 = vpack.c.bf16 %v4648_v1, %v4647_v3 }
 0xeef   :  { %7075 = vmatpush3.bf16.msra.mxu1 %v7074_v16 }
 0xef0   :  { %7100 = vmatprep.subr.bf16.mxu1 %v9146_v15 }
 0xef2   :  { %6657 = vmatmul.mubr.f32.vlgmr.msra.gmra.mrb[120].mxu1 %v7246_v26  ;;  %v7208_v53 = vpop.eup %7207 }
 0xef3   :  { %7102 = vmatpush3.bf16.msra.mxu1 %v7377_v5  ;;  %6710 = vmatprep.mubr.msk.f32.mxu1 %vm7248_vm0, %v9145_v37  ;;  %v4731_v40 = vadd.f32 1.0, %v7208_v53 }
 0xef4   :  { %7103 = vmatprep.subr.bf16.mxu1 %v9146_v15 }
 0xef5   :  { %7209 = vrcp.f32 %v4731_v40 }
 0xef7   :  { %7105 = vmatpush3.bf16.msra.mxu1 %v7386_v7 }
 0xef8   :  { %7106 = vmatprep.subr.bf16.mxu1 %v9146_v15 }
 0xefb   :  { %7108 = vmatpush3.bf16.msra.mxu1 %v7398_v10 }
 0xefc   :  { %7109 = vmatprep.subr.bf16.mxu1 %v9146_v15 }
 0xeff   :  { %7111 = vmatpush3.bf16.msra.mxu1 %v7410_v13  ;;  %v7210_v25 = vpop.eup %7209 }
 0xf00   :  { %7112 = vmatprep.subr.bf16.mxu1 %v9146_v15  ;;  %v4734_v61 = vmul.f32 %v7210_v25, %v8344_v8 }
 0xfc5   :  { %v4724_v62 = vpop.f32.mrb[120].mxu1 }
 0xfc6   :  { %v4725_v28 = vadd.f32 %v4724_v62, %v4657_v30  ;;  %v6658_v39 = vpop.f32.mrb[121].mxu1 }
 0xfc8   :  { %v4735_v57 = vmul.f32 %v4734_v61, %v4725_v28 }
 0xfca   :  { %6692 = vmatmul.mubr.f32.vlgmr.msra.gmra.mrb[120].mxu0 %v4735_v57 }
0x109d   :  { %v4819_v44 = vpop.f32.mrb[120].mxu0 }
0x109e   :  { %v4820_v32 = vadd.f32 %v4819_v44, %v9157_v46  ;;  %v6693_v2 = vpop.f32.mrb[121].mxu0 }
0x10a0   :  { %6711 = vmatmul.mubr.msk.f32.vlgmr.msra.gmra.mrb[122].mxu1 %vm120_vm1, %v4820_v32 }
0x10a1   :  { %7114 = vmatpush3.bf16.msra.mxu1 %v7377_v5  ;;  %6729 = vmatprep.mubr.msk.f32.mxu1 %vm7248_vm0, %v9145_v37 }
0x10a2   :  { %7115 = vmatprep.subr.bf16.mxu1 %v9146_v15 }
0x10a5   :  { %7117 = vmatpush3.bf16.msra.mxu1 %v7386_v7  ;;  %v5322_v7 = vld [vmem:[%s9102_s20] ss:$0 sm:$0xff] }
0x10a6   :  { %7118 = vmatprep.subr.bf16.mxu1 %v9146_v15 }
0x10a9   :  { %7120 = vmatpush3.bf16.msra.mxu1 %v7398_v10 }
0x10aa   :  { %7121 = vmatprep.subr.bf16.mxu1 %v9146_v15 }
0x10ad   :  { %7123 = vmatpush3.bf16.msra.mxu1 %v7410_v13  ;;  %v5323_v13 = vld [vmem:[%s9103_s21] ss:$0 sm:$0xff] }
0x1173   :  { %v4894_v8 = vpop.f32.mrb[122].mxu1 }
0x1174   :  { %v4898_v12 = vsub.f32 %v4820_v32, %v4894_v8  ;;  %v6712_v4 = vpop.f32.mrb[123].mxu1 }
0x1176   :  { %v4899_v36 = vmul.f32 %v4898_v12, %v4898_v12 }
0x1178   :  { %6730 = vmatmul.mubr.msk.f32.vlgmr.msra.gmra.mrb[124].mxu1 %vm120_vm1, %v4899_v36 }
0x124b   :  { %v4969_v5 = vpop.f32.mrb[124].mxu1 }
0x124c   :  { %v4970_v37 = vadd.f32 1e-05, %v4969_v5  ;;  %v6731_v34 = vpop.f32.mrb[125].mxu1 }
0x124e   :  { %7211 = vrsqrt.f32 %v4970_v37 }
0x1258   :  { %v7212_v33 = vpop.eup %7211 }
0x1259   :  { %v4974_v10 = vmul.f32 %v7212_v33, %v4898_v12 }
0x125b   :  { %v4981_v15 = vmul.f32 %v5322_v7, %v4974_v10 }
0x125d   :  { %v4988_v48 = vadd.f32 %v5323_v13, %v4981_v15 }
0x125f   :  { %4989 = vst.msk [vmem:[%s9104_s22] sm:$0xff] %vm120_vm1, %v4988_v48 }

</bundles_post_ra>
